<compile_context>
chip_gen: v6e
topology: v6e:2x2x1
jax: 0.10.0
libtpu: 0.0.40
codegen_flags: <defaults>
</compile_context>

<pallas_src>
import numpy as np
import jax
import jax.numpy as jnp
from jax import lax
from jax.experimental import pallas as pl
from jax.experimental.pallas import tpu as pltpu

NCPAD = 128   # lane-dense logits width (classes padded up to one full vreg lane group)


# ----------------------------- in-kernel helpers -----------------------------

def _elu(x):
    # ELU(alpha=1): x if x > 0 else exp(x) - 1
    return jnp.where(x > 0, x, jnp.exp(jnp.minimum(x, 0.0)) - 1.0)


def _make_kernel(dims):
    C = dims["C"]; Bblk = dims["Bblk"]
    H2 = dims["H2"]; PADH = dims["PADH"]
    LP1 = dims["LP1"]; LP2 = dims["LP2"]

    def kernel(x_ref, wtoe_ref, w2_ref, m23_ref, wcls_ref, tv_ref, out_ref):
        x = x_ref[0]                                      # (C*Bblk, Tp) bf16, rows (c, b)

        # ---- block 1: conv1(+BN1 scale) as ONE bf16 Toeplitz MXU matmul ----
        y1 = jnp.dot(x, wtoe_ref[...], preferred_element_type=jnp.float32)
        y1 = _elu(y1 + tv_ref[0:1, :])                    # (C*Bblk, 4*LP1), lanes (j, oc, p)
        # AvgPool(1,4): pool-phase-major lanes -> three 128-aligned lane-slice adds
        y1p = 0.25 * (y1[:, 0:LP1] + y1[:, LP1:2 * LP1]
                      + y1[:, 2 * LP1:3 * LP1] + y1[:, 3 * LP1:4 * LP1])   # (C*Bblk, LP1)

        # ---- block 2: grouped conv along EEG-channel axis (row-slab FMAs) ----
        w2l = w2_ref[...]                                 # (2*C, LP1) f32
        acc_a_parts, acc_b_parts = [], []
        for h in range(H2):
            acc_a = jnp.zeros((Bblk, LP1), jnp.float32)
            acc_b = jnp.zeros((Bblk, LP1), jnp.float32)
            for r in range(C):
                c = h + r - PADH
                if 0 <= c < C:                            # taps hitting zero-padding skipped
                    slab = y1p[c * Bblk:(c + 1) * Bblk, :]
                    acc_a = acc_a + slab * w2l[r:r + 1, :]
                    acc_b = acc_b + slab * w2l[C + r:C + r + 1, :]
            acc_a_parts.append(acc_a)
            acc_b_parts.append(acc_b)
        # bias-add + ELU hoisted out of the height loop: ONE add + ONE ELU total
        e2 = jnp.concatenate(
            [jnp.concatenate(acc_a_parts, axis=0),        # (H2*Bblk, LP1), rows (h, b)
             jnp.concatenate(acc_b_parts, axis=0)],
            axis=1)                                       # (H2*Bblk, 2*LP1), lanes (parity,g,p)
        e2 = _elu(e2 + tv_ref[1:2, :2 * LP1])

        # ---- block 3: AvgPool(1,4) + conv3(1x1) + BN3 fused into ONE bf16 matmul ----
        y3 = jnp.dot(e2.astype(jnp.bfloat16), m23_ref[...],
                     preferred_element_type=jnp.float32)
        e3 = _elu(y3 + tv_ref[2:3, :LP2])                 # (H2*Bblk, LP2), lanes (oc, q)

        # ---- classifier: AvgPool(1,4) + Linear fused into ONE bf16 matmul ----
        e3cat = jnp.concatenate(
            [e3[h * Bblk:(h + 1) * Bblk, :] for h in range(H2)], axis=1)  # (Bblk, H2*LP2)
        logits = jnp.dot(e3cat.astype(jnp.bfloat16), wcls_ref[...],
                         preferred_element_type=jnp.float32) + tv_ref[3:4, :NCPAD]

        # log_softmax over the lane-dense 128 class columns; padded classes carry a
        # -1e30 bias so exp() underflows to 0 and they perturb neither max nor sum.
        m = jnp.max(logits, axis=1, keepdims=True)
        z = logits - m
        lse = jnp.log(jnp.sum(jnp.exp(z), axis=1, keepdims=True))
        out_ref[...] = z - lse                            # (Bblk, 128), unmasked store

    return kernel


# --------------------------------- wrapper -----------------------------------

def _pick_bblk(B):
    # Fill the MXU (M = C*bblk rows) while keeping >= 2 grid steps so the
    # "parallel" batch axis can split across v7x's two TensorCores.
    # (~32 suits the 128-tall v5e MXU, ~64 the 256-tall v6e/v7x MXU.)
    if B <= 8:
        return 8
    return max(8, min(64, 8 * ((B + 15) // 16)))


def cnn_pallas_forward(x, params, num_classes=4, bblk=None):
    B, T, C, one = x.shape
    assert one == 1, "expected input of shape (B, T, C, 1)"
    NC = num_classes
    assert NC <= NCPAD, "num_classes must be <= 128"
    if bblk is None:
        bblk = _pick_bblk(B)
    assert bblk % 8 == 0, "batch block must be a multiple of 8 (sublane tile)"
    CH1, CH2, CH3, G = 16, 32, 32, 16

    K1 = max(1, T // 2)
    PAD1 = max(1, T // 4)
    Tp = T + 2 * PAD1
    W1 = Tp - K1 + 1
    P1 = W1 // 4
    P1p = -(-P1 // 8) * 8             # pad pool1 bins so LP1 % 128 == 0 (aligned lane slices)
    PADH = C // 2
    H2 = 2 * PADH + 1
    P2 = P1 // 4
    P3 = P2 // 4
    assert P1 >= 1 and P2 >= 1 and P3 >= 1, "time dimension too small for 3 pools"
    F = CH3 * H2 * P3
    LP1 = CH1 * P1p
    LP2 = CH3 * P2
    L1 = 4 * LP1
    eps = 1e-5

    p = params
    # fold conv bias + eval-mode BatchNorm into per-channel scale/shift
    s1 = p["bn1_g"] / jnp.sqrt(p["bn1_v"] + eps)
    t1 = (p["conv1_b"] - p["bn1_m"]) * s1 + p["bn1_b"]
    s2 = p["bn2_g"] / jnp.sqrt(p["bn2_v"] + eps)
    t2 = (p["conv2_b"] - p["bn2_m"]) * s2 + p["bn2_b"]
    s3 = p["bn3_g"] / jnp.sqrt(p["bn3_v"] + eps)
    t3 = (p["conv3_b"] - p["bn3_m"]) * s3 + p["bn3_b"]

    # ---- conv1 (+BN1 scale) Toeplitz weight, columns (j, oc, p), p padded, bf16 ----
    W1u = 4 * P1                       # conv1 outputs actually consumed by floor-mode pooling
    w1s = p["conv1_w"].reshape(CH1, K1) * s1[:, None]                 # (CH1, K1)
    t_idx = np.arange(Tp)[:, None]
    w_idx = np.arange(W1u)[None, :]
    k_idx = t_idx - w_idx                                             # (Tp, W1u)
    valid = jnp.asarray((k_idx >= 0) & (k_idx < K1), jnp.float32)
    k_clip = np.clip(k_idx, 0, K1 - 1)
    wtoe = w1s[:, k_clip] * valid[None]                               # (CH1, Tp, W1u)
    wtoe = jnp.transpose(wtoe, (1, 0, 2)).reshape(Tp, CH1, P1, 4)     # w = 4*p + j
    wtoe = jnp.transpose(wtoe, (0, 3, 1, 2))                          # (Tp, 4, CH1, P1)
    wtoe = jnp.pad(wtoe, ((0, 0), (0, 0), (0, 0), (0, P1p - P1)))
    wtoe = wtoe.reshape(Tp, L1).astype(jnp.bfloat16)                  # cols (j, oc, p)

    # ---- conv2 (grouped) per-lane weight rows, BN2 scale folded (f32, VPU) ----
    w2 = p["conv2_w"].reshape(CH2, C)
    w2a = w2[0::2] * s2[0::2][:, None]                                # (G, C) even out-chs
    w2b = w2[1::2] * s2[1::2][:, None]                                # (G, C) odd out-chs
    w2lanes = jnp.concatenate(
        [jnp.repeat(w2a.T, P1p, axis=1), jnp.repeat(w2b.T, P1p, axis=1)], axis=0)  # (2C, LP1)

    # ---- AvgPool2 + conv3(1x1) + BN3 scale fused into ONE (2*LP1, LP2) matrix (bf16) ----
    w3 = p["conv3_w"].reshape(CH3, CH2)
    w3a = w3[:, 0::2] * s3[:, None]                                   # (CH3, G)
    w3b = w3[:, 1::2] * s3[:, None]
    pool2sel = np.zeros((P1p, P2), np.float32)
    for q in range(P2):
        pool2sel[4 * q:4 * q + 4, q] = 0.25
    pool2sel = jnp.asarray(pool2sel)
    m23a = jnp.einsum('og,pq->gpoq', w3a, pool2sel).reshape(LP1, LP2)
    m23b = jnp.einsum('og,pq->gpoq', w3b, pool2sel).reshape(LP1, LP2)
    m23 = jnp.concatenate([m23a, m23b], axis=0).astype(jnp.bfloat16)  # (2*LP1, LP2)

    # ---- AvgPool3 + Linear fused into ONE (H2*LP2, 128) matrix (bf16, lane-dense) ----
    assert p["fc_w"].shape == (NC, F)
    wfc = p["fc_w"].reshape(NC, CH3, H2, P3)
    pool3sel = np.zeros((P2, P3), np.float32)
    for q in range(P3):
        pool3sel[4 * q:4 * q + 4, q] = 0.25
    pool3sel = jnp.asarray(pool3sel)
    wcls = jnp.einsum('nohq,pq->hopn', wfc, pool3sel).reshape(H2 * LP2, NC)
    wcls = jnp.pad(wcls, ((0, 0), (0, NCPAD - NC))).astype(jnp.bfloat16)

    # ---- packed shift / bias vectors (one lane-dense f32 buffer) ----
    tvecs = jnp.zeros((8, L1), jnp.float32)
    tvecs = tvecs.at[0, :].set(jnp.tile(jnp.repeat(t1, P1p), 4))      # t1, lanes (j, oc, p)
    tvecs = tvecs.at[1, :2 * LP1].set(jnp.concatenate(
        [jnp.repeat(t2[0::2], P1p), jnp.repeat(t2[1::2], P1p)]))      # t2, lanes (parity, g, p)
    tvecs = tvecs.at[2, :LP2].set(jnp.repeat(t3, P2))                 # t3, lanes (oc, q)
    fcb = jnp.full((NCPAD,), -1e30, jnp.float32).at[:NC].set(p["fc_b"])
    tvecs = tvecs.at[3, :NCPAD].set(fcb)                              # fc bias, -1e30 in pad

    # ---- input: (B,T,C,1) -> batch-blocked (nb, C*bblk, Tp), rows (c, b_local), bf16 ----
    nb = -(-B // bblk)
    Bpad = nb * bblk
    xt = jnp.transpose(x[..., 0], (0, 2, 1)).astype(jnp.float32)      # (B, C, T)
    xt = jnp.pad(xt, ((0, Bpad - B), (0, 0), (0, 0)))
    xt = xt.reshape(nb, bblk, C, T).transpose(0, 2, 1, 3)             # (nb, C, Bblk, T)
    xt = jnp.pad(xt, ((0, 0), (0, 0), (0, 0), (PAD1, PAD1)))          # (nb, C, Bblk, Tp)
    xr = xt.reshape(nb, C * bblk, Tp).astype(jnp.bfloat16)

    dims = dict(C=C, Bblk=bblk, H2=H2, PADH=PADH, LP1=LP1, LP2=LP2)
    kernel = _make_kernel(dims)

    grid_spec = pltpu.PrefetchScalarGridSpec(
        num_scalar_prefetch=0,
        grid=(nb,),
        in_specs=[
            pl.BlockSpec((1, C * bblk, Tp), lambda i: (i, 0, 0)),     # input batch block
            pl.BlockSpec((Tp, L1), lambda i: (0, 0)),                 # Toeplitz conv1 weight
            pl.BlockSpec((2 * C, LP1), lambda i: (0, 0)),             # conv2 lane weights
            pl.BlockSpec((2 * LP1, LP2), lambda i: (0, 0)),           # fused pool2+conv3 matrix
            pl.BlockSpec((H2 * LP2, NCPAD), lambda i: (0, 0)),        # fused pool3+fc matrix
            pl.BlockSpec((8, L1), lambda i: (0, 0)),                  # packed shifts/biases
        ],
        out_specs=pl.BlockSpec((bblk, NCPAD), lambda i: (i, 0)),      # lane-dense logits
    )

    out = pl.pallas_call(
        kernel,
        out_shape=jax.ShapeDtypeStruct((Bpad, NCPAD), jnp.float32),
        grid_spec=grid_spec,
        compiler_params=pltpu.CompilerParams(
            dimension_semantics=("parallel",),
            vmem_limit_bytes=64 * 1024 * 1024),
    )(xr, wtoe, w2lanes, m23, wcls, tvecs)

    return out[:B, :NC]


# ----------------------- deterministic parameter init ------------------------

def init_params(key, T, C, num_classes=4):
    CH1, CH2, CH3 = 16, 32, 32
    K1 = max(1, T // 2)
    PAD1 = max(1, T // 4)
    W1 = T + 2 * PAD1 - K1 + 1
    P1 = W1 // 4
    H2 = 2 * (C // 2) + 1
    P2 = P1 // 4
    P3 = P2 // 4
    F = CH3 * H2 * P3  # == module's self._to_linear

    ks = jax.random.split(key, 20)

    def nrm(k, shape, scale=0.1):
        return scale * jax.random.normal(k, shape, jnp.float32)

    return {
        "conv1_w": nrm(ks[0], (CH1, 1, 1, K1)), "conv1_b": nrm(ks[1], (CH1,)),
        "bn1_g": 1.0 + nrm(ks[2], (CH1,)), "bn1_b": nrm(ks[3], (CH1,)),
        "bn1_m": nrm(ks[4], (CH1,)),
        "bn1_v": 1.0 + 0.1 * jnp.abs(jax.random.normal(ks[5], (CH1,), jnp.float32)),
        "conv2_w": nrm(ks[6], (CH2, 1, C, 1)), "conv2_b": nrm(ks[7], (CH2,)),
        "bn2_g": 1.0 + nrm(ks[8], (CH2,)), "bn2_b": nrm(ks[9], (CH2,)),
        "bn2_m": nrm(ks[10], (CH2,)),
        "bn2_v": 1.0 + 0.1 * jnp.abs(jax.random.normal(ks[11], (CH2,), jnp.float32)),
        "conv3_w": nrm(ks[12], (CH3, CH2, 1, 1)), "conv3_b": nrm(ks[13], (CH3,)),
        "bn3_g": 1.0 + nrm(ks[14], (CH3,)), "bn3_b": nrm(ks[15], (CH3,)),
        "bn3_m": nrm(ks[16], (CH3,)),
        "bn3_v": 1.0 + 0.1 * jnp.abs(jax.random.normal(ks[17], (CH3,), jnp.float32)),
        "fc_w": nrm(ks[18], (num_classes, F)), "fc_b": nrm(ks[19], (num_classes,)),
    }


# --------------------------- pure-JAX reference -------------------------------

def reference_forward(x, p, num_classes=4):
    eps = 1e-5
    B, T, C, _ = x.shape
    PAD1 = max(1, T // 4)
    PADH = C // 2

    def bn(h, g, b, m, v):
        return ((h - m[None, :, None, None])
                * (g / jnp.sqrt(v + eps))[None, :, None, None]
                + b[None, :, None, None])

    def elu(h):
        return jnp.where(h > 0, h, jnp.exp(jnp.minimum(h, 0.0)) - 1.0)

    def pool_w(h, k=4):
        W = h.shape[-1]
        Wp = W // k
        return h[..., :Wp * k].reshape(h.shape[0], h.shape[1], h.shape[2], Wp, k).mean(-1)

    h = jnp.transpose(x, (0, 3, 2, 1))                                     # (B,1,C,T)
    h = lax.conv_general_dilated(h, p["conv1_w"], (1, 1), ((0, 0), (PAD1, PAD1)),
                                 dimension_numbers=("NCHW", "OIHW", "NCHW"))
    h = h + p["conv1_b"][None, :, None, None]
    h = pool_w(elu(bn(h, p["bn1_g"], p["bn1_b"], p["bn1_m"], p["bn1_v"])))
    h = lax.conv_general_dilated(h, p["conv2_w"], (1, 1), ((PADH, PADH), (0, 0)),
                                 dimension_numbers=("NCHW", "OIHW", "NCHW"),
                                 feature_group_count=16)
    h = h + p["conv2_b"][None, :, None, None]
    h = pool_w(elu(bn(h, p["bn2_g"], p["bn2_b"], p["bn2_m"], p["bn2_v"])))
    h = lax.conv_general_dilated(h, p["conv3_w"], (1, 1), ((0, 0), (0, 0)),
                                 dimension_numbers=("NCHW", "OIHW", "NCHW"))
    h = h + p["conv3_b"][None, :, None, None]
    h = pool_w(elu(bn(h, p["bn3_g"], p["bn3_b"], p["bn3_m"], p["bn3_v"])))
    flat = h.reshape(B, -1)
    logits = flat @ p["fc_w"].T + p["fc_b"][None]
    return jax.nn.log_softmax(logits, axis=1)


# ----------------------------------- main -------------------------------------

if __name__ == "__main__":
    # input_shape = (B, T, C, 1); T=64 keeps all three AvgPool(1,4) stages valid.
    # B=52 exercises batch-block padding (52 -> 64 at the auto bblk=32) and a
    # 2-step grid (so the "parallel" axis can split across v7x's two cores).
    B, T, C, NC = 52, 64, 4, 4
    key = jax.random.PRNGKey(0)
    kx, kp = jax.random.split(key)
    x = jax.random.normal(kx, (B, T, C, 1), jnp.float32)
    params = init_params(kp, T, C, NC)

    out = jax.block_until_ready(cnn_pallas_forward(x, params, num_classes=NC))
    ref = jax.block_until_ready(reference_forward(x, params, num_classes=NC))

    assert out.shape == (B, NC)
    # bf16 MXU feeds (f32 accumulation) -> looser tolerance than the all-f32 path
    np.testing.assert_allclose(np.asarray(out), np.asarray(ref), rtol=2e-2, atol=2e-2)
    print("KERNEL_OK")
</pallas_src>

<mosaic_0001>
module attributes {stable_mosaic.version = 11 : i64} {
  func.func @kernel(%arg0: i32, %arg1: memref<1x128x96xbf16, #tpu.memory_space<vmem>>, %arg2: memref<96x1024xbf16, #tpu.memory_space<vmem>>, %arg3: memref<8x256xf32, #tpu.memory_space<vmem>>, %arg4: memref<512x128xbf16, #tpu.memory_space<vmem>>, %arg5: memref<640x128xbf16, #tpu.memory_space<vmem>>, %arg6: memref<8x1024xf32, #tpu.memory_space<vmem>>, %arg7: memref<32x128xf32, #tpu.memory_space<vmem>>) attributes {dimension_semantics = [#tpu.dimension_semantics<parallel>], iteration_bounds = array<i64: 2>, scalar_prefetch = 0 : i64, scratch_operands = 0 : i64, tpu.core_type = #tpu.core_type<tc>, window_params = [{transform_indices = @transform_0, window_bounds = array<i64: 1, 128, 96>}, {pipeline_mode = #tpu.pipeline_mode<synchronous>, transform_indices = @transform_1, window_bounds = array<i64: 96, 1024>}, {pipeline_mode = #tpu.pipeline_mode<synchronous>, transform_indices = @transform_2, window_bounds = array<i64: 8, 256>}, {pipeline_mode = #tpu.pipeline_mode<synchronous>, transform_indices = @transform_3, window_bounds = array<i64: 512, 128>}, {pipeline_mode = #tpu.pipeline_mode<synchronous>, transform_indices = @transform_4, window_bounds = array<i64: 640, 128>}, {pipeline_mode = #tpu.pipeline_mode<synchronous>, transform_indices = @transform_5, window_bounds = array<i64: 8, 1024>}, {transform_indices = @transform_6, window_bounds = array<i64: 32, 128>}]} {
    %c0 = arith.constant 0 : index
    %c0_0 = arith.constant 0 : index
    %c0_1 = arith.constant 0 : index
    %0 = vector.load %arg1[%c0, %c0_0, %c0_1] : memref<1x128x96xbf16, #tpu.memory_space<vmem>>, vector<1x128x96xbf16>
    %1 = vector.shape_cast %0 : vector<1x128x96xbf16> to vector<128x96xbf16>
    %c0_2 = arith.constant 0 : index
    %c0_3 = arith.constant 0 : index
    %2 = vector.load %arg2[%c0_2, %c0_3] : memref<96x1024xbf16, #tpu.memory_space<vmem>>, vector<96x1024xbf16>
    %cst = arith.constant dense<0.000000e+00> : vector<128x1024xf32>
    %3 = tpu.matmul %1, %2, %cst {dimension_numbers = #tpu.dot_dimension_numbers<[1], [0], [0], [1], [0, 0, 1, 1], [], []>} : vector<128x96xbf16>, vector<96x1024xbf16>, vector<128x1024xf32> -> vector<128x1024xf32>
    %c0_4 = arith.constant 0 : index
    %c0_5 = arith.constant 0 : index
    %4 = vector.load %arg6[%c0_4, %c0_5] : memref<8x1024xf32, #tpu.memory_space<vmem>>, vector<1x1024xf32>
    %5 = vector.broadcast %4 : vector<1x1024xf32> to vector<128x1024xf32>
    %6 = arith.addf %3, %5 : vector<128x1024xf32>
    %cst_6 = arith.constant 0.000000e+00 : f32
    %7 = vector.broadcast %cst_6 : f32 to vector<128x1024xf32>
    %8 = arith.cmpf ogt, %6, %7 : vector<128x1024xf32>
    %cst_7 = arith.constant 0.000000e+00 : f32
    %9 = vector.broadcast %cst_7 : f32 to vector<128x1024xf32>
    %10 = arith.minimumf %6, %9 : vector<128x1024xf32>
    %11 = math.exp %10 : vector<128x1024xf32>
    %cst_8 = arith.constant 1.000000e+00 : f32
    %12 = vector.broadcast %cst_8 : f32 to vector<128x1024xf32>
    %13 = arith.subf %11, %12 : vector<128x1024xf32>
    %14 = arith.select %8, %6, %13 : vector<128x1024xi1>, vector<128x1024xf32>
    %15 = vector.extract_strided_slice %14 {offsets = [0, 0], sizes = [128, 256], strides = [1, 1]} : vector<128x1024xf32> to vector<128x256xf32>
    %16 = vector.extract_strided_slice %14 {offsets = [0, 256], sizes = [128, 256], strides = [1, 1]} : vector<128x1024xf32> to vector<128x256xf32>
    %17 = arith.addf %15, %16 : vector<128x256xf32>
    %18 = vector.extract_strided_slice %14 {offsets = [0, 512], sizes = [128, 256], strides = [1, 1]} : vector<128x1024xf32> to vector<128x256xf32>
    %19 = arith.addf %17, %18 : vector<128x256xf32>
    %20 = vector.extract_strided_slice %14 {offsets = [0, 768], sizes = [128, 256], strides = [1, 1]} : vector<128x1024xf32> to vector<128x256xf32>
    %21 = arith.addf %19, %20 : vector<128x256xf32>
    %cst_9 = arith.constant 2.500000e-01 : f32
    %22 = vector.broadcast %cst_9 : f32 to vector<128x256xf32>
    %23 = arith.mulf %22, %21 : vector<128x256xf32>
    %c0_10 = arith.constant 0 : index
    %c0_11 = arith.constant 0 : index
    %24 = vector.load %arg3[%c0_10, %c0_11] : memref<8x256xf32, #tpu.memory_space<vmem>>, vector<8x256xf32>
    %cst_12 = arith.constant 0.000000e+00 : f32
    %25 = vector.broadcast %cst_12 : f32 to vector<32x256xf32>
    %cst_13 = arith.constant 0.000000e+00 : f32
    %26 = vector.broadcast %cst_13 : f32 to vector<32x256xf32>
    %27 = vector.extract_strided_slice %23 {offsets = [0, 0], sizes = [32, 256], strides = [1, 1]} : vector<128x256xf32> to vector<32x256xf32>
    %28 = vector.extract_strided_slice %24 {offsets = [2, 0], sizes = [1, 256], strides = [1, 1]} : vector<8x256xf32> to vector<1x256xf32>
    %29 = vector.broadcast %28 : vector<1x256xf32> to vector<32x256xf32>
    %30 = arith.mulf %27, %29 : vector<32x256xf32>
    %31 = arith.addf %25, %30 : vector<32x256xf32>
    %32 = vector.extract_strided_slice %24 {offsets = [6, 0], sizes = [1, 256], strides = [1, 1]} : vector<8x256xf32> to vector<1x256xf32>
    %33 = vector.broadcast %32 : vector<1x256xf32> to vector<32x256xf32>
    %34 = arith.mulf %27, %33 : vector<32x256xf32>
    %35 = arith.addf %26, %34 : vector<32x256xf32>
    %36 = vector.extract_strided_slice %23 {offsets = [32, 0], sizes = [32, 256], strides = [1, 1]} : vector<128x256xf32> to vector<32x256xf32>
    %37 = vector.extract_strided_slice %24 {offsets = [3, 0], sizes = [1, 256], strides = [1, 1]} : vector<8x256xf32> to vector<1x256xf32>
    %38 = vector.broadcast %37 : vector<1x256xf32> to vector<32x256xf32>
    %39 = arith.mulf %36, %38 : vector<32x256xf32>
    %40 = arith.addf %31, %39 : vector<32x256xf32>
    %41 = vector.extract_strided_slice %24 {offsets = [7, 0], sizes = [1, 256], strides = [1, 1]} : vector<8x256xf32> to vector<1x256xf32>
    %42 = vector.broadcast %41 : vector<1x256xf32> to vector<32x256xf32>
    %43 = arith.mulf %36, %42 : vector<32x256xf32>
    %44 = arith.addf %35, %43 : vector<32x256xf32>
    %cst_14 = arith.constant 0.000000e+00 : f32
    %45 = vector.broadcast %cst_14 : f32 to vector<32x256xf32>
    %cst_15 = arith.constant 0.000000e+00 : f32
    %46 = vector.broadcast %cst_15 : f32 to vector<32x256xf32>
    %47 = vector.extract_strided_slice %23 {offsets = [0, 0], sizes = [32, 256], strides = [1, 1]} : vector<128x256xf32> to vector<32x256xf32>
    %48 = vector.extract_strided_slice %24 {offsets = [1, 0], sizes = [1, 256], strides = [1, 1]} : vector<8x256xf32> to vector<1x256xf32>
    %49 = vector.broadcast %48 : vector<1x256xf32> to vector<32x256xf32>
    %50 = arith.mulf %47, %49 : vector<32x256xf32>
    %51 = arith.addf %45, %50 : vector<32x256xf32>
    %52 = vector.extract_strided_slice %24 {offsets = [5, 0], sizes = [1, 256], strides = [1, 1]} : vector<8x256xf32> to vector<1x256xf32>
    %53 = vector.broadcast %52 : vector<1x256xf32> to vector<32x256xf32>
    %54 = arith.mulf %47, %53 : vector<32x256xf32>
    %55 = arith.addf %46, %54 : vector<32x256xf32>
    %56 = vector.extract_strided_slice %23 {offsets = [32, 0], sizes = [32, 256], strides = [1, 1]} : vector<128x256xf32> to vector<32x256xf32>
    %57 = vector.extract_strided_slice %24 {offsets = [2, 0], sizes = [1, 256], strides = [1, 1]} : vector<8x256xf32> to vector<1x256xf32>
    %58 = vector.broadcast %57 : vector<1x256xf32> to vector<32x256xf32>
    %59 = arith.mulf %56, %58 : vector<32x256xf32>
    %60 = arith.addf %51, %59 : vector<32x256xf32>
    %61 = vector.extract_strided_slice %24 {offsets = [6, 0], sizes = [1, 256], strides = [1, 1]} : vector<8x256xf32> to vector<1x256xf32>
    %62 = vector.broadcast %61 : vector<1x256xf32> to vector<32x256xf32>
    %63 = arith.mulf %56, %62 : vector<32x256xf32>
    %64 = arith.addf %55, %63 : vector<32x256xf32>
    %65 = vector.extract_strided_slice %23 {offsets = [64, 0], sizes = [32, 256], strides = [1, 1]} : vector<128x256xf32> to vector<32x256xf32>
    %66 = vector.extract_strided_slice %24 {offsets = [3, 0], sizes = [1, 256], strides = [1, 1]} : vector<8x256xf32> to vector<1x256xf32>
    %67 = vector.broadcast %66 : vector<1x256xf32> to vector<32x256xf32>
    %68 = arith.mulf %65, %67 : vector<32x256xf32>
    %69 = arith.addf %60, %68 : vector<32x256xf32>
    %70 = vector.extract_strided_slice %24 {offsets = [7, 0], sizes = [1, 256], strides = [1, 1]} : vector<8x256xf32> to vector<1x256xf32>
    %71 = vector.broadcast %70 : vector<1x256xf32> to vector<32x256xf32>
    %72 = arith.mulf %65, %71 : vector<32x256xf32>
    %73 = arith.addf %64, %72 : vector<32x256xf32>
    %cst_16 = arith.constant 0.000000e+00 : f32
    %74 = vector.broadcast %cst_16 : f32 to vector<32x256xf32>
    %cst_17 = arith.constant 0.000000e+00 : f32
    %75 = vector.broadcast %cst_17 : f32 to vector<32x256xf32>
    %76 = vector.extract_strided_slice %23 {offsets = [0, 0], sizes = [32, 256], strides = [1, 1]} : vector<128x256xf32> to vector<32x256xf32>
    %77 = vector.extract_strided_slice %24 {offsets = [0, 0], sizes = [1, 256], strides = [1, 1]} : vector<8x256xf32> to vector<1x256xf32>
    %78 = vector.broadcast %77 : vector<1x256xf32> to vector<32x256xf32>
    %79 = arith.mulf %76, %78 : vector<32x256xf32>
    %80 = arith.addf %74, %79 : vector<32x256xf32>
    %81 = vector.extract_strided_slice %24 {offsets = [4, 0], sizes = [1, 256], strides = [1, 1]} : vector<8x256xf32> to vector<1x256xf32>
    %82 = vector.broadcast %81 : vector<1x256xf32> to vector<32x256xf32>
    %83 = arith.mulf %76, %82 : vector<32x256xf32>
    %84 = arith.addf %75, %83 : vector<32x256xf32>
    %85 = vector.extract_strided_slice %23 {offsets = [32, 0], sizes = [32, 256], strides = [1, 1]} : vector<128x256xf32> to vector<32x256xf32>
    %86 = vector.extract_strided_slice %24 {offsets = [1, 0], sizes = [1, 256], strides = [1, 1]} : vector<8x256xf32> to vector<1x256xf32>
    %87 = vector.broadcast %86 : vector<1x256xf32> to vector<32x256xf32>
    %88 = arith.mulf %85, %87 : vector<32x256xf32>
    %89 = arith.addf %80, %88 : vector<32x256xf32>
    %90 = vector.extract_strided_slice %24 {offsets = [5, 0], sizes = [1, 256], strides = [1, 1]} : vector<8x256xf32> to vector<1x256xf32>
    %91 = vector.broadcast %90 : vector<1x256xf32> to vector<32x256xf32>
    %92 = arith.mulf %85, %91 : vector<32x256xf32>
    %93 = arith.addf %84, %92 : vector<32x256xf32>
    %94 = vector.extract_strided_slice %23 {offsets = [64, 0], sizes = [32, 256], strides = [1, 1]} : vector<128x256xf32> to vector<32x256xf32>
    %95 = vector.extract_strided_slice %24 {offsets = [2, 0], sizes = [1, 256], strides = [1, 1]} : vector<8x256xf32> to vector<1x256xf32>
    %96 = vector.broadcast %95 : vector<1x256xf32> to vector<32x256xf32>
    %97 = arith.mulf %94, %96 : vector<32x256xf32>
    %98 = arith.addf %89, %97 : vector<32x256xf32>
    %99 = vector.extract_strided_slice %24 {offsets = [6, 0], sizes = [1, 256], strides = [1, 1]} : vector<8x256xf32> to vector<1x256xf32>
    %100 = vector.broadcast %99 : vector<1x256xf32> to vector<32x256xf32>
    %101 = arith.mulf %94, %100 : vector<32x256xf32>
    %102 = arith.addf %93, %101 : vector<32x256xf32>
    %103 = vector.extract_strided_slice %23 {offsets = [96, 0], sizes = [32, 256], strides = [1, 1]} : vector<128x256xf32> to vector<32x256xf32>
    %104 = vector.extract_strided_slice %24 {offsets = [3, 0], sizes = [1, 256], strides = [1, 1]} : vector<8x256xf32> to vector<1x256xf32>
    %105 = vector.broadcast %104 : vector<1x256xf32> to vector<32x256xf32>
    %106 = arith.mulf %103, %105 : vector<32x256xf32>
    %107 = arith.addf %98, %106 : vector<32x256xf32>
    %108 = vector.extract_strided_slice %24 {offsets = [7, 0], sizes = [1, 256], strides = [1, 1]} : vector<8x256xf32> to vector<1x256xf32>
    %109 = vector.broadcast %108 : vector<1x256xf32> to vector<32x256xf32>
    %110 = arith.mulf %103, %109 : vector<32x256xf32>
    %111 = arith.addf %102, %110 : vector<32x256xf32>
    %cst_18 = arith.constant 0.000000e+00 : f32
    %112 = vector.broadcast %cst_18 : f32 to vector<32x256xf32>
    %cst_19 = arith.constant 0.000000e+00 : f32
    %113 = vector.broadcast %cst_19 : f32 to vector<32x256xf32>
    %114 = vector.extract_strided_slice %23 {offsets = [32, 0], sizes = [32, 256], strides = [1, 1]} : vector<128x256xf32> to vector<32x256xf32>
    %115 = vector.extract_strided_slice %24 {offsets = [0, 0], sizes = [1, 256], strides = [1, 1]} : vector<8x256xf32> to vector<1x256xf32>
    %116 = vector.broadcast %115 : vector<1x256xf32> to vector<32x256xf32>
    %117 = arith.mulf %114, %116 : vector<32x256xf32>
    %118 = arith.addf %112, %117 : vector<32x256xf32>
    %119 = vector.extract_strided_slice %24 {offsets = [4, 0], sizes = [1, 256], strides = [1, 1]} : vector<8x256xf32> to vector<1x256xf32>
    %120 = vector.broadcast %119 : vector<1x256xf32> to vector<32x256xf32>
    %121 = arith.mulf %114, %120 : vector<32x256xf32>
    %122 = arith.addf %113, %121 : vector<32x256xf32>
    %123 = vector.extract_strided_slice %23 {offsets = [64, 0], sizes = [32, 256], strides = [1, 1]} : vector<128x256xf32> to vector<32x256xf32>
    %124 = vector.extract_strided_slice %24 {offsets = [1, 0], sizes = [1, 256], strides = [1, 1]} : vector<8x256xf32> to vector<1x256xf32>
    %125 = vector.broadcast %124 : vector<1x256xf32> to vector<32x256xf32>
    %126 = arith.mulf %123, %125 : vector<32x256xf32>
    %127 = arith.addf %118, %126 : vector<32x256xf32>
    %128 = vector.extract_strided_slice %24 {offsets = [5, 0], sizes = [1, 256], strides = [1, 1]} : vector<8x256xf32> to vector<1x256xf32>
    %129 = vector.broadcast %128 : vector<1x256xf32> to vector<32x256xf32>
    %130 = arith.mulf %123, %129 : vector<32x256xf32>
    %131 = arith.addf %122, %130 : vector<32x256xf32>
    %132 = vector.extract_strided_slice %23 {offsets = [96, 0], sizes = [32, 256], strides = [1, 1]} : vector<128x256xf32> to vector<32x256xf32>
    %133 = vector.extract_strided_slice %24 {offsets = [2, 0], sizes = [1, 256], strides = [1, 1]} : vector<8x256xf32> to vector<1x256xf32>
    %134 = vector.broadcast %133 : vector<1x256xf32> to vector<32x256xf32>
    %135 = arith.mulf %132, %134 : vector<32x256xf32>
    %136 = arith.addf %127, %135 : vector<32x256xf32>
    %137 = vector.extract_strided_slice %24 {offsets = [6, 0], sizes = [1, 256], strides = [1, 1]} : vector<8x256xf32> to vector<1x256xf32>
    %138 = vector.broadcast %137 : vector<1x256xf32> to vector<32x256xf32>
    %139 = arith.mulf %132, %138 : vector<32x256xf32>
    %140 = arith.addf %131, %139 : vector<32x256xf32>
    %cst_20 = arith.constant 0.000000e+00 : f32
    %141 = vector.broadcast %cst_20 : f32 to vector<32x256xf32>
    %cst_21 = arith.constant 0.000000e+00 : f32
    %142 = vector.broadcast %cst_21 : f32 to vector<32x256xf32>
    %143 = vector.extract_strided_slice %23 {offsets = [64, 0], sizes = [32, 256], strides = [1, 1]} : vector<128x256xf32> to vector<32x256xf32>
    %144 = vector.extract_strided_slice %24 {offsets = [0, 0], sizes = [1, 256], strides = [1, 1]} : vector<8x256xf32> to vector<1x256xf32>
    %145 = vector.broadcast %144 : vector<1x256xf32> to vector<32x256xf32>
    %146 = arith.mulf %143, %145 : vector<32x256xf32>
    %147 = arith.addf %141, %146 : vector<32x256xf32>
    %148 = vector.extract_strided_slice %24 {offsets = [4, 0], sizes = [1, 256], strides = [1, 1]} : vector<8x256xf32> to vector<1x256xf32>
    %149 = vector.broadcast %148 : vector<1x256xf32> to vector<32x256xf32>
    %150 = arith.mulf %143, %149 : vector<32x256xf32>
    %151 = arith.addf %142, %150 : vector<32x256xf32>
    %152 = vector.extract_strided_slice %23 {offsets = [96, 0], sizes = [32, 256], strides = [1, 1]} : vector<128x256xf32> to vector<32x256xf32>
    %153 = vector.extract_strided_slice %24 {offsets = [1, 0], sizes = [1, 256], strides = [1, 1]} : vector<8x256xf32> to vector<1x256xf32>
    %154 = vector.broadcast %153 : vector<1x256xf32> to vector<32x256xf32>
    %155 = arith.mulf %152, %154 : vector<32x256xf32>
    %156 = arith.addf %147, %155 : vector<32x256xf32>
    %157 = vector.extract_strided_slice %24 {offsets = [5, 0], sizes = [1, 256], strides = [1, 1]} : vector<8x256xf32> to vector<1x256xf32>
    %158 = vector.broadcast %157 : vector<1x256xf32> to vector<32x256xf32>
    %159 = arith.mulf %152, %158 : vector<32x256xf32>
    %160 = arith.addf %151, %159 : vector<32x256xf32>
    %161 = tpu.concatenate %40, %69, %107, %136, %156 in 0 : vector<32x256xf32>, vector<32x256xf32>, vector<32x256xf32>, vector<32x256xf32>, vector<32x256xf32> -> vector<160x256xf32>
    %162 = tpu.concatenate %44, %73, %111, %140, %160 in 0 : vector<32x256xf32>, vector<32x256xf32>, vector<32x256xf32>, vector<32x256xf32>, vector<32x256xf32> -> vector<160x256xf32>
    %163 = tpu.concatenate %161, %162 in 1 : vector<160x256xf32>, vector<160x256xf32> -> vector<160x512xf32>
    %c1 = arith.constant 1 : index
    %c0_22 = arith.constant 0 : index
    %164 = vector.load %arg6[%c1, %c0_22] : memref<8x1024xf32, #tpu.memory_space<vmem>>, vector<1x512xf32>
    %165 = vector.broadcast %164 : vector<1x512xf32> to vector<160x512xf32>
    %166 = arith.addf %163, %165 : vector<160x512xf32>
    %cst_23 = arith.constant 0.000000e+00 : f32
    %167 = vector.broadcast %cst_23 : f32 to vector<160x512xf32>
    %168 = arith.cmpf ogt, %166, %167 : vector<160x512xf32>
    %cst_24 = arith.constant 0.000000e+00 : f32
    %169 = vector.broadcast %cst_24 : f32 to vector<160x512xf32>
    %170 = arith.minimumf %166, %169 : vector<160x512xf32>
    %171 = math.exp %170 : vector<160x512xf32>
    %cst_25 = arith.constant 1.000000e+00 : f32
    %172 = vector.broadcast %cst_25 : f32 to vector<160x512xf32>
    %173 = arith.subf %171, %172 : vector<160x512xf32>
    %174 = arith.select %168, %166, %173 : vector<160x512xi1>, vector<160x512xf32>
    %175 = arith.truncf %174 : vector<160x512xf32> to vector<160x512xbf16>
    %c0_26 = arith.constant 0 : index
    %c0_27 = arith.constant 0 : index
    %176 = vector.load %arg4[%c0_26, %c0_27] : memref<512x128xbf16, #tpu.memory_space<vmem>>, vector<512x128xbf16>
    %cst_28 = arith.constant dense<0.000000e+00> : vector<160x128xf32>
    %177 = tpu.matmul %175, %176, %cst_28 {dimension_numbers = #tpu.dot_dimension_numbers<[1], [0], [0], [1], [0, 0, 1, 1], [], []>} : vector<160x512xbf16>, vector<512x128xbf16>, vector<160x128xf32> -> vector<160x128xf32>
    %c2 = arith.constant 2 : index
    %c0_29 = arith.constant 0 : index
    %178 = vector.load %arg6[%c2, %c0_29] : memref<8x1024xf32, #tpu.memory_space<vmem>>, vector<1x128xf32>
    %179 = vector.broadcast %178 : vector<1x128xf32> to vector<160x128xf32>
    %180 = arith.addf %177, %179 : vector<160x128xf32>
    %cst_30 = arith.constant 0.000000e+00 : f32
    %181 = vector.broadcast %cst_30 : f32 to vector<160x128xf32>
    %182 = arith.cmpf ogt, %180, %181 : vector<160x128xf32>
    %cst_31 = arith.constant 0.000000e+00 : f32
    %183 = vector.broadcast %cst_31 : f32 to vector<160x128xf32>
    %184 = arith.minimumf %180, %183 : vector<160x128xf32>
    %185 = math.exp %184 : vector<160x128xf32>
    %cst_32 = arith.constant 1.000000e+00 : f32
    %186 = vector.broadcast %cst_32 : f32 to vector<160x128xf32>
    %187 = arith.subf %185, %186 : vector<160x128xf32>
    %188 = arith.select %182, %180, %187 : vector<160x128xi1>, vector<160x128xf32>
    %189 = vector.extract_strided_slice %188 {offsets = [0, 0], sizes = [32, 128], strides = [1, 1]} : vector<160x128xf32> to vector<32x128xf32>
    %190 = vector.extract_strided_slice %188 {offsets = [32, 0], sizes = [32, 128], strides = [1, 1]} : vector<160x128xf32> to vector<32x128xf32>
    %191 = vector.extract_strided_slice %188 {offsets = [64, 0], sizes = [32, 128], strides = [1, 1]} : vector<160x128xf32> to vector<32x128xf32>
    %192 = vector.extract_strided_slice %188 {offsets = [96, 0], sizes = [32, 128], strides = [1, 1]} : vector<160x128xf32> to vector<32x128xf32>
    %193 = vector.extract_strided_slice %188 {offsets = [128, 0], sizes = [32, 128], strides = [1, 1]} : vector<160x128xf32> to vector<32x128xf32>
    %194 = tpu.concatenate %189, %190, %191, %192, %193 in 1 : vector<32x128xf32>, vector<32x128xf32>, vector<32x128xf32>, vector<32x128xf32>, vector<32x128xf32> -> vector<32x640xf32>
    %195 = arith.truncf %194 : vector<32x640xf32> to vector<32x640xbf16>
    %c0_33 = arith.constant 0 : index
    %c0_34 = arith.constant 0 : index
    %196 = vector.load %arg5[%c0_33, %c0_34] : memref<640x128xbf16, #tpu.memory_space<vmem>>, vector<640x128xbf16>
    %cst_35 = arith.constant dense<0.000000e+00> : vector<32x128xf32>
    %197 = tpu.matmul %195, %196, %cst_35 {dimension_numbers = #tpu.dot_dimension_numbers<[1], [0], [0], [1], [0, 0, 1, 1], [], []>} : vector<32x640xbf16>, vector<640x128xbf16>, vector<32x128xf32> -> vector<32x128xf32>
    %c3 = arith.constant 3 : index
    %c0_36 = arith.constant 0 : index
    %198 = vector.load %arg6[%c3, %c0_36] : memref<8x1024xf32, #tpu.memory_space<vmem>>, vector<1x128xf32>
    %199 = vector.broadcast %198 : vector<1x128xf32> to vector<32x128xf32>
    %200 = arith.addf %197, %199 : vector<32x128xf32>
    %cst_37 = arith.constant dense<0xFF800000> : vector<32xf32>
    %201 = vector.multi_reduction <maximumf>, %200, %cst_37 [1] : vector<32x128xf32> to vector<32xf32>
    %202 = vector.shape_cast %201 : vector<32xf32> to vector<32x1xf32>
    %203 = vector.broadcast %202 : vector<32x1xf32> to vector<32x128xf32>
    %204 = arith.subf %200, %203 : vector<32x128xf32>
    %205 = math.exp %204 : vector<32x128xf32>
    %cst_38 = arith.constant dense<0.000000e+00> : vector<32xf32>
    %206 = vector.multi_reduction <add>, %205, %cst_38 [1] : vector<32x128xf32> to vector<32xf32>
    %207 = vector.shape_cast %206 : vector<32xf32> to vector<32x1xf32>
    %208 = math.log %207 : vector<32x1xf32>
    %209 = vector.broadcast %208 : vector<32x1xf32> to vector<32x128xf32>
    %210 = arith.subf %204, %209 : vector<32x128xf32>
    %c0_39 = arith.constant 0 : index
    %c0_40 = arith.constant 0 : index
    %211 = vector.load %arg7[%c0_39, %c0_40] : memref<32x128xf32, #tpu.memory_space<vmem>>, vector<32x128xf32>
    tpu.vector_store %arg7[%c0_39, %c0_40], %210 {strides = array<i32>} : memref<32x128xf32, #tpu.memory_space<vmem>>, vector<32x128xf32>,
    return
  }
  func.func @transform_0(%arg0: i32) -> (i32, i32, i32) {
    %c0_i32 = arith.constant 0 : i32
    %c0_i32_0 = arith.constant 0 : i32
    %c0_i32_1 = arith.constant 0 : i32
    return %arg0, %c0_i32, %c0_i32_0 : i32, i32, i32
  }
  func.func @transform_1(%arg0: i32) -> (i32, i32) {
    %c0_i32 = arith.constant 0 : i32
    %c0_i32_0 = arith.constant 0 : i32
    %c0_i32_1 = arith.constant 0 : i32
    return %c0_i32, %c0_i32_0 : i32, i32
  }
  func.func @transform_2(%arg0: i32) -> (i32, i32) {
    %c0_i32 = arith.constant 0 : i32
    %c0_i32_0 = arith.constant 0 : i32
    %c0_i32_1 = arith.constant 0 : i32
    return %c0_i32, %c0_i32_0 : i32, i32
  }
  func.func @transform_3(%arg0: i32) -> (i32, i32) {
    %c0_i32 = arith.constant 0 : i32
    %c0_i32_0 = arith.constant 0 : i32
    %c0_i32_1 = arith.constant 0 : i32
    return %c0_i32, %c0_i32_0 : i32, i32
  }
  func.func @transform_4(%arg0: i32) -> (i32, i32) {
    %c0_i32 = arith.constant 0 : i32
    %c0_i32_0 = arith.constant 0 : i32
    %c0_i32_1 = arith.constant 0 : i32
    return %c0_i32, %c0_i32_0 : i32, i32
  }
  func.func @transform_5(%arg0: i32) -> (i32, i32) {
    %c0_i32 = arith.constant 0 : i32
    %c0_i32_0 = arith.constant 0 : i32
    %c0_i32_1 = arith.constant 0 : i32
    return %c0_i32, %c0_i32_0 : i32, i32
  }
  func.func @transform_6(%arg0: i32) -> (i32, i32) {
    %c0_i32 = arith.constant 0 : i32
    %c0_i32_0 = arith.constant 0 : i32
    return %arg0, %c0_i32 : i32, i32
  }
}

</mosaic_0001>

<bundles_post_ra>
// kernel: tpu_custom_call.1
= control target key start
LH: loop header
LB: loop body
LE: loop exit
PB: predicated region body
PF: predicated region fallthrough
CT: control target
= control target key end

     0   :  { %11 = vsyncpa [#allocation3], 0  ;;  %s8515_s0 = inlined_call_operand.vmem [shape: bf16[2,128,96], index: 0, kind: input, shape index: {}]   ;;  %s8516_s1 = inlined_call_operand.hbm [shape: bf16[96,1024], index: 1, kind: input, shape index: {}]   ;;  %s8517_s2 = inlined_call_operand.vmem [shape: f32[8,256], index: 2, kind: input, shape index: {}]   ;;  %s8518_s3 = inlined_call_operand.hbm [shape: bf16[512,128], index: 3, kind: input, shape index: {}]   ;;  %s8519_s4 = inlined_call_operand.hbm [shape: bf16[640,128], index: 4, kind: input, shape index: {}]   ;;  %s8520_s5 = inlined_call_operand.vmem [shape: f32[8,1024], index: 5, kind: input, shape index: {}]   ;;  %s8521_s6 = inlined_call_operand.hbm [shape: f32[64,128], index: 6, kind: output, shape index: {}]  }
   0x1   :  { %12 = vsyncpa [#allocation6], 0 }
   0x2   :  { %13 = vsyncpa [#allocation4], 0 }
   0x3   :  { %15 = vsyncpa [#allocation4 + $0x1], 0  ;;  %s5896_s21 = smov 0   ;;  %s5898_s22 = smov 0  }
   0x4   :  { %s5900_s23 = smov 0   ;;  %s5902_s24 = smov 0  }
   0x5 LB: > { %s5917_s25 = sadd.s32 4294967295, %s5848_s24   ;;  %s4426_s26 = sadd.s32 4294967294, %s5848_s24   ;;  %s5848_s24 = sphi %s5902_s24, %s8704_s24   ;;  %s5844_s23 = sphi %s5900_s23, %s8703_s23   ;;  %s5840_s22 = sphi %s5898_s22, %s8702_s22   ;;  %s5836_s21 = sphi %s5896_s21, %s8701_s21  }
   0x6   : > { %s5921_s27 = sadd.s32 1, %s5848_s24   ;;  %s159_s28 = sadd.s32 1, %s5844_s23 }
   0x7   : > { %s156_s29 = ssub.s32 %s5848_s24, %s5921_s27  ;;  %p169_p0 = scmp.ne.s32.totalorder %s5844_s23, %s5840_s22 }
   0x8   : > { %p157_p1 = scmp.eq.s32.totalorder %s156_s29, 0  ;;  %p170_p2 = scmp.eq.s32.totalorder %s5917_s25, 1 }
   0x9   : > { %p175_p3 = scmp.ne.s32.totalorder %s5840_s22, %s5836_s21  ;;  %p176_p4 = scmp.eq.s32.totalorder %s4426_s26, 1 }
   0xa   : > { %s5932_s30 = scalar_select %p157_p1, %s5844_s23, %s159_s28  }
   0xb   : > { %p5934_p5 = por %p170_p2, %p169_p0  ;;  %p5938_p6 = por %p176_p4, %p175_p3 }
   0xc   : > { %p4427_p7 = scmp.ge.s32.totalorder %s5848_s24, 1  ;;  %p183_p8 = scmp.lt.s32.totalorder %s5848_s24, 3 }
   0xd   : > { %p5101_p9 = scmp.eq.s32.totalorder %s5917_s25, 0  ;;  %s5850_s10 = smov [#allocation5]  }
   0xe   : > { %p5945_p10 = pnand %p4427_p7, %p183_p8  ;;  %s211_s11 = sshll.u32 %s5850_s10, 4  ;;  %s212_s11 = int_to_ptr.vmem [resolvable:$true] %s211_s11 }
   0xf   : > { %s5851_s13 = smov [#allocation2]   ;;  %s5713_s15 = scalar_lea.vmem %s212_s11, 4096 }
  0x10   : > { %p5087_p11 = pneg %p5945_p10  ;;  %s195_s14 = sshll.u32 %s5851_s13, 4  ;;  %s196_s14 = int_to_ptr.vmem [resolvable:$true] %s195_s14 }
  0x11   : > { %p5714_p0 = scmp.ne.s32.totalorder %s212_s11, %s5713_s15  ;;  %p5721_p3 = scmp.lt.s32.totalorder %s212_s11, %s212_s11 }
  0x12   : > { %p5953_p12 = pnand %p5101_p9, %p5087_p11  ;;  %p5722_p4 = scmp.lt.s32.totalorder %s5713_s15, %s5713_s15 }
  0x14   : > { %p5704_p13 = pneg %p5953_p12  ;;  %p5723_p7 = por %p5722_p4, %p5721_p3 }
  0x16   : > { %p5716_p1 = pnand %p5714_p0, %p5704_p13 }
  0x18   : > { %p5717_p2 = pneg %p5716_p1 }
  0x1a   : > { %p5724_p8 = pnand %p5723_p7, %p5717_p2 }
  0x1c   : > { %5727 = shalt.err (!%p5724_p8)
}
  0x1d   : > { %s5852_s16 = smov 64   ;;  %s5853_s17 = smov 4  }
  0x1e   : > { %5093 = dma.hbm_to_vmem [thread:$0]  (!%p5953_p12), %s8518_s3, 4096, %s212_s11, [#allocation6], %s5852_s16, %s5852_s16, %s5853_s17  }
  0x1f   : > { %s5739_s20 = scalar_lea.vmem %s196_s14, 6144  ;;  %p5747_p2 = scmp.lt.s32.totalorder %s196_s14, %s196_s14 }
  0x20   : > { %p5740_p11 = scmp.ne.s32.totalorder %s196_s14, %s5739_s20  ;;  %p5748_p3 = scmp.lt.s32.totalorder %s5739_s20, %s5739_s20 }
  0x22   : > { %p5742_p0 = pnand %p5740_p11, %p5704_p13  ;;  %p5749_p4 = por %p5748_p3, %p5747_p2 }
  0x24   : > { %p5743_p1 = pneg %p5742_p0 }
  0x26   : > { %p5750_p7 = pnand %p5749_p4, %p5743_p1 }
  0x28   : > { %5753 = shalt.err (!%p5750_p7)
}
  0x29   : > { %s5854_s26 = smov 512   ;;  %s5855_s28 = smov 32  }
  0x2a   : > { %5090 = dma.hbm_to_vmem [thread:$0]  (!%p5953_p12), %s8516_s1, 6144, %s196_s14, [#allocation3], %s5854_s26, %s5854_s26, %s5855_s28  }
  0x2b   : > { %s5856_s11 = smov [#allocation7]  }
  0x2c   : > { %s224_s13 = sshll.u32 %s5856_s11, 4  ;;  %s225_s13 = int_to_ptr.vmem [resolvable:$true] %s224_s13 }
  0x2d   : > { %s5765_s15 = scalar_lea.vmem %s225_s13, 5120  ;;  %p5773_p1 = scmp.lt.s32.totalorder %s225_s13, %s225_s13 }
  0x2e   : > { %p5766_p8 = scmp.ne.s32.totalorder %s225_s13, %s5765_s15  ;;  %p5774_p2 = scmp.lt.s32.totalorder %s5765_s15, %s5765_s15 }
  0x30   : > { %p5768_p11 = pnand %p5766_p8, %p5704_p13  ;;  %p5775_p3 = por %p5774_p2, %p5773_p1 }
  0x32   : > { %p5769_p0 = pneg %p5768_p11 }
  0x34   : > { %p5776_p4 = pnand %p5775_p3, %p5769_p0 }
  0x36   : > { %5779 = shalt.err (!%p5776_p4)
}
  0x37   : > { %5096 = dma.hbm_to_vmem [thread:$0]  (!%p5953_p12), %s8519_s4, 5120, %s225_s13, [#allocation6], %s5852_s16, %s5852_s16, %s5853_s17  }
  0x38   : > { %251 = sbr.rel (%p5945_p10) target bundleno = 1567 (0x61f), region = 44 }
  0x3d   : > { %5823 = dma.done.wait (%p5101_p9), [#allocation3], 6144  }
  0x3e   : > { %5825 = vsyncadd (%p5101_p9), [#allocation3], 4294961152 }
  0x3f   : > { %5827 = dma.done.wait (%p5101_p9), [#allocation6], 9216  }
  0x40   : > { %5829 = vsyncadd (%p5101_p9), [#allocation6], 4294958080  ;;  %v5857_v0 = vmov 0   ;;  %p289_p10 = scmp.lt.s32.totalorder %s5917_s25, 1  ;;  %v352_v1 = vld [vmem:[#allocation2 + $0x140] sm:$0xff]  ;;  %v353_v3 = vld [vmem:[#allocation2 + $0x148] sm:$0xff] }
  0x41   : > { %741 = vmatprep.mubr.bf16.mxu0 %v5857_v0  ;;  %854 = vmatprep.mubr.bf16.mxu1 %v5857_v0  ;;  %v356_v2 = vld [vmem:[#allocation2 + $0x160] sm:$0xff]  ;;  %v357_v5 = vld [vmem:[#allocation2 + $0x168] sm:$0xff]  ;;  %v354_v46 = vld [vmem:[#allocation2 + $0x150] sm:$0xff]  ;;  %vm684_vm0 = vcmask 785408   ;;  %s4834_s29 = sshll.u32 %s5917_s25, 9 }
  0x42   : > { %s6003_s9 = scalar_select %p289_p10, %s5917_s25, 1  ;;  %v4488_v4 = vcombine.high %v352_v1, %v356_v2  ;;  %v4487_v6 = vcombine.low %v352_v1, %v356_v2  ;;  %v344_v7 = vld [vmem:[#allocation2 + $0x100] sm:$0xff]  ;;  %v4490_v9 = vcombine.high %v353_v3, %v357_v5  ;;  %v4489_v10 = vcombine.low %v353_v3, %v357_v5  ;;  %v345_v12 = vld [vmem:[#allocation2 + $0x108] sm:$0xff]  ;;  %v358_v48 = vld [vmem:[#allocation2 + $0x170] sm:$0xff] }
  0x43   : > { %v348_v8 = vld [vmem:[#allocation2 + $0x120] sm:$0xff]  ;;  %v349_v13 = vld [vmem:[#allocation2 + $0x128] sm:$0xff]  ;;  %v355_v49 = vld [vmem:[#allocation2 + $0x158] sm:$0xff]  ;;  %v4492_v53 = vcombine.high %v354_v46, %v358_v48  ;;  %v4491_v59 = vcombine.low %v354_v46, %v358_v48  ;;  %s8473_s13 = scalar_lea.hbm %s8521_s6, %s4834_s29  ;;  %s5858_s25 = smov [#allocation8]  }
  0x44   : > { %v4480_v11 = vcombine.high %v344_v7, %v348_v8  ;;  %v336_v14 = vld [vmem:[#allocation2 + $0xc0] sm:$0xff]  ;;  %713 = vmatprep.subr.bf16.mxu0 %v4488_v4  ;;  %v4482_v15 = vcombine.high %v345_v12, %v349_v13  ;;  %v337_v17 = vld [vmem:[#allocation2 + $0xc8] sm:$0xff]  ;;  %826 = vmatprep.subr.bf16.mxu1 %v4490_v9  ;;  %v4479_v19 = vcombine.low %v344_v7, %v348_v8  ;;  %s4833_s12 = sshll.u32 %s6003_s9, 6  ;;  %v359_v50 = vld [vmem:[#allocation2 + $0x178] sm:$0xff]  ;;  %s5784_s18 = sshll.u32 %s5858_s25, 4  ;;  %s5785_s18 = int_to_ptr.vmem [resolvable:$false] %s5784_s18 }
  0x45   : > { %v340_v16 = vld [vmem:[#allocation2 + $0xe0] sm:$0xff]  ;;  %v341_v18 = vld [vmem:[#allocation2 + $0xe8] sm:$0xff]  ;;  %714 = vmatpush1.bf16.msra.mxu0 %v4487_v6  ;;  %827 = vmatpush1.bf16.msra.mxu1 %v4489_v10  ;;  %v4481_v20 = vcombine.low %v345_v12, %v349_v13  ;;  %s6009_s19 = scalar_lea.vmem %s8515_s0, %s4833_s12  ;;  %v4494_v55 = vcombine.high %v355_v49, %v359_v50  ;;  %v346_v56 = vld [vmem:[#allocation2 + $0x110] sm:$0xff]  ;;  %v4493_v63 = vcombine.low %v355_v49, %v359_v50  ;;  %s5786_s9 = scalar_lea.vmem %s5785_s18, 1024 }
  0x46   : > { %715 = vmatprep.subr.bf16.mxu0 %v4480_v11  ;;  %v4472_v21 = vcombine.high %v336_v14, %v340_v16  ;;  %828 = vmatprep.subr.bf16.mxu1 %v4482_v15  ;;  %v4474_v22 = vcombine.high %v337_v17, %v341_v18  ;;  %v328_v23 = vld [vmem:[#allocation2 + $0x80] sm:$0xff]  ;;  %v329_v25 = vld [vmem:[#allocation2 + $0x88] sm:$0xff]  ;;  %v4471_v27 = vcombine.low %v336_v14, %v340_v16  ;;  %v350_v57 = vld [vmem:[#allocation2 + $0x130] sm:$0xff] }
  0x47   : > { %v332_v24 = vld [vmem:[#allocation2 + $0xa0] sm:$0xff]  ;;  %v333_v26 = vld [vmem:[#allocation2 + $0xa8] sm:$0xff]  ;;  %v4473_v28 = vcombine.low %v337_v17, %v341_v18  ;;  %v347_v58 = vld [vmem:[#allocation2 + $0x118] sm:$0xff]  ;;  %v4484_v3 = vcombine.high %v346_v56, %v350_v57  ;;  %v4483_v5 = vcombine.low %v346_v56, %v350_v57 }
  0x48   : > { %v4464_v29 = vcombine.high %v328_v23, %v332_v24  ;;  %v320_v30 = vld [vmem:[#allocation2 + $0x40] sm:$0xff]  ;;  %v4466_v31 = vcombine.high %v329_v25, %v333_v26  ;;  %v321_v33 = vld [vmem:[#allocation2 + $0x48] sm:$0xff]  ;;  %v4463_v35 = vcombine.low %v328_v23, %v332_v24  ;;  %v4465_v36 = vcombine.low %v329_v25, %v333_v26  ;;  %v351_v60 = vld [vmem:[#allocation2 + $0x138] sm:$0xff] }
  0x49   : > { %716 = vmatpush1.bf16.msra.mxu0 %v4479_v19  ;;  %829 = vmatpush1.bf16.msra.mxu1 %v4481_v20  ;;  %v324_v32 = vld [vmem:[#allocation2 + $0x60] sm:$0xff]  ;;  %v325_v34 = vld [vmem:[#allocation2 + $0x68] sm:$0xff]  ;;  %v338_v61 = vld [vmem:[#allocation2 + $0xd0] sm:$0xff]  ;;  %v4486_v4 = vcombine.high %v347_v58, %v351_v60  ;;  %v4485_v7 = vcombine.low %v347_v58, %v351_v60 }
  0x4a   : > { %717 = vmatprep.subr.bf16.mxu0 %v4472_v21  ;;  %830 = vmatprep.subr.bf16.mxu1 %v4474_v22  ;;  %v4456_v37 = vcombine.high %v320_v30, %v324_v32  ;;  %v312_v38 = vld [vmem:[#allocation2] sm:$0xff]  ;;  %v4458_v39 = vcombine.high %v321_v33, %v325_v34  ;;  %v313_v41 = vld [vmem:[#allocation2 + $0x8] sm:$0xff]  ;;  %v4455_v43 = vcombine.low %v320_v30, %v324_v32  ;;  %v342_v62 = vld [vmem:[#allocation2 + $0xf0] sm:$0xff] }
  0x4b   : > { %v316_v40 = vld [vmem:[#allocation2 + $0x20] sm:$0xff]  ;;  %v317_v42 = vld [vmem:[#allocation2 + $0x28] sm:$0xff]  ;;  %v4457_v44 = vcombine.low %v321_v33, %v325_v34  ;;  %v339_v1 = vld [vmem:[#allocation2 + $0xd8] sm:$0xff]  ;;  %v4476_v8 = vcombine.high %v338_v61, %v342_v62  ;;  %v4475_v14 = vcombine.low %v338_v61, %v342_v62 }
  0x4c   : > { %v4448_v45 = vcombine.high %v312_v38, %v316_v40  ;;  %v4450_v47 = vcombine.high %v313_v41, %v317_v42  ;;  %v4447_v51 = vcombine.low %v312_v38, %v316_v40  ;;  %v4449_v52 = vcombine.low %v313_v41, %v317_v42  ;;  %v6012_v54 = vld [vmem:[%s6009_s19] sm:$0xff]   ;;  %v343_v2 = vld [vmem:[#allocation2 + $0xf8] sm:$0xff]  ;;  %v6020_v6 = vld [vmem:[%s6009_s19 + $0x8] sm:$0xff]  }
  0x4d   : > { %718 = vmatpush1.bf16.msra.mxu0 %v4471_v27  ;;  %831 = vmatpush1.bf16.msra.mxu1 %v4473_v28  ;;  %v330_v9 = vld [vmem:[#allocation2 + $0x90] sm:$0xff]  ;;  %v4478_v11 = vcombine.high %v339_v1, %v343_v2  ;;  %v331_v12 = vld [vmem:[#allocation2 + $0x98] sm:$0xff]  ;;  %v4477_v17 = vcombine.low %v339_v1, %v343_v2  ;;  %v5154_v38 = vld [vmem:[%s6009_s19 + $0x20] sm:$0xff]   ;;  %v364_v42 = vlaneseq }
  0x4e   : > { %719 = vmatprep.subr.bf16.mxu0 %v4464_v29  ;;  %832 = vmatprep.subr.bf16.mxu1 %v4466_v31  ;;  %v334_v10 = vld [vmem:[#allocation2 + $0xb0] sm:$0xff]  ;;  %v335_v13 = vld [vmem:[#allocation2 + $0xb8] sm:$0xff] }
  0x4f   : > { %v322_v15 = vld [vmem:[#allocation2 + $0x50] sm:$0xff]  ;;  %v4468_v18 = vcombine.high %v330_v9, %v334_v10  ;;  %v323_v19 = vld [vmem:[#allocation2 + $0x58] sm:$0xff]  ;;  %v4470_v21 = vcombine.high %v331_v12, %v335_v13  ;;  %v4467_v23 = vcombine.low %v330_v9, %v334_v10  ;;  %v4469_v26 = vcombine.low %v331_v12, %v335_v13 }
  0x50   : > { %v326_v16 = vld [vmem:[#allocation2 + $0x70] sm:$0xff]  ;;  %v327_v20 = vld [vmem:[#allocation2 + $0x78] sm:$0xff] }
  0x51   : > { %720 = vmatpush1.bf16.msra.mxu0 %v4463_v35  ;;  %833 = vmatpush1.bf16.msra.mxu1 %v4465_v36  ;;  %v6030_v22 = vld [vmem:[%s6009_s19 + $0x10] sm:$0xff]   ;;  %v4460_v27 = vcombine.high %v322_v15, %v326_v16  ;;  %v315_v28 = vld [vmem:[#allocation2 + $0x18] sm:$0xff]  ;;  %v4462_v30 = vcombine.high %v323_v19, %v327_v20  ;;  %v4459_v31 = vcombine.low %v322_v15, %v326_v16 }
  0x52   : > { %721 = vmatprep.subr.bf16.mxu0 %v4456_v37  ;;  %834 = vmatprep.subr.bf16.mxu1 %v4458_v39  ;;  %v314_v24 = vld [vmem:[#allocation2 + $0x10] sm:$0xff]  ;;  %v319_v29 = vld [vmem:[#allocation2 + $0x38] sm:$0xff]  ;;  %v4461_v32 = vcombine.low %v323_v19, %v327_v20  ;;  %v5155_v39 = vld [vmem:[%s6009_s19 + $0x28] sm:$0xff]  }
  0x53   : > { %v318_v25 = vld [vmem:[#allocation2 + $0x30] sm:$0xff]  ;;  %v4454_v34 = vcombine.high %v315_v28, %v319_v29  ;;  %v5153_v35 = vld [vmem:[%s6009_s19 + $0x18] sm:$0xff]   ;;  %v4453_v37 = vcombine.low %v315_v28, %v319_v29 }
  0x54   : > { %v4452_v33 = vcombine.high %v314_v24, %v318_v25  ;;  %v4451_v36 = vcombine.low %v314_v24, %v318_v25  ;;  %v5156_v40 = vld [vmem:[%s6009_s19 + $0x30] sm:$0xff]   ;;  %v5157_v41 = vld [vmem:[%s6009_s19 + $0x38] sm:$0xff]   ;;  %s286_s19 = sand.u32 1, %s5840_s22  }
  0x55   : > { %722 = vmatpush1.bf16.msra.mxu0 %v4455_v43  ;;  %835 = vmatpush1.bf16.msra.mxu1 %v4457_v44  ;;  %v6099_v43 = vshrl.u32 %v364_v42, 7  ;;  %v360_v44 = vld [vmem:[%s8520_s5] ss:$8 sm:$0xf]  ;;  %s4436_s20 = sshll.u32 %s286_s19, 5  ;;  %s8475_s15 = scalar_lea.sflag [#allocation4], %s286_s19 }
  0x56   : > { %723 = vmatprep.subr.bf16.mxu0 %v4448_v45  ;;  %836 = vmatprep.subr.bf16.mxu1 %v4450_v47  ;;  %v361_v45 = vld [vmem:[%s8520_s5] ss:$8 sm:$0xf0]  ;;  %s288_s26 = scalar_lea.vmem [#allocation8], %s4436_s20 }
  0x57   : > { %v6107_v46 = vor.u32 %v361_v45, %v360_v44  ;;  %v6110_v47 = vsub.s32 0, %v6099_v43  ;;  %v6116_v48 = vsub.s32 1, %v6099_v43  ;;  %v6119_v49 = vsub.s32 3, %v6099_v43  ;;  %s4333_s28 = sshll.u32 %s288_s26, 4  ;;  %s8468_s28 = int_to_ptr.vmem [resolvable:$true] %s4333_s28 }
  0x58   : > { %s5780_s14 = scalar_lea.vmem %s8468_s28, 512  ;;  %p5787_p7 = scmp.lt.s32.totalorder %s8468_s28, %s5785_s18 }
  0x59   : > { %724 = vmatpush1.bf16.msra.mxu0 %v4447_v51  ;;  %837 = vmatpush1.bf16.msra.mxu1 %v4449_v52  ;;  %8586 = vst [vmem:[#allocation12_spill] sm:$0xff] %v6110_v47  ;;  %8588 = vst [vmem:[#allocation14_spill] sm:$0xff] %v6116_v48  ;;  %v6123_v50 = vrot.slane %v6107_v46, %v6110_v47  ;;  %v6131_v52 = vrot.slane %v6107_v46, %v6116_v48  ;;  %p5781_p9 = scmp.ne.s32.totalorder %s8468_s28, %s5780_s14  ;;  %p5788_p8 = scmp.lt.s32.totalorder %s5786_s9, %s5780_s14 }
  0x5a   : > { %939 = vmatprep.subr.bf16.mxu0 %v4492_v53  ;;  %1052 = vmatprep.subr.bf16.mxu1 %v4494_v55  ;;  %8589 = vst [vmem:[#allocation15_spill] sm:$0xff] %v6119_v49 }
  0x5b   : > { %p5782_p12 = pnand %p5781_p9, %p5934_p5  ;;  %p5789_p11 = por %p5788_p8, %p5787_p7 }
  0x5c   : > { %4495 = vmatmul.mubr.msk.bf16.vlgmr.msra.gmra.mxu0 %vm684_vm0, %v6012_v54  ;;  %4503 = vmatmul.mubr.msk.bf16.vlgmr.msra.gmra.mxu1 %vm684_vm0, %v6012_v54 }
  0x5d   : > { %940 = vmatpush1.bf16.msra.mxu0 %v4491_v59  ;;  %1053 = vmatpush1.bf16.msra.mxu1 %v4493_v63  ;;  %p5783_p13 = pneg %p5782_p12 }
  0x5e   : > { %751 = vmatprep.mubr.bf16.mxu0 %v5857_v0  ;;  %864 = vmatprep.mubr.bf16.mxu1 %v5857_v0 }
  0x5f   : > { %941 = vmatprep.subr.bf16.mxu0 %v4484_v3  ;;  %1054 = vmatprep.subr.bf16.mxu1 %v4486_v4  ;;  %p5790_p0 = pnand %p5789_p11, %p5783_p13 }
  0x61   : > { %942 = vmatpush1.bf16.msra.mxu0 %v4483_v5  ;;  %1055 = vmatpush1.bf16.msra.mxu1 %v4485_v7 }
  0x62   : > { %943 = vmatprep.subr.bf16.mxu0 %v4476_v8  ;;  %1056 = vmatprep.subr.bf16.mxu1 %v4478_v11 }
  0x64   : > { %4496 = vmatmul.mubr.msk.bf16.gmra.mxu0 %vm684_vm0, %v6020_v6  ;;  %4504 = vmatmul.mubr.msk.bf16.gmra.mxu1 %vm684_vm0, %v6020_v6 }
  0x65   : > { %761 = vmatprep.mubr.bf16.mxu0 %v5857_v0  ;;  %874 = vmatprep.mubr.bf16.mxu1 %v5857_v0 }
  0x66   : > { %944 = vmatpush1.bf16.msra.mxu0 %v4475_v14  ;;  %1057 = vmatpush1.bf16.msra.mxu1 %v4477_v17 }
  0x67   : > { %945 = vmatprep.subr.bf16.mxu0 %v4468_v18  ;;  %1058 = vmatprep.subr.bf16.mxu1 %v4470_v21 }
  0x6a   : > { %946 = vmatpush1.bf16.msra.mxu0 %v4467_v23  ;;  %1059 = vmatpush1.bf16.msra.mxu1 %v4469_v26 }
  0x6b   : > { %947 = vmatprep.subr.bf16.mxu0 %v4460_v27  ;;  %1060 = vmatprep.subr.bf16.mxu1 %v4462_v30 }
  0x6c   : > { %4497 = vmatmul.mubr.msk.bf16.gmra.mxu0 %vm684_vm0, %v6030_v22  ;;  %4505 = vmatmul.mubr.msk.bf16.gmra.mxu1 %vm684_vm0, %v6030_v22 }
  0x6d   : > { %771 = vmatprep.mubr.bf16.mxu0 %v5857_v0  ;;  %884 = vmatprep.mubr.bf16.mxu1 %v5857_v0 }
  0x6e   : > { %948 = vmatpush1.bf16.msra.mxu0 %v4459_v31  ;;  %1061 = vmatpush1.bf16.msra.mxu1 %v4461_v32 }
  0x6f   : > { %949 = vmatprep.subr.bf16.mxu0 %v4452_v33  ;;  %1062 = vmatprep.subr.bf16.mxu1 %v4454_v34 }
  0x72   : > { %950 = vmatpush1.bf16.msra.mxu0 %v4451_v36  ;;  %1063 = vmatpush1.bf16.msra.mxu1 %v4453_v37 }
  0x74   : > { %4498 = vmatmul.mubr.msk.bf16.gmra.mxu0 %vm684_vm0, %v5153_v35  ;;  %4506 = vmatmul.mubr.msk.bf16.gmra.mxu1 %vm684_vm0, %v5153_v35 }
  0x75   : > { %781 = vmatprep.mubr.bf16.mxu0 %v5857_v0  ;;  %894 = vmatprep.mubr.bf16.mxu1 %v5857_v0 }
  0x7c   : > { %4499 = vmatmul.mubr.msk.bf16.gmra.mxu0 %vm684_vm0, %v5154_v38  ;;  %4507 = vmatmul.mubr.msk.bf16.gmra.mxu1 %vm684_vm0, %v5154_v38 }
  0x7d   : > { %791 = vmatprep.mubr.bf16.mxu0 %v5857_v0  ;;  %904 = vmatprep.mubr.bf16.mxu1 %v5857_v0 }
  0x84   : > { %4500 = vmatmul.mubr.msk.bf16.gmra.mxu0 %vm684_vm0, %v5155_v39  ;;  %4508 = vmatmul.mubr.msk.bf16.gmra.mxu1 %vm684_vm0, %v5155_v39 }
  0x85   : > { %801 = vmatprep.mubr.bf16.mxu0 %v5857_v0  ;;  %914 = vmatprep.mubr.bf16.mxu1 %v5857_v0 }
  0x8c   : > { %4501 = vmatmul.mubr.msk.bf16.gmra.mxu0 %vm684_vm0, %v5156_v40  ;;  %4509 = vmatmul.mubr.msk.bf16.gmra.mxu1 %vm684_vm0, %v5156_v40 }
  0x8d   : > { %811 = vmatprep.mubr.bf16.mxu0 %v5857_v0  ;;  %924 = vmatprep.mubr.bf16.mxu1 %v5857_v0 }
  0x94   : > { %4502 = vmatmul.mubr.msk.bf16.gmra.mxu0 %vm684_vm0, %v5157_v41  ;;  %4510 = vmatmul.mubr.msk.bf16.gmra.mxu1 %vm684_vm0, %v5157_v41 }
  0x95   : > { %967 = vmatprep.mubr.bf16.mxu0 %v5857_v0  ;;  %1080 = vmatprep.mubr.bf16.mxu1 %v5857_v0 }
  0x9c   : > { %4511 = vmatmul.mubr.msk.bf16.vlgmr.msra.gmra.mxu0 %vm684_vm0, %v6012_v54  ;;  %4519 = vmatmul.mubr.msk.bf16.vlgmr.msra.gmra.mxu1 %vm684_vm0, %v6012_v54  ;;  %v6135_v54 = vrot.slane %v6107_v46, %v6119_v49 }
  0x9d   : > { %977 = vmatprep.mubr.bf16.mxu0 %v5857_v0  ;;  %1090 = vmatprep.mubr.bf16.mxu1 %v5857_v0 }
  0xa4   : > { %4512 = vmatmul.mubr.msk.bf16.gmra.mxu0 %vm684_vm0, %v6020_v6  ;;  %4520 = vmatmul.mubr.msk.bf16.gmra.mxu1 %vm684_vm0, %v6020_v6 }
  0xa5   : > { %987 = vmatprep.mubr.bf16.mxu0 %v5857_v0  ;;  %1100 = vmatprep.mubr.bf16.mxu1 %v5857_v0 }
  0xac   : > { %4513 = vmatmul.mubr.msk.bf16.gmra.mxu0 %vm684_vm0, %v6030_v22  ;;  %4521 = vmatmul.mubr.msk.bf16.gmra.mxu1 %vm684_vm0, %v6030_v22 }
  0xad   : > { %997 = vmatprep.mubr.bf16.mxu0 %v5857_v0  ;;  %1110 = vmatprep.mubr.bf16.mxu1 %v5857_v0 }
  0xb4   : > { %4514 = vmatmul.mubr.msk.bf16.gmra.mxu0 %vm684_vm0, %v5153_v35  ;;  %4522 = vmatmul.mubr.msk.bf16.gmra.mxu1 %vm684_vm0, %v5153_v35 }
  0xb5   : > { %1007 = vmatprep.mubr.bf16.mxu0 %v5857_v0  ;;  %1120 = vmatprep.mubr.bf16.mxu1 %v5857_v0 }
  0xbc   : > { %4515 = vmatmul.mubr.msk.bf16.gmra.mxu0 %vm684_vm0, %v5154_v38  ;;  %4523 = vmatmul.mubr.msk.bf16.gmra.mxu1 %vm684_vm0, %v5154_v38 }
  0xbd   : > { %1017 = vmatprep.mubr.bf16.mxu0 %v5857_v0  ;;  %1130 = vmatprep.mubr.bf16.mxu1 %v5857_v0 }
  0xc4   : > { %4516 = vmatmul.mubr.msk.bf16.gmra.mxu0 %vm684_vm0, %v5155_v39  ;;  %4524 = vmatmul.mubr.msk.bf16.gmra.mxu1 %vm684_vm0, %v5155_v39 }
  0xc5   : > { %1027 = vmatprep.mubr.bf16.mxu0 %v5857_v0  ;;  %1140 = vmatprep.mubr.bf16.mxu1 %v5857_v0 }
  0xcc   : > { %4517 = vmatmul.mubr.msk.bf16.gmra.mxu0 %vm684_vm0, %v5156_v40  ;;  %4525 = vmatmul.mubr.msk.bf16.gmra.mxu1 %vm684_vm0, %v5156_v40 }
  0xcd   : > { %1037 = vmatprep.mubr.bf16.mxu0 %v5857_v0  ;;  %1150 = vmatprep.mubr.bf16.mxu1 %v5857_v0  ;;  %v6113_v0 = vsub.s32 2, %v6099_v43 }
  0xcf   : > { %8587 = vst [vmem:[#allocation13_spill] sm:$0xff] %v6113_v0  ;;  %v6127_v51 = vrot.slane %v6107_v46, %v6113_v0 }
  0xd4   : > { %4518 = vmatmul.mubr.msk.bf16.gmra.mxu0 %vm684_vm0, %v5157_v41  ;;  %4526 = vmatmul.mubr.msk.bf16.gmra.mxu1 %vm684_vm0, %v5157_v41 }
 0x11c   : > { %v743_v53 = vpop.f32.mrf.mxu0  ;;  %v856_v56 = vpop.f32.mrf.mxu1 }
 0x11d   : > { %v6138_v55 = vadd.f32 %v743_v53, %v6123_v50  ;;  %v6141_v57 = vadd.f32 %v856_v56, %v6127_v51 }
 0x11e   : > { %v745_v58 = vpop.f32.mrf.mxu0  ;;  %v858_v61 = vpop.f32.mrf.mxu1 }
 0x11f   : > { %v1289_v59 = vmin.f32 %v6138_v55, 0.0  ;;  %v6145_v60 = vadd.f32 %v745_v58, %v6131_v52  ;;  %v1291_v62 = vmin.f32 %v6141_v57, 0.0  ;;  %v6149_v63 = vadd.f32 %v858_v61, %v6135_v54 }
 0x120   : > { %v747_v1 = vpop.f32.mrf.mxu0  ;;  %v860_v5 = vpop.f32.mrf.mxu1  ;;  %vm1161_vm1 = vcmp.gt.f32.partialorder %v6138_v55, 0.0  ;;  %vm1163_vm2 = vcmp.gt.f32.partialorder %v6141_v57, 0.0 }
 0x121   : > { %v1417_v2 = vmul.f32 1.442695, %v1289_v59  ;;  %v1290_v3 = vmin.f32 %v6145_v60, 0.0  ;;  %v6153_v4 = vadd.f32 %v747_v1, %v6123_v50  ;;  %v1421_v6 = vmul.f32 1.442695, %v1291_v62 }
 0x122   : > { %v1292_v7 = vmin.f32 %v6149_v63, 0.0  ;;  %v6157_v8 = vadd.f32 %v860_v5, %v6127_v51  ;;  %v6159_v9 = vpop.f32.mrf.mxu0  ;;  %v6162_v12 = vpop.f32.mrf.mxu1  ;;  %vm1162_vm3 = vcmp.gt.f32.partialorder %v6145_v60, 0.0  ;;  %vm1164_vm4 = vcmp.gt.f32.partialorder %v6149_v63, 0.0 }
 0x123   : > { %5230 = vpow2.f32 %v1417_v2  ;;  %v1419_v10 = vmul.f32 1.442695, %v1290_v3  ;;  %v1297_v11 = vmin.f32 %v6153_v4, 0.0  ;;  %vm1169_vm5 = vcmp.gt.f32.partialorder %v6153_v4, 0.0 }
 0x124   : > { %5232 = vpow2.f32 %v1421_v6  ;;  %v1423_v13 = vmul.f32 1.442695, %v1292_v7  ;;  %v1299_v14 = vmin.f32 %v6157_v8, 0.0  ;;  %v753_v15 = vpop.f32.mrf.mxu0  ;;  %v866_v17 = vpop.f32.mrf.mxu1  ;;  %vm1171_vm6 = vcmp.gt.f32.partialorder %v6157_v8, 0.0 }
 0x125   : > { %5234 = vpow2.f32 %v1419_v10  ;;  %v1433_v16 = vmul.f32 1.442695, %v1297_v11  ;;  %v6166_v19 = vadd.f32 %v753_v15, %v6123_v50  ;;  %v6169_v20 = vadd.f32 %v866_v17, %v6127_v51 }
 0x126   : > { %5236 = vpow2.f32 %v1423_v13  ;;  %v1437_v18 = vmul.f32 1.442695, %v1299_v14  ;;  %v755_v21 = vpop.f32.mrf.mxu0  ;;  %v868_v22 = vpop.f32.mrf.mxu1 }
 0x127   : > { %5238 = vpow2.f32 %v1433_v16  ;;  %v1305_v23 = vmin.f32 %v6166_v19, 0.0  ;;  %v1307_v25 = vmin.f32 %v6169_v20, 0.0  ;;  %v6174_v26 = vadd.f32 %v755_v21, %v6131_v52 }
 0x128   : > { %5240 = vpow2.f32 %v1437_v18  ;;  %v757_v24 = vpop.f32.mrf.mxu0  ;;  %v870_v27 = vpop.f32.mrf.mxu1  ;;  %v6177_v29 = vadd.f32 %v868_v22, %v6135_v54  ;;  %vm1177_vm7 = vcmp.gt.f32.partialorder %v6166_v19, 0.0  ;;  %vm1179_vm8 = vcmp.gt.f32.partialorder %v6169_v20, 0.0 }
 0x129   : > { %v1449_v28 = vmul.f32 1.442695, %v1305_v23  ;;  %v6180_v30 = vadd.f32 %v757_v24, %v6123_v50  ;;  %v1453_v32 = vmul.f32 1.442695, %v1307_v25  ;;  %v1306_v33 = vmin.f32 %v6174_v26, 0.0 }
 0x12a   : > { %v759_v31 = vpop.f32.mrf.mxu0  ;;  %v872_v34 = vpop.f32.mrf.mxu1  ;;  %v1308_v35 = vmin.f32 %v6177_v29, 0.0  ;;  %v6187_v39 = vadd.f32 %v870_v27, %v6127_v51  ;;  %vm1178_vm9 = vcmp.gt.f32.partialorder %v6174_v26, 0.0  ;;  %vm1180_vm10 = vcmp.gt.f32.partialorder %v6177_v29, 0.0 }
 0x12b   : > { %5242 = vpow2.f32 %v1449_v28  ;;  %v1451_v37 = vmul.f32 1.442695, %v1306_v33  ;;  %v1313_v38 = vmin.f32 %v6180_v30, 0.0  ;;  %v6190_v42 = vadd.f32 %v759_v31, %v6131_v52 }
 0x12c   : > { %v763_v36 = vpop.f32.mrf.mxu0  ;;  %v876_v40 = vpop.f32.mrf.mxu1  ;;  %5244 = vpow2.f32 %v1453_v32  ;;  %v1455_v41 = vmul.f32 1.442695, %v1308_v35  ;;  %v6193_v44 = vadd.f32 %v872_v34, %v6135_v54  ;;  %v1315_v56 = vmin.f32 %v6187_v39, 0.0 }
 0x12d   : > { %5246 = vpow2.f32 %v1451_v37  ;;  %v1465_v53 = vmul.f32 1.442695, %v1313_v38  ;;  %v1314_v61 = vmin.f32 %v6190_v42, 0.0  ;;  %v6202_v11 = vadd.f32 %v763_v36, %v6123_v50 }
 0x12e   : > { %v765_v45 = vpop.f32.mrf.mxu0  ;;  %v878_v58 = vpop.f32.mrf.mxu1  ;;  %5248 = vpow2.f32 %v1455_v41  ;;  %v1469_v2 = vmul.f32 1.442695, %v1315_v56  ;;  %v1316_v3 = vmin.f32 %v6193_v44, 0.0  ;;  %v6205_v13 = vadd.f32 %v876_v40, %v6127_v51 }
 0x12f   : > { %5250 = vpow2.f32 %v1465_v53  ;;  %v1467_v10 = vmul.f32 1.442695, %v1314_v61  ;;  %v1321_v32 = vmin.f32 %v6202_v11, 0.0  ;;  %vm1185_vm11 = vcmp.gt.f32.partialorder %v6180_v30, 0.0 }
 0x130   : > { %v5231_v59 = vpop.eup %5230  ;;  %v767_v5 = vpop.f32.mrf.mxu0  ;;  %5252 = vpow2.f32 %v1469_v2  ;;  %v1471_v17 = vmul.f32 1.442695, %v1316_v3  ;;  %v1323_v35 = vmin.f32 %v6205_v13, 0.0  ;;  %vm1187_vm12 = vcmp.gt.f32.partialorder %v6187_v39, 0.0 }
 0x131   : > { %v5233_v62 = vpop.eup %5232  ;;  %v4527_v1 = vadd.f32 -1.0, %v5231_v59  ;;  %v880_v18 = vpop.f32.mrf.mxu1  ;;  %5254 = vpow2.f32 %v1467_v10  ;;  %v1481_v38 = vmul.f32 1.442695, %v1321_v32  ;;  %v6243_v59 = vadd.f32 %v767_v5, %v6123_v50 }
 0x132   : > { %v5235_v6 = vpop.eup %5234  ;;  %v4529_v7 = vadd.f32 -1.0, %v5233_v62  ;;  %5256 = vpow2.f32 %v1471_v17  ;;  %v6219_v28 = vpop.f32.mrf.mxu0  ;;  %v1485_v41 = vmul.f32 1.442695, %v1323_v35  ;;  %vm1186_vm13 = vcmp.gt.f32.partialorder %v6190_v42, 0.0 }
 0x133   : > { %v5237_v14 = vpop.eup %5236  ;;  %v1801_v15 = vsel %vm1161_vm1, %v6138_v55, %v4527_v1  ;;  %v4528_v16 = vadd.f32 -1.0, %v5235_v6  ;;  %v6233_v36 = vpop.f32.mrf.mxu1  ;;  %5258 = vpow2.f32 %v1481_v38  ;;  %v1329_v17 = vmin.f32 %v6243_v59, 0.0 }
 0x134   : > { %v5239_v21 = vpop.eup %5238  ;;  %v1803_v22 = vsel %vm1163_vm2, %v6141_v57, %v4529_v7  ;;  %v4530_v23 = vadd.f32 -1.0, %v5237_v14  ;;  %v773_v53 = vpop.f32.mrf.mxu0  ;;  %5260 = vpow2.f32 %v1485_v41  ;;  %vm1188_vm14 = vcmp.gt.f32.partialorder %v6193_v44, 0.0 }
 0x135   : > { %v5241_v24 = vpop.eup %5240  ;;  %v6214_v25 = vadd.f32 %v1803_v22, %v1801_v15  ;;  %v1802_v55 = vsel %vm1162_vm3, %v6145_v60, %v4528_v16  ;;  %v4535_v27 = vadd.f32 -1.0, %v5239_v21  ;;  %v6231_v60 = vadd.f32 %v765_v45, %v6131_v52 }
 0x136   : > { %v1804_v31 = vsel %vm1164_vm4, %v6149_v63, %v4530_v23  ;;  %v4537_v57 = vadd.f32 -1.0, %v5241_v24  ;;  %v6237_v63 = vadd.f32 %v878_v58, %v6135_v54  ;;  %v886_v58 = vpop.f32.mrf.mxu1  ;;  %v775_v10 = vpop.f32.mrf.mxu0  ;;  %vm1193_vm15 = vcmp.gt.f32.partialorder %v6202_v11, 0.0 }
 0x137   : > { %v6226_v33 = vadd.f32 %v1804_v31, %v1802_v55  ;;  %v1809_v34 = vsel %vm1169_vm5, %v6153_v4, %v4535_v27  ;;  %v1322_v4 = vmin.f32 %v6231_v60, 0.0  ;;  %v1497_v27 = vmul.f32 1.442695, %v1329_v17 }
 0x138   : > { %v1811_v37 = vsel %vm1171_vm6, %v6157_v8, %v4537_v57  ;;  %v5243_v56 = vpop.eup %5242  ;;  %v1324_v8 = vmin.f32 %v6237_v63, 0.0  ;;  %v888_v24 = vpop.f32.mrf.mxu1  ;;  %v6259_v31 = vadd.f32 %v880_v18, %v6127_v51  ;;  %vm1195_vm0 = vcmp.gt.f32.partialorder %v6205_v13, 0.0 }
 0x139   : > { %v6239_v40 = vadd.f32 %v1811_v37, %v1809_v34  ;;  %v5245_v45 = vpop.eup %5244  ;;  %v4543_v61 = vadd.f32 -1.0, %v5243_v56  ;;  %v1483_v2 = vmul.f32 1.442695, %v1322_v4  ;;  %v777_v35 = vpop.f32.mrf.mxu0  ;;  %vm1194_vm1 = vcmp.gt.f32.partialorder %v6231_v60, 0.0 }
 0x13a   : > { %v5247_v62 = vpop.eup %5246  ;;  %v4545_v1 = vadd.f32 -1.0, %v5245_v45  ;;  %v1487_v7 = vmul.f32 1.442695, %v1324_v8  ;;  %v890_v41 = vpop.f32.mrf.mxu1  ;;  %v6294_v17 = vadd.f32 %v777_v35, %v6123_v50  ;;  %vm1196_vm2 = vcmp.gt.f32.partialorder %v6237_v63, 0.0 }
 0x13b   : > { %v5249_v3 = vpop.eup %5248  ;;  %v1817_v6 = vsel %vm1177_vm7, %v6166_v19, %v4543_v61  ;;  %v4544_v5 = vadd.f32 -1.0, %v5247_v62  ;;  %5262 = vpow2.f32 %v1483_v2  ;;  %v6274_v61 = vadd.f32 %v773_v53, %v6123_v50  ;;  %v779_v8 = vpop.f32.mrf.mxu0 }
 0x13c   : > { %v5251_v14 = vpop.eup %5250  ;;  %v1819_v15 = vsel %vm1179_vm8, %v6169_v20, %v4545_v1  ;;  %v4546_v16 = vadd.f32 -1.0, %v5249_v3  ;;  %5264 = vpow2.f32 %v1487_v7  ;;  %v6282_v1 = vadd.f32 %v775_v10, %v6131_v52  ;;  %v892_v3 = vpop.f32.mrf.mxu1 }
 0x13d   : > { %v6253_v21 = vadd.f32 %v1819_v15, %v1817_v6  ;;  %v1818_v22 = vsel %vm1178_vm9, %v6174_v26, %v4544_v5  ;;  %v4551_v23 = vadd.f32 -1.0, %v5251_v14  ;;  %v5253_v19 = vpop.eup %5252  ;;  %5266 = vpow2.f32 %v1497_v27  ;;  %v783_v14 = vpop.f32.mrf.mxu0 }
 0x13e   : > { %v1820_v55 = vsel %vm1180_vm10, %v6177_v29, %v4546_v16  ;;  %v5255_v20 = vpop.eup %5254  ;;  %v4553_v34 = vadd.f32 -1.0, %v5253_v19  ;;  %v1331_v29 = vmin.f32 %v6259_v31, 0.0  ;;  %v6291_v16 = vadd.f32 %v888_v24, %v6135_v54  ;;  %v896_v27 = vpop.f32.mrf.mxu1 }
 0x13f   : > { %v6261_v57 = vadd.f32 %v1820_v55, %v1818_v22  ;;  %v1825_v32 = vsel %vm1185_vm11, %v6180_v30, %v4551_v23  ;;  %v5257_v26 = vpop.eup %5256  ;;  %v4552_v37 = vadd.f32 -1.0, %v5255_v20  ;;  %v6298_v55 = vadd.f32 %v890_v41, %v6127_v51  ;;  %v785_v35 = vpop.f32.mrf.mxu0 }
 0x140   : > { %v1827_v38 = vsel %vm1187_vm12, %v6187_v39, %v4553_v34  ;;  %v4554_v18 = vadd.f32 -1.0, %v5257_v26  ;;  %v1501_v30 = vmul.f32 1.442695, %v1331_v29  ;;  %v6279_v39 = vadd.f32 %v886_v58, %v6127_v51  ;;  %v5259_v2 = vpop.eup %5258 }
 0x141   : > { %v6268_v56 = vadd.f32 %v1827_v38, %v1825_v32  ;;  %v1826_v4 = vsel %vm1186_vm13, %v6190_v42, %v4552_v37  ;;  %v1337_v42 = vmin.f32 %v6274_v61, 0.0  ;;  %v5261_v6 = vpop.eup %5260  ;;  %v1338_v58 = vmin.f32 %v6282_v1, 0.0 }
 0x142   : > { %v1828_v45 = vsel %vm1188_vm14, %v6193_v44, %v4554_v18  ;;  %5268 = vpow2.f32 %v1501_v30  ;;  %v4559_v44 = vadd.f32 -1.0, %v5259_v2  ;;  %v1339_v53 = vmin.f32 %v6279_v39, 0.0  ;;  %v898_v30 = vpop.f32.mrf.mxu1  ;;  %v5159_v2 = vld [vmem:[#allocation5 + $0x38] sm:$0xff]  }
 0x143   : > { %v6276_v62 = vadd.f32 %v1828_v45, %v1826_v4  ;;  %v4561_v5 = vadd.f32 -1.0, %v5261_v6  ;;  %v1513_v7 = vmul.f32 1.442695, %v1337_v42  ;;  %v1515_v19 = vmul.f32 1.442695, %v1338_v58  ;;  %v5158_v45 = vld [vmem:[#allocation5 + $0x78] sm:$0xff]  }
 0x144   : > { %v1833_v10 = vsel %vm1193_vm15, %v6202_v11, %v4559_v44  ;;  %v1517_v15 = vmul.f32 1.442695, %v1339_v53  ;;  %v1340_v34 = vmin.f32 %v6291_v16, 0.0  ;;  %v1345_v26 = vmin.f32 %v6294_v17, 0.0  ;;  %4835 = vmatprep.subr.bf16.mxu0 %v5158_v45 }
 0x145   : > { %v1835_v23 = vsel %vm1195_vm0, %v6205_v13, %v4561_v5  ;;  %5270 = vpow2.f32 %v1513_v7  ;;  %v1347_v37 = vmin.f32 %v6298_v55, 0.0  ;;  %v6310_v41 = vadd.f32 %v779_v8, %v6131_v52  ;;  %4836 = vmatpush3.bf16.msra.mxu0 %v5159_v2 }
 0x146   : > { %v6300_v32 = vadd.f32 %v1835_v23, %v1833_v10  ;;  %5272 = vpow2.f32 %v1517_v15  ;;  %v1519_v18 = vmul.f32 1.442695, %v1340_v34  ;;  %v6313_v4 = vadd.f32 %v892_v3, %v6135_v54  ;;  %v787_v3 = vpop.f32.mrf.mxu0  ;;  %v900_v15 = vpop.f32.mrf.mxu1  ;;  %v5161_v23 = vld [vmem:[#allocation5 + $0xb8] sm:$0xff]  }
 0x147   : > { %5274 = vpow2.f32 %v1515_v19  ;;  %v1529_v6 = vmul.f32 1.442695, %v1345_v26  ;;  %v1533_v44 = vmul.f32 1.442695, %v1347_v37  ;;  %v6319_v53 = vadd.f32 %v6159_v9, %v6131_v52  ;;  %v5165_v37 = vld [vmem:[#allocation5 + $0xb0] sm:$0xff]  }
 0x148   : > { %v5263_v22 = vpop.eup %5262  ;;  %5276 = vpow2.f32 %v1519_v18  ;;  %v1346_v8 = vmin.f32 %v6310_v41, 0.0  ;;  %vm1201_vm3 = vcmp.gt.f32.partialorder %v6243_v59, 0.0  ;;  %v1348_v5 = vmin.f32 %v6313_v4, 0.0  ;;  %v902_v18 = vpop.f32.mrf.mxu1 }
 0x149   : > { %v5265_v20 = vpop.eup %5264  ;;  %v4560_v11 = vadd.f32 -1.0, %v5263_v22  ;;  %5278 = vpow2.f32 %v1529_v6  ;;  %v6329_v7 = vadd.f32 %v783_v14, %v6123_v50  ;;  %v6333_v10 = vadd.f32 %v896_v27, %v6127_v51  ;;  %v5160_v22 = vld [vmem:[#allocation5 + $0xf8] sm:$0xff]   ;;  %v789_v14 = vpop.f32.mrf.mxu0 }
 0x14a   : > { %v4562_v24 = vadd.f32 -1.0, %v5265_v20  ;;  %v5267_v29 = vpop.eup %5266  ;;  %5280 = vpow2.f32 %v1533_v44  ;;  %v1535_v20 = vmul.f32 1.442695, %v1348_v5  ;;  %vm1203_vm4 = vcmp.gt.f32.partialorder %v6259_v31, 0.0  ;;  %4911 = vmatprep.subr.bf16.mxu1 %v5160_v22 }
 0x14b   : > { %v1834_v13 = vsel %vm1194_vm1, %v6231_v60, %v4560_v11  ;;  %v4567_v42 = vadd.f32 -1.0, %v5267_v29  ;;  %v1353_v11 = vmin.f32 %v6329_v7, 0.0  ;;  %v6342_v34 = vsub.s32 4, %v6099_v43  ;;  %4912 = vmatpush3.bf16.msra.mxu1 %v5161_v23  ;;  %v793_v5 = vpop.f32.mrf.mxu0  ;;  %v906_v23 = vpop.f32.mrf.mxu1 }
 0x14c   : > { %v1836_v38 = vsel %vm1196_vm2, %v6237_v63, %v4562_v24  ;;  %v6323_v63 = vadd.f32 %v6162_v12, %v6135_v54  ;;  %v1531_v12 = vmul.f32 1.442695, %v1346_v8  ;;  %v6337_v24 = vadd.f32 %v785_v35, %v6131_v52 }
 0x14d   : > { %v6315_v60 = vadd.f32 %v1836_v38, %v1834_v13  ;;  %v1841_v58 = vsel %vm1201_vm3, %v6243_v59, %v4567_v42  ;;  %v1355_v59 = vmin.f32 %v6333_v10, 0.0  ;;  %8590 = vst [vmem:[#allocation16_spill] sm:$0xff] %v6342_v34  ;;  %v1545_v13 = vmul.f32 1.442695, %v1353_v11 }
 0x14e   : > { %5282 = vpow2.f32 %v1531_v12  ;;  %v6346_v26 = vsub.s32 6, %v6099_v43  ;;  %v1354_v2 = vmin.f32 %v6337_v24, 0.0  ;;  %v6357_v42 = vadd.f32 %v787_v3, %v6123_v50 }
 0x14f   : > { %v5269_v9 = vpop.eup %5268  ;;  %5284 = vpow2.f32 %v1535_v20  ;;  %v1549_v38 = vmul.f32 1.442695, %v1355_v59  ;;  %vm1209_vm5 = vcmp.gt.f32.partialorder %v6274_v61, 0.0  ;;  %v6361_v8 = vadd.f32 %v900_v15, %v6127_v51  ;;  %v795_v59 = vpop.f32.mrf.mxu0 }
 0x150   : > { %v4569_v19 = vadd.f32 -1.0, %v5269_v9  ;;  %8591 = vst [vmem:[#allocation17_spill] sm:$0xff] %v6346_v26  ;;  %5286 = vpow2.f32 %v1545_v13  ;;  %vm1211_vm6 = vcmp.gt.f32.partialorder %v6279_v39, 0.0  ;;  %vm1210_vm7 = vcmp.gt.f32.partialorder %v6282_v1, 0.0 }
 0x151   : > { %5288 = vpow2.f32 %v1549_v38  ;;  %vm1212_vm8 = vcmp.gt.f32.partialorder %v6291_v16, 0.0  ;;  %vm1217_vm9 = vcmp.gt.f32.partialorder %v6294_v17, 0.0  ;;  %v1361_v15 = vmin.f32 %v6357_v42, 0.0 }
 0x152   : > { %v1843_v27 = vsel %vm1203_vm4, %v6259_v31, %v4569_v19  ;;  %v5271_v45 = vpop.eup %5270  ;;  %v6354_v31 = vadd.f32 %v898_v30, %v6135_v54  ;;  %v1547_v30 = vmul.f32 1.442695, %v1354_v2  ;;  %vm1219_vm10 = vcmp.gt.f32.partialorder %v6298_v55, 0.0 }
 0x153   : > { %v6350_v29 = vadd.f32 %v1843_v27, %v1841_v58  ;;  %v5273_v6 = vpop.eup %5272  ;;  %v4575_v44 = vadd.f32 -1.0, %v5271_v45  ;;  %v1561_v38 = vmul.f32 1.442695, %v1361_v15  ;;  %v6382_v45 = vadd.f32 %v902_v18, %v6135_v54  ;;  %v5164_v15 = vld [vmem:[#allocation5 + $0xf0] sm:$0xff]  }
 0x154   : > { %v5275_v9 = vpop.eup %5274  ;;  %v4577_v58 = vadd.f32 -1.0, %v5273_v6  ;;  %v1356_v22 = vmin.f32 %v6354_v31, 0.0  ;;  %5290 = vpow2.f32 %v1547_v30  ;;  %vm1218_vm11 = vcmp.gt.f32.partialorder %v6310_v41, 0.0  ;;  %4913 = vmatprep.subr.bf16.mxu1 %v5164_v15 }
 0x155   : > { %v1849_v12 = vsel %vm1209_vm5, %v6274_v61, %v4575_v44  ;;  %v4576_v3 = vadd.f32 -1.0, %v5275_v9  ;;  %v1363_v61 = vmin.f32 %v6361_v8, 0.0  ;;  %v5277_v27 = vpop.eup %5276  ;;  %v6385_v9 = vadd.f32 %v793_v5, %v6123_v50  ;;  %v797_v5 = vpop.f32.mrf.mxu0  ;;  %4914 = vmatpush3.bf16.msra.mxu1 %v5165_v37 }
 0x156   : > { %v1851_v19 = vsel %vm1211_vm6, %v6279_v39, %v4577_v58  ;;  %v1551_v11 = vmul.f32 1.442695, %v1356_v22  ;;  %v6379_v39 = vadd.f32 %v789_v14, %v6131_v52  ;;  %v5279_v2 = vpop.eup %5278  ;;  %v4578_v6 = vadd.f32 -1.0, %v5277_v27  ;;  %v908_v58 = vpop.f32.mrf.mxu1  ;;  %v5162_v14 = vld [vmem:[#allocation5 + $0x70] sm:$0xff]  }
 0x157   : > { %v6371_v20 = vadd.f32 %v1851_v19, %v1849_v12  ;;  %v1850_v13 = vsel %vm1210_vm7, %v6282_v1, %v4576_v3  ;;  %v1565_v44 = vmul.f32 1.442695, %v1363_v61  ;;  %v5281_v30 = vpop.eup %5280  ;;  %v4583_v12 = vadd.f32 -1.0, %v5279_v2  ;;  %v5163_v3 = vld [vmem:[#allocation5 + $0x30] sm:$0xff]   ;;  %4837 = vmatprep.subr.bf16.mxu0 %v5162_v14 }
 0x158   : > { %5292 = vpow2.f32 %v1551_v11  ;;  %v1362_v1 = vmin.f32 %v6379_v39, 0.0  ;;  %v1852_v18 = vsel %vm1212_vm8, %v6291_v16, %v4578_v6  ;;  %v4585_v22 = vadd.f32 -1.0, %v5281_v30  ;;  %4838 = vmatpush3.bf16.msra.mxu0 %v5163_v3 }
 0x159   : > { %5294 = vpow2.f32 %v1561_v38  ;;  %v6393_v19 = vadd.f32 %v906_v23, %v6127_v51  ;;  %v6395_v61 = vadd.f32 %v1852_v18, %v1850_v13  ;;  %v1857_v27 = vsel %vm1217_vm9, %v6294_v17, %v4583_v12 }
 0x15a   : > { %5296 = vpow2.f32 %v1565_v44  ;;  %v1563_v38 = vmul.f32 1.442695, %v1362_v1  ;;  %v1364_v2 = vmin.f32 %v6382_v45, 0.0  ;;  %v1859_v23 = vsel %vm1219_vm10, %v6298_v55, %v4585_v22  ;;  %v910_v44 = vpop.f32.mrf.mxu1  ;;  %v799_v22 = vpop.f32.mrf.mxu0 }
 0x15b   : > { %v5283_v11 = vpop.eup %5282  ;;  %vm1220_vm12 = vcmp.gt.f32.partialorder %v6313_v4, 0.0  ;;  %v1369_v13 = vmin.f32 %v6385_v9, 0.0  ;;  %v6406_v30 = vadd.f32 %v1859_v23, %v1857_v27  ;;  %vm1225_vm13 = vcmp.gt.f32.partialorder %v6329_v7, 0.0 }
 0x15c   : > { %v5285_v16 = vpop.eup %5284  ;;  %v4584_v6 = vadd.f32 -1.0, %v5283_v11  ;;  %5298 = vpow2.f32 %v1563_v38  ;;  %v1567_v12 = vmul.f32 1.442695, %v1364_v2  ;;  %v1371_v18 = vmin.f32 %v6393_v19, 0.0  ;;  %v912_v2 = vpop.f32.mrf.mxu1 }
 0x15d   : > { %v4586_v17 = vadd.f32 -1.0, %v5285_v16  ;;  %v5287_v1 = vpop.eup %5286  ;;  %v1577_v55 = vmul.f32 1.442695, %v1369_v13  ;;  %v6417_v37 = vadd.f32 %v795_v59, %v6131_v52  ;;  %vm1227_vm14 = vcmp.gt.f32.partialorder %v6333_v10, 0.0 }
 0x15e   : > { %v1858_v14 = vsel %vm1218_vm11, %v6310_v41, %v4584_v6  ;;  %v5289_v11 = vpop.eup %5288  ;;  %v4591_v15 = vadd.f32 -1.0, %v5287_v1  ;;  %5300 = vpow2.f32 %v1567_v12  ;;  %v1581_v41 = vmul.f32 1.442695, %v1371_v18  ;;  %v803_v12 = vpop.f32.mrf.mxu0 }
 0x15f   : > { %v1860_v3 = vsel %vm1220_vm12, %v6313_v4, %v4586_v17  ;;  %v4593_v38 = vadd.f32 -1.0, %v5289_v11  ;;  %5302 = vpow2.f32 %v1577_v55  ;;  %v1370_v23 = vmin.f32 %v6417_v37, 0.0  ;;  %v916_v55 = vpop.f32.mrf.mxu1 }
 0x160   : > { %v6419_v27 = vadd.f32 %v1860_v3, %v1858_v14  ;;  %v1865_v16 = vsel %vm1225_vm13, %v6329_v7, %v4591_v15  ;;  %v6425_v6 = vadd.f32 %v908_v58, %v6135_v54  ;;  %5304 = vpow2.f32 %v1581_v41  ;;  %v5166_v3 = vld [vmem:[#allocation5 + $0x68] sm:$0xff]  }
 0x161   : > { %v5291_v4 = vpop.eup %5290  ;;  %v1867_v13 = vsel %vm1227_vm14, %v6333_v10, %v4593_v38  ;;  %v6429_v59 = vadd.f32 %v797_v5, %v6123_v50  ;;  %v6432_v17 = vadd.f32 %v910_v44, %v6127_v51  ;;  %v6436_v7 = vadd.f32 %v6219_v28, %v6131_v52  ;;  %4839 = vmatprep.subr.bf16.mxu0 %v5166_v3 }
 0x162   : > { %8592 = vst [vmem:[#allocation18_spill] sm:$0xff] %v6419_v27  ;;  %v6438_v1 = vadd.f32 %v1867_v13, %v1865_v16  ;;  %v4592_v14 = vadd.f32 -1.0, %v5291_v4  ;;  %v1579_v58 = vmul.f32 1.442695, %v1370_v23  ;;  %vm1226_vm15 = vcmp.gt.f32.partialorder %v6337_v24, 0.0  ;;  %v805_v4 = vpop.f32.mrf.mxu0  ;;  %v5167_v13 = vld [vmem:[#allocation5 + $0x28] sm:$0xff]  }
 0x163   : > { %vm1228_vm0 = vcmp.gt.f32.partialorder %v6354_v31, 0.0  ;;  %v1372_v10 = vmin.f32 %v6425_v6, 0.0  ;;  %v1377_v5 = vmin.f32 %v6429_v59, 0.0  ;;  %v1379_v28 = vmin.f32 %v6432_v17, 0.0  ;;  %4840 = vmatpush3.bf16.msra.mxu0 %v5167_v13 }
 0x164   : > { %8593 = vst [vmem:[#allocation19_spill] sm:$0xff] %v6438_v1  ;;  %v1866_v18 = vsel %vm1226_vm15, %v6337_v24, %v4592_v14  ;;  %5306 = vpow2.f32 %v1579_v58  ;;  %v6447_v11 = vadd.f32 %v799_v22, %v6131_v52  ;;  %v6450_v23 = vadd.f32 %v912_v2, %v6135_v54  ;;  %v918_v2 = vpop.f32.mrf.mxu1 }
 0x165   : > { %v5293_v44 = vpop.eup %5292  ;;  %v1583_v41 = vmul.f32 1.442695, %v1372_v10  ;;  %v1593_v16 = vmul.f32 1.442695, %v1377_v5  ;;  %vm1233_vm1 = vcmp.gt.f32.partialorder %v6357_v42, 0.0  ;;  %vm1235_vm2 = vcmp.gt.f32.partialorder %v6361_v8, 0.0 }
 0x166   : > { %v5295_v15 = vpop.eup %5294  ;;  %v4594_v38 = vadd.f32 -1.0, %v5293_v44  ;;  %v1597_v14 = vmul.f32 1.442695, %v1379_v28  ;;  %v1378_v58 = vmin.f32 %v6447_v11, 0.0  ;;  %v5168_v5 = vld [vmem:[#allocation5 + $0xe8] sm:$0xff]   ;;  %vm1234_vm3 = vcmp.gt.f32.partialorder %v6379_v39, 0.0 }
 0x167   : > { %v5297_v35 = vpop.eup %5296  ;;  %v4599_v24 = vadd.f32 -1.0, %v5295_v15  ;;  %5308 = vpow2.f32 %v1583_v41  ;;  %v5169_v15 = vld [vmem:[#allocation5 + $0xa8] sm:$0xff]   ;;  %4915 = vmatprep.subr.bf16.mxu1 %v5168_v5  ;;  %vm1236_vm4 = vcmp.gt.f32.partialorder %v6382_v45, 0.0  ;;  %vm1241_vm5 = vcmp.gt.f32.partialorder %v6385_v9, 0.0 }
 0x168   : > { %v1868_v22 = vsel %vm1228_vm0, %v6354_v31, %v4594_v38  ;;  %v4601_v10 = vadd.f32 -1.0, %v5297_v35  ;;  %5310 = vpow2.f32 %v1593_v16  ;;  %v1595_v28 = vmul.f32 1.442695, %v1378_v58  ;;  %v807_v35 = vpop.f32.mrf.mxu0  ;;  %4916 = vmatpush3.bf16.msra.mxu1 %v5169_v15 }
 0x169   : > { %v6458_v44 = vadd.f32 %v1868_v22, %v1866_v18  ;;  %v1873_v1 = vsel %vm1233_vm1, %v6357_v42, %v4599_v24  ;;  %v5299_v27 = vpop.eup %5298  ;;  %5312 = vpow2.f32 %v1597_v14  ;;  %v1380_v31 = vmin.f32 %v6450_v23, 0.0 }
 0x16a   : > { %v1875_v3 = vsel %vm1235_vm2, %v6361_v8, %v4601_v10  ;;  %v6464_v38 = vadd.f32 %v803_v12, %v6123_v50  ;;  %v4600_v18 = vadd.f32 -1.0, %v5299_v27  ;;  %5314 = vpow2.f32 %v1595_v28  ;;  %v920_v12 = vpop.f32.mrf.mxu1  ;;  %v809_v10 = vpop.f32.mrf.mxu0 }
 0x16b   : > { %v6466_v41 = vadd.f32 %v1875_v3, %v1873_v1  ;;  %v6469_v42 = vadd.f32 %v916_v55, %v6127_v51  ;;  %v5301_v16 = vpop.eup %5300  ;;  %v1599_v8 = vmul.f32 1.442695, %v1380_v31  ;;  %v6474_v24 = vadd.f32 %v805_v4, %v6131_v52 }
 0x16c   : > { %v1385_v13 = vmin.f32 %v6464_v38, 0.0  ;;  %v5303_v14 = vpop.eup %5302  ;;  %v1874_v1 = vsel %vm1234_vm3, %v6379_v39, %v4600_v18  ;;  %v4602_v27 = vadd.f32 -1.0, %v5301_v16  ;;  %v6483_v3 = vadd.f32 %v918_v2, %v6135_v54  ;;  %v922_v16 = vpop.f32.mrf.mxu1 }
 0x16d   : > { %8594 = vst [vmem:[#allocation20_spill] sm:$0xff] %v6466_v41  ;;  %v1387_v55 = vmin.f32 %v6469_v42, 0.0  ;;  %v4607_v58 = vadd.f32 -1.0, %v5303_v14  ;;  %5316 = vpow2.f32 %v1599_v8  ;;  %v5305_v5 = vpop.eup %5304  ;;  %v1386_v15 = vmin.f32 %v6474_v24, 0.0 }
 0x16e   : > { %v1609_v22 = vmul.f32 1.442695, %v1385_v13  ;;  %v1876_v28 = vsel %vm1236_vm4, %v6382_v45, %v4602_v27  ;;  %v4609_v18 = vadd.f32 -1.0, %v5305_v5  ;;  %vm1243_vm6 = vcmp.gt.f32.partialorder %v6393_v19, 0.0 }
 0x16f   : > { %v1613_v4 = vmul.f32 1.442695, %v1387_v55  ;;  %v6485_v39 = vadd.f32 %v1876_v28, %v1874_v1  ;;  %v1881_v31 = vsel %vm1241_vm5, %v6385_v9, %v4607_v58  ;;  %v1611_v8 = vmul.f32 1.442695, %v1386_v15  ;;  %v813_v1 = vpop.f32.mrf.mxu0  ;;  %v5170_v55 = vld [vmem:[#allocation5 + $0x60] sm:$0xff]  }
 0x170   : > { %5318 = vpow2.f32 %v1609_v22  ;;  %v1388_v13 = vmin.f32 %v6483_v3, 0.0  ;;  %v1883_v14 = vsel %vm1243_vm6, %v6393_v19, %v4609_v18  ;;  %v6492_v27 = vadd.f32 %v807_v35, %v6123_v50  ;;  %v5171_v28 = vld [vmem:[#allocation5 + $0x20] sm:$0xff]   ;;  %4841 = vmatprep.subr.bf16.mxu0 %v5170_v55 }
 0x171   : > { %8595 = vst [vmem:[#allocation21_spill] sm:$0xff] %v6485_v39  ;;  %5320 = vpow2.f32 %v1613_v4  ;;  %v5307_v45 = vpop.eup %5306  ;;  %v6495_v2 = vadd.f32 %v920_v12, %v6127_v51  ;;  %v6498_v9 = vadd.f32 %v809_v10, %v6131_v52  ;;  %v6500_v58 = vadd.f32 %v1883_v14, %v1881_v31  ;;  %v926_v12 = vpop.f32.mrf.mxu1  ;;  %v5172_v10 = vld [vmem:[#allocation5 + $0xe0] sm:$0xff]   ;;  %4842 = vmatpush3.bf16.msra.mxu0 %v5171_v28 }
 0x172   : > { %v4608_v22 = vadd.f32 -1.0, %v5307_v45  ;;  %5322 = vpow2.f32 %v1611_v8  ;;  %v1615_v5 = vmul.f32 1.442695, %v1388_v13  ;;  %vm1242_vm7 = vcmp.gt.f32.partialorder %v6417_v37, 0.0  ;;  %v5173_v18 = vld [vmem:[#allocation5 + $0xa0] sm:$0xff]   ;;  %v815_v39 = vpop.f32.mrf.mxu0  ;;  %4917 = vmatprep.subr.bf16.mxu1 %v5172_v10 }
 0x173   : > { %8596 = vst [vmem:[#allocation22_spill] sm:$0xff] %v6500_v58  ;;  %vm1244_vm8 = vcmp.gt.f32.partialorder %v6425_v6, 0.0  ;;  %v1393_v19 = vmin.f32 %v6492_v27, 0.0  ;;  %v1395_v35 = vmin.f32 %v6495_v2, 0.0  ;;  %vm1249_vm9 = vcmp.gt.f32.partialorder %v6429_v59, 0.0  ;;  %4918 = vmatpush3.bf16.msra.mxu1 %v5173_v18 }
 0x174   : > { %v5309_v4 = vpop.eup %5308  ;;  %v1882_v15 = vsel %vm1242_vm7, %v6417_v37, %v4608_v22  ;;  %5324 = vpow2.f32 %v1615_v5  ;;  %v1394_v31 = vmin.f32 %v6498_v9, 0.0  ;;  %v6510_v58 = vadd.f32 %v922_v16, %v6135_v54  ;;  %v817_v18 = vpop.f32.mrf.mxu0 }
 0x175   : > { %v5311_v8 = vpop.eup %5310  ;;  %v4610_v13 = vadd.f32 -1.0, %v5309_v4  ;;  %v1625_v45 = vmul.f32 1.442695, %v1393_v19  ;;  %v1629_v14 = vmul.f32 1.442695, %v1395_v35  ;;  %vm1251_vm10 = vcmp.gt.f32.partialorder %v6432_v17, 0.0  ;;  %v928_v35 = vpop.f32.mrf.mxu1 }
 0x176   : > { %v5313_v55 = vpop.eup %5312  ;;  %v4615_v41 = vadd.f32 -1.0, %v5311_v8  ;;  %v1627_v37 = vmul.f32 1.442695, %v1394_v31  ;;  %v6514_v22 = vadd.f32 %v813_v1, %v6123_v50  ;;  %v6520_v16 = vadd.f32 %v926_v12, %v6127_v51 }
 0x177   : > { %v5315_v5 = vpop.eup %5314  ;;  %v1884_v28 = vsel %vm1244_vm8, %v6425_v6, %v4610_v13  ;;  %v4617_v19 = vadd.f32 -1.0, %v5313_v55  ;;  %5326 = vpow2.f32 %v1625_v45  ;;  %vm1250_vm11 = vcmp.gt.f32.partialorder %v6447_v11, 0.0 }
 0x178   : > { %v6522_v10 = vadd.f32 %v1884_v28, %v1882_v15  ;;  %v1889_v4 = vsel %vm1249_vm9, %v6429_v59, %v4615_v41  ;;  %v4616_v1 = vadd.f32 -1.0, %v5315_v5  ;;  %5328 = vpow2.f32 %v1629_v14  ;;  %v930_v14 = vpop.f32.mrf.mxu1 }
 0x179   : > { %v1891_v31 = vsel %vm1251_vm10, %v6432_v17, %v4617_v19  ;;  %5330 = vpow2.f32 %v1627_v37  ;;  %v1396_v6 = vmin.f32 %v6510_v58, 0.0  ;;  %vm1252_vm12 = vcmp.gt.f32.partialorder %v6450_v23, 0.0 }
 0x17a   : > { %v5317_v8 = vpop.eup %5316  ;;  %v6530_v12 = vadd.f32 %v1891_v31, %v1889_v4  ;;  %v1890_v15 = vsel %vm1250_vm11, %v6447_v11, %v4616_v1  ;;  %v1401_v13 = vmin.f32 %v6514_v22, 0.0  ;;  %v1403_v45 = vmin.f32 %v6520_v16, 0.0 }
 0x17b   : > { %v4618_v59 = vadd.f32 -1.0, %v5317_v8  ;;  %v1631_v41 = vmul.f32 1.442695, %v1396_v6  ;;  %v6537_v17 = vadd.f32 %v815_v39, %v6131_v52  ;;  %vm1257_vm13 = vcmp.gt.f32.partialorder %v6464_v38, 0.0  ;;  %v5174_v8 = vld [vmem:[#allocation5 + $0x58] sm:$0xff]  }
 0x17c   : > { %8597 = vst [vmem:[#allocation23_spill] sm:$0xff] %v6530_v12  ;;  %v1641_v37 = vmul.f32 1.442695, %v1401_v13  ;;  %v6541_v5 = vadd.f32 %v928_v35, %v6135_v54  ;;  %v6544_v11 = vadd.f32 %v817_v18, %v6123_v50  ;;  %v1645_v1 = vmul.f32 1.442695, %v1403_v45  ;;  %4843 = vmatprep.subr.bf16.mxu0 %v5174_v8 }
 0x17d   : > { %v5319_v55 = vpop.eup %5318  ;;  %v1892_v19 = vsel %vm1252_vm12, %v6450_v23, %v4618_v59  ;;  %5332 = vpow2.f32 %v1631_v41  ;;  %v6550_v6 = vadd.f32 %v930_v14, %v6127_v51  ;;  %vm1259_vm14 = vcmp.gt.f32.partialorder %v6469_v42, 0.0  ;;  %v5175_v23 = vld [vmem:[#allocation5 + $0x18] sm:$0xff]   ;;  %v819_v41 = vpop.f32.mrf.mxu0 }
 0x17e   : > { %v5321_v28 = vpop.eup %5320  ;;  %v4623_v4 = vadd.f32 -1.0, %v5319_v55  ;;  %v6547_v31 = vadd.f32 %v1892_v19, %v1890_v15  ;;  %5334 = vpow2.f32 %v1641_v37  ;;  %v1402_v50 = vmin.f32 %v6537_v17, 0.0  ;;  %v932_v51 = vpop.f32.mrf.mxu1  ;;  %4844 = vmatpush3.bf16.msra.mxu0 %v5175_v23  ;;  %v5176_v37 = vld [vmem:[#allocation5 + $0xd8] sm:$0xff]  }
 0x17f   : > { %v4625_v39 = vadd.f32 -1.0, %v5321_v28  ;;  %v5323_v13 = vpop.eup %5322  ;;  %5336 = vpow2.f32 %v1645_v1  ;;  %vm1258_vm15 = vcmp.gt.f32.partialorder %v6474_v24, 0.0  ;;  %v1404_v59 = vmin.f32 %v6541_v5, 0.0  ;;  %v5177_v1 = vld [vmem:[#allocation5 + $0x98] sm:$0xff]   ;;  %4919 = vmatprep.subr.bf16.mxu1 %v5176_v37 }
 0x180   : > { %8598 = vst [vmem:[#allocation24_spill] sm:$0xff] %v6547_v31  ;;  %v1897_v35 = vsel %vm1257_vm13, %v6464_v38, %v4623_v4  ;;  %v4624_v15 = vadd.f32 -1.0, %v5323_v13  ;;  %vm1260_vm0 = vcmp.gt.f32.partialorder %v6483_v3, 0.0  ;;  %v1643_v38 = vmul.f32 1.442695, %v1402_v50  ;;  %4920 = vmatpush3.bf16.msra.mxu1 %v5177_v1 }
 0x181   : > { %v1899_v18 = vsel %vm1259_vm14, %v6469_v42, %v4625_v39  ;;  %v5325_v45 = vpop.eup %5324  ;;  %v1409_v55 = vmin.f32 %v6544_v11, 0.0  ;;  %v1647_v19 = vmul.f32 1.442695, %v1404_v59  ;;  %v1411_v4 = vmin.f32 %v6550_v6, 0.0 }
 0x182   : > { %v6558_v14 = vadd.f32 %v1899_v18, %v1897_v35  ;;  %v1898_v42 = vsel %vm1258_vm15, %v6474_v24, %v4624_v15  ;;  %v4626_v28 = vadd.f32 -1.0, %v5325_v45  ;;  %5338 = vpow2.f32 %v1643_v38  ;;  %v969_v18 = vpop.f32.mrf.mxu0 }
 0x183   : > { %v1657_v39 = vmul.f32 1.442695, %v1409_v55  ;;  %v6565_v8 = vadd.f32 %v819_v41, %v6131_v52  ;;  %v6568_v13 = vadd.f32 %v932_v51, %v6135_v54  ;;  %v6572_v50 = vadd.f32 %v6233_v36, %v6135_v54 }
 0x184   : > { %8599 = vst [vmem:[#allocation25_spill] sm:$0xff] %v6558_v14  ;;  %v5327_v35 = vpop.eup %5326  ;;  %v1900_v24 = vsel %vm1260_vm0, %v6483_v3, %v4626_v28  ;;  %5340 = vpow2.f32 %v1647_v19  ;;  %v1661_v23 = vmul.f32 1.442695, %v1411_v4  ;;  %v1330_v52 = vmin.f32 %v6436_v7, 0.0  ;;  %v6587_v28 = vpop.f32.mrf.mxu1 }
 0x185   : > { %v5329_v15 = vpop.eup %5328  ;;  %v6578_v59 = vadd.f32 %v1900_v24, %v1898_v42  ;;  %v4631_v41 = vadd.f32 -1.0, %v5327_v35  ;;  %5342 = vpow2.f32 %v1657_v39  ;;  %vm1265_vm1 = vcmp.gt.f32.partialorder %v6492_v27, 0.0  ;;  %v971_v4 = vpop.f32.mrf.mxu0 }
 0x186   : > { %v5331_v51 = vpop.eup %5330  ;;  %v4633_v54 = vadd.f32 -1.0, %v5329_v15  ;;  %5344 = vpow2.f32 %v1661_v23  ;;  %v1410_v36 = vmin.f32 %v6565_v8, 0.0  ;;  %vm1267_vm2 = vcmp.gt.f32.partialorder %v6495_v2, 0.0 }
 0x187   : > { %8600 = vst [vmem:[#allocation26_spill] sm:$0xff] %v6578_v59  ;;  %v1905_v3 = vsel %vm1265_vm1, %v6492_v27, %v4631_v41  ;;  %v4632_v45 = vadd.f32 -1.0, %v5331_v51  ;;  %v1412_v38 = vmin.f32 %v6568_v13, 0.0  ;;  %v1332_v55 = vmin.f32 %v6572_v50, 0.0  ;;  %v5179_v59 = vld [vmem:[#allocation5 + $0x10] sm:$0xff]  }
 0x188   : > { %v1907_v37 = vsel %vm1267_vm2, %v6495_v2, %v4633_v54  ;;  %v1659_v42 = vmul.f32 1.442695, %v1410_v36  ;;  %v6590_v19 = vsub.s32 5, %v6099_v43  ;;  %v6596_v27 = vrot.slane %v6107_v46, %v6342_v34 }
 0x189   : > { %v6592_v1 = vadd.f32 %v1907_v37, %v1905_v3  ;;  %v1663_v39 = vmul.f32 1.442695, %v1412_v38  ;;  %v6599_v35 = vsub.s32 7, %v6099_v43  ;;  %v8604_v2 = vmin.f32 %v6319_v53, 0.0  ;;  %v5178_v38 = vld [vmem:[#allocation5 + $0x50] sm:$0xff]  }
 0x18a   : > { %8601 = vst [vmem:[#allocation27_spill] sm:$0xff] %v6590_v19  ;;  %v5333_v24 = vpop.eup %5332  ;;  %v8605_v15 = vmin.f32 %v6323_v63, 0.0  ;;  %vm1266_vm3 = vcmp.gt.f32.partialorder %v6498_v9, 0.0  ;;  %5346 = vpow2.f32 %v1659_v42  ;;  %v1499_v54 = vmul.f32 1.442695, %v1330_v52  ;;  %4845 = vmatprep.subr.bf16.mxu0 %v5178_v38 }
 0x18b   : > { %8602 = vst [vmem:[#allocation28_spill] sm:$0xff] %v6592_v1  ;;  %8603 = vst [vmem:[#allocation29_spill] sm:$0xff] %v6599_v35  ;;  %v1435_v23 = vmul.f32 1.442695, %v8604_v2  ;;  %v5335_v51 = vpop.eup %5334  ;;  %v1906_v36 = vsel %vm1266_vm3, %v6498_v9, %v4632_v45  ;;  %v4634_v3 = vadd.f32 -1.0, %v5333_v24  ;;  %5348 = vpow2.f32 %v1663_v39  ;;  %v973_v1 = vpop.f32.mrf.mxu0  ;;  %v5180_v45 = vld [vmem:[#allocation5 + $0xd0] sm:$0xff]   ;;  %4846 = vmatpush3.bf16.msra.mxu0 %v5179_v59 }
 0x18c   : > { %v1439_v41 = vmul.f32 1.442695, %v8605_v15  ;;  %v5337_v37 = vpop.eup %5336  ;;  %v1503_v43 = vmul.f32 1.442695, %v1332_v55  ;;  %vm1268_vm4 = vcmp.gt.f32.partialorder %v6510_v58, 0.0  ;;  %v4639_v34 = vadd.f32 -1.0, %v5335_v51  ;;  %v1084_v15 = vpop.f32.mrf.mxu1  ;;  %4921 = vmatprep.subr.bf16.mxu1 %v5180_v45 }
 0x18d   : > { %v6610_v2 = vrot.slane %v6107_v46, %v6590_v19  ;;  %v1908_v42 = vsel %vm1268_vm4, %v6510_v58, %v4634_v3  ;;  %vm1273_vm5 = vcmp.gt.f32.partialorder %v6514_v22, 0.0  ;;  %v4641_v9 = vadd.f32 -1.0, %v5337_v37  ;;  %v5181_v24 = vld [vmem:[#allocation5 + $0x90] sm:$0xff]   ;;  %v5184_v45 = vld [vmem:[#allocation5 + $0xc8] sm:$0xff]  }
 0x18e   : > { %v6615_v52 = vadd.f32 %v969_v18, %v6596_v27  ;;  %5350 = vpow2.f32 %v1435_v23  ;;  %v6617_v55 = vadd.f32 %v1908_v42, %v1906_v36  ;;  %v1913_v39 = vsel %vm1273_vm5, %v6514_v22, %v4639_v34  ;;  %v1086_v34 = vpop.f32.mrf.mxu1  ;;  %v975_v22 = vpop.f32.mrf.mxu0  ;;  %4922 = vmatpush3.bf16.msra.mxu1 %v5181_v24 }
 0x18f   : > { %vm1275_vm6 = vcmp.gt.f32.partialorder %v6520_v16, 0.0  ;;  %5352 = vpow2.f32 %v1439_v41  ;;  %v6624_v51 = vrot.slane %v6107_v46, %v6346_v26  ;;  %v5339_v18 = vpop.eup %5338  ;;  %v6629_v23 = vadd.f32 %v971_v4, %v6610_v2  ;;  %4923 = vmatprep.subr.bf16.mxu1 %v5184_v45 }
 0x190   : > { %8606 = vst [vmem:[#allocation30_spill] sm:$0xff] %v6617_v55  ;;  %v1915_v58 = vsel %vm1275_vm6, %v6520_v16, %v4641_v9  ;;  %5354 = vpow2.f32 %v1499_v54  ;;  %v4640_v41 = vadd.f32 -1.0, %v5339_v18  ;;  %v1293_v16 = vmin.f32 %v6615_v52, 0.0  ;;  %v979_v18 = vpop.f32.mrf.mxu0 }
 0x191   : > { %v6626_v3 = vadd.f32 %v1915_v58, %v1913_v39  ;;  %v5341_v59 = vpop.eup %5340  ;;  %5356 = vpow2.f32 %v1503_v43  ;;  %v6634_v36 = vrot.slane %v6107_v46, %v6599_v35  ;;  %vm1274_vm7 = vcmp.gt.f32.partialorder %v6537_v17, 0.0  ;;  %v5182_v46 = vld [vmem:[#allocation5 + $0x48] sm:$0xff]   ;;  %v1088_v58 = vpop.f32.mrf.mxu1 }
 0x192   : > { %v5343_v38 = vpop.eup %5342  ;;  %vm1276_vm8 = vcmp.gt.f32.partialorder %v6541_v5, 0.0  ;;  %v4642_v54 = vadd.f32 -1.0, %v5341_v59  ;;  %v6639_v4 = vadd.f32 %v973_v1, %v6596_v27  ;;  %v1914_v42 = vsel %vm1274_vm7, %v6537_v17, %v4640_v41  ;;  %v5183_v59 = vld [vmem:[#allocation5 + $0x8] sm:$0xff]   ;;  %4847 = vmatprep.subr.bf16.mxu0 %v5182_v46 }
 0x193   : > { %8607 = vst [vmem:[#allocation31_spill] sm:$0xff] %v6626_v3  ;;  %v5345_v37 = vpop.eup %5344  ;;  %vm1281_vm9 = vcmp.gt.f32.partialorder %v6544_v11, 0.0  ;;  %v4647_v43 = vadd.f32 -1.0, %v5343_v38  ;;  %v6645_v9 = vadd.f32 %v6587_v28, %v6624_v51  ;;  %vm1283_vm10 = vcmp.gt.f32.partialorder %v6550_v6, 0.0  ;;  %v5185_v17 = vld [vmem:[#allocation5 + $0x88] sm:$0xff]   ;;  %4848 = vmatpush3.bf16.msra.mxu0 %v5183_v59  ;;  %v5187_v59 = vld [vmem:[#allocation5] sm:$0xff]  }
 0x194   : > { %v1916_v39 = vsel %vm1276_vm8, %v6541_v5, %v4642_v54  ;;  %v4649_v24 = vadd.f32 -1.0, %v5345_v37  ;;  %v1294_v1 = vmin.f32 %v6629_v23, 0.0  ;;  %v1425_v19 = vmul.f32 1.442695, %v1293_v16  ;;  %4924 = vmatpush3.bf16.msra.mxu1 %v5185_v17  ;;  %v5188_v16 = vld [vmem:[#allocation5 + $0xc0] sm:$0xff]  }
 0x195   : > { %v6650_v41 = vadd.f32 %v1916_v39, %v1914_v42  ;;  %v1921_v38 = vsel %vm1281_vm9, %v6544_v11, %v4647_v43  ;;  %v6654_v28 = vadd.f32 %v1084_v15, %v6634_v36  ;;  %v1301_v54 = vmin.f32 %v6639_v4, 0.0  ;;  %v5186_v11 = vld [vmem:[#allocation5 + $0x40] sm:$0xff]   ;;  %4925 = vmatprep.subr.bf16.mxu1 %v5188_v16 }
 0x196   : > { %v1923_v5 = vsel %vm1283_vm10, %v6550_v6, %v4649_v24  ;;  %v1295_v42 = vmin.f32 %v6645_v9, 0.0  ;;  %v6662_v39 = vadd.f32 %v975_v22, %v6610_v2  ;;  %v1427_v46 = vmul.f32 1.442695, %v1294_v1  ;;  %v1092_v6 = vpop.f32.mrf.mxu1  ;;  %v981_v24 = vpop.f32.mrf.mxu0  ;;  %v5189_v17 = vld [vmem:[#allocation5 + $0x80] sm:$0xff]   ;;  %4849 = vmatprep.subr.bf16.mxu0 %v5186_v11 }
 0x197   : > { %8608 = vst [vmem:[#allocation32_spill] sm:$0xff] %v6650_v41  ;;  %v5347_v37 = vpop.eup %5346  ;;  %v6658_v3 = vadd.f32 %v1923_v5, %v1921_v38  ;;  %v6665_v45 = vadd.f32 %v1086_v34, %v6624_v51  ;;  %vm1282_vm11 = vcmp.gt.f32.partialorder %v6565_v8, 0.0  ;;  %5358 = vpow2.f32 %v1425_v19  ;;  %4850 = vmatpush3.bf16.msra.mxu0 %v5187_v59 }
 0x198   : > { %v5349_v15 = vpop.eup %5348  ;;  %v4648_v43 = vadd.f32 -1.0, %v5347_v37  ;;  %v1296_v5 = vmin.f32 %v6654_v28, 0.0  ;;  %vm1284_vm12 = vcmp.gt.f32.partialorder %v6568_v13, 0.0  ;;  %v1441_v1 = vmul.f32 1.442695, %v1301_v54  ;;  %4926 = vmatpush3.bf16.msra.mxu1 %v5189_v17  ;;  %v1094_v11 = vpop.f32.mrf.mxu1 }
 0x199   : > { %8609 = vst [vmem:[#allocation33_spill] sm:$0xff] %v6658_v3  ;;  %v4650_v38 = vadd.f32 -1.0, %v5349_v15  ;;  %v1429_v3 = vmul.f32 1.442695, %v1295_v42  ;;  %v1302_v41 = vmin.f32 %v6662_v39, 0.0  ;;  %v6674_v15 = vadd.f32 %v979_v18, %v6596_v27  ;;  %v983_v16 = vpop.f32.mrf.mxu0 }
 0x19a   : > { %v1922_v22 = vsel %vm1282_vm11, %v6565_v8, %v4648_v43  ;;  %5360 = vpow2.f32 %v1427_v46  ;;  %v1303_v8 = vmin.f32 %v6665_v45, 0.0  ;;  %v1431_v43 = vmul.f32 1.442695, %v1296_v5  ;;  %v1096_v5 = vpop.f32.mrf.mxu1 }
 0x19b   : > { %v5351_v34 = vpop.eup %5350  ;;  %v1924_v37 = vsel %vm1284_vm12, %v6568_v13, %v4650_v38  ;;  %v6680_v59 = vadd.f32 %v1088_v58, %v6634_v36  ;;  %5362 = vpow2.f32 %v1441_v1  ;;  %v6683_v42 = vadd.f32 %v1092_v6, %v6624_v51  ;;  %v4655_v58 = vld [vmem:[%s8520_s5 + $0x1] ss:$8 sm:$0xf] }
 0x19c   : > { %v5353_v19 = vpop.eup %5352  ;;  %v6676_v55 = vadd.f32 %v1924_v37, %v1922_v22  ;;  %5364 = vpow2.f32 %v1429_v3  ;;  %v1443_v18 = vmul.f32 1.442695, %v1302_v41  ;;  %v1309_v17 = vmin.f32 %v6674_v15, 0.0  ;;  %v985_v37 = vpop.f32.mrf.mxu0 }
 0x19d   : > { %v5355_v54 = vpop.eup %5354  ;;  %v6687_v46 = vadd.f32 %v981_v24, %v6610_v2  ;;  %v1445_v38 = vmul.f32 1.442695, %v1303_v8  ;;  %v6690_v22 = vadd.f32 %v983_v16, %v6596_v27  ;;  %v4536_v1 = vadd.f32 -1.0, %v5351_v34 }
 0x19e   : > { %8610 = vst [vmem:[#allocation34_spill] sm:$0xff] %v6676_v55  ;;  %v5357_v13 = vpop.eup %5356  ;;  %v4538_v6 = vadd.f32 -1.0, %v5353_v19  ;;  %5366 = vpow2.f32 %v1431_v43  ;;  %v1304_v3 = vmin.f32 %v6680_v59, 0.0  ;;  %v6697_v41 = vrot.slane %v4655_v58, %v6116_v48  ;;  %v1098_v19 = vpop.f32.mrf.mxu1 }
 0x19f   : > { %v4568_v24 = vadd.f32 -1.0, %v5355_v54  ;;  %v1311_v8 = vmin.f32 %v6683_v42, 0.0  ;;  %v4570_v55 = vadd.f32 -1.0, %v5357_v13  ;;  %5368 = vpow2.f32 %v1443_v18  ;;  %v989_v43 = vpop.f32.mrf.mxu0 }
 0x1a0   : > { %8611 = vst [vmem:[#allocation35_spill] sm:$0xff] %v6697_v41  ;;  %v1457_v16 = vmul.f32 1.442695, %v1309_v17  ;;  %v1310_v35 = vmin.f32 %v6687_v46, 0.0  ;;  %vm1170_vm13 = vcmp.gt.f32.partialorder %v6319_v53, 0.0  ;;  %vm1172_vm14 = vcmp.gt.f32.partialorder %v6323_v63, 0.0 }
 0x1a1   : > { %5370 = vpow2.f32 %v1445_v38  ;;  %v1317_v34 = vmin.f32 %v6690_v22, 0.0  ;;  %v1810_v48 = vsel %vm1170_vm13, %v6319_v53, %v4536_v1  ;;  %v1812_v54 = vsel %vm1172_vm14, %v6323_v63, %v4538_v6 }
 0x1a2   : > { %v1447_v41 = vmul.f32 1.442695, %v1304_v3  ;;  %v6707_v13 = vadd.f32 %v1094_v11, %v6634_v36  ;;  %vm1202_vm15 = vcmp.gt.f32.partialorder %v6436_v7, 0.0  ;;  %vm1204_vm0 = vcmp.gt.f32.partialorder %v6572_v50, 0.0  ;;  %v1102_v3 = vpop.f32.mrf.mxu1 }
 0x1a3   : > { %v1461_v17 = vmul.f32 1.442695, %v1311_v8  ;;  %v6712_v38 = vadd.f32 %v1096_v5, %v6624_v51  ;;  %v1842_v26 = vsel %vm1202_vm15, %v6436_v7, %v4568_v24  ;;  %v1844_v14 = vsel %vm1204_vm0, %v6572_v50, %v4570_v55  ;;  %v991_v8 = vpop.f32.mrf.mxu0 }
 0x1a4   : > { %v5359_v18 = vpop.eup %5358  ;;  %5372 = vpow2.f32 %v1457_v16  ;;  %v1459_v53 = vmul.f32 1.442695, %v1310_v35  ;;  %v6717_v63 = vrot.slane %v4655_v58, %v6110_v47  ;;  %v6720_v11 = vrot.slane %v4655_v58, %v6113_v0 }
 0x1a5   : > { %v1473_v1 = vmul.f32 1.442695, %v1317_v34  ;;  %v6723_v6 = vadd.f32 %v985_v37, %v6610_v2  ;;  %v6726_v31 = vrot.slane %v4655_v58, %v6119_v49  ;;  %v4531_v7 = vadd.f32 -1.0, %v5359_v18 }
 0x1a6   : > { %8612 = vst [vmem:[#allocation36_spill] sm:$0xff] %v6717_v63  ;;  %8613 = vst [vmem:[#allocation37_spill] sm:$0xff] %v6720_v11  ;;  %5374 = vpow2.f32 %v1447_v41  ;;  %v1312_v50 = vmin.f32 %v6707_v13, 0.0  ;;  %v6729_v35 = vadd.f32 %v1812_v54, %v1810_v48  ;;  %v6731_v55 = vadd.f32 %v1844_v14, %v1842_v26  ;;  %v1104_v26 = vpop.f32.mrf.mxu1  ;;  %v993_v14 = vpop.f32.mrf.mxu0 }
 0x1a7   : > { %v5361_v5 = vpop.eup %5360  ;;  %8614 = vst [vmem:[#allocation38_spill] sm:$0xff] %v6726_v31  ;;  %5376 = vpow2.f32 %v1461_v17  ;;  %v1319_v24 = vmin.f32 %v6712_v38, 0.0  ;;  %vm1165_vm1 = vcmp.gt.f32.partialorder %v6615_v52, 0.0  ;;  %vm1167_vm2 = vcmp.gt.f32.partialorder %v6645_v9, 0.0 }
 0x1a8   : > { %v5363_v16 = vpop.eup %5362  ;;  %vm1166_vm3 = vcmp.gt.f32.partialorder %v6629_v23, 0.0  ;;  %5378 = vpow2.f32 %v1459_v53  ;;  %v4532_v58 = vadd.f32 -1.0, %v5361_v5  ;;  %v1318_v41 = vmin.f32 %v6723_v6, 0.0  ;;  %v995_v47 = vpop.f32.mrf.mxu0 }
 0x1a9   : > { %v5365_v37 = vpop.eup %5364  ;;  %5380 = vpow2.f32 %v1473_v1  ;;  %v6739_v48 = vadd.f32 %v1098_v19, %v6634_v36  ;;  %v1805_v34 = vsel %vm1165_vm1, %v6615_v52, %v4531_v7  ;;  %vm1168_vm4 = vcmp.gt.f32.partialorder %v6654_v28, 0.0 }
 0x1aa   : > { %v1463_v54 = vmul.f32 1.442695, %v1312_v50  ;;  %v6744_v18 = vadd.f32 %v989_v43, %v6596_v27  ;;  %vm1173_vm5 = vcmp.gt.f32.partialorder %v6639_v4, 0.0  ;;  %v4539_v53 = vadd.f32 -1.0, %v5363_v16 }
 0x1ab   : > { %v5367_v17 = vpop.eup %5366  ;;  %v1477_v1 = vmul.f32 1.442695, %v1319_v24  ;;  %v6748_v5 = vadd.f32 %v991_v8, %v6610_v2  ;;  %v4533_v19 = vadd.f32 -1.0, %v5365_v37  ;;  %vm1175_vm6 = vcmp.gt.f32.partialorder %v6665_v45, 0.0  ;;  %v1106_v8 = vpop.f32.mrf.mxu1 }
 0x1ac   : > { %vm1174_vm7 = vcmp.gt.f32.partialorder %v6662_v39, 0.0  ;;  %v6753_v52 = vadd.f32 %v993_v14, %v6596_v27  ;;  %v5369_v7 = vpop.eup %5368  ;;  %v1961_v43 = vadd.f32 %v6214_v25, %v1805_v34  ;;  %v1806_v50 = vsel %vm1166_vm3, %v6629_v23, %v4532_v58 }
 0x1ad   : > { %v1475_v16 = vmul.f32 1.442695, %v1318_v41  ;;  %v1320_v24 = vmin.f32 %v6739_v48, 0.0  ;;  %v4534_v11 = vadd.f32 -1.0, %v5367_v17  ;;  %5382 = vpow2.f32 %v1463_v54 }
 0x1ae   : > { %v5371_v37 = vpop.eup %5370  ;;  %v1325_v63 = vmin.f32 %v6744_v18, 0.0  ;;  %v6762_v14 = vadd.f32 %v1102_v3, %v6624_v51  ;;  %v1813_v25 = vsel %vm1173_vm5, %v6639_v4, %v4539_v53  ;;  %5384 = vpow2.f32 %v1477_v1  ;;  %v1108_v53 = vpop.f32.mrf.mxu1 }
 0x1af   : > { %v1326_v23 = vmin.f32 %v6748_v5, 0.0  ;;  %v6769_v58 = vadd.f32 %v1104_v26, %v6634_v36  ;;  %v1807_v41 = vsel %vm1167_vm2, %v6645_v9, %v4533_v19  ;;  %v4540_v34 = vadd.f32 -1.0, %v5369_v7  ;;  %v999_v1 = vpop.f32.mrf.mxu0 }
 0x1b0   : > { %vm1181_vm8 = vcmp.gt.f32.partialorder %v6674_v15, 0.0  ;;  %v1333_v3 = vmin.f32 %v6753_v52, 0.0  ;;  %v1962_v17 = vadd.f32 %v6226_v33, %v1806_v50  ;;  %v4541_v31 = vadd.f32 -1.0, %v5371_v37 }
 0x1b1   : > { %v5373_v54 = vpop.eup %5372  ;;  %5386 = vpow2.f32 %v1475_v16  ;;  %v1479_v4 = vmul.f32 1.442695, %v1320_v24  ;;  %v1963_v26 = vadd.f32 %v6239_v40, %v1813_v25  ;;  %vm1176_vm9 = vcmp.gt.f32.partialorder %v6680_v59, 0.0 }
 0x1b2   : > { %v1489_v49 = vmul.f32 1.442695, %v1325_v63  ;;  %v1327_v9 = vmin.f32 %v6762_v14, 0.0  ;;  %v6781_v19 = vadd.f32 %v1106_v8, %v6624_v51  ;;  %v1993_v0 = vadd.f32 %v1961_v43, %v1807_v41 }
 0x1b3   : > { %v5375_v7 = vpop.eup %5374  ;;  %v1808_v33 = vsel %vm1168_vm4, %v6654_v28, %v4534_v11  ;;  %vm1182_vm10 = vcmp.gt.f32.partialorder %v6687_v46, 0.0  ;;  %v1491_v50 = vmul.f32 1.442695, %v1326_v23  ;;  %v1328_v16 = vmin.f32 %v6769_v58, 0.0  ;;  %v1001_v23 = vpop.f32.mrf.mxu0 }
 0x1b4   : > { %v5377_v40 = vpop.eup %5376  ;;  %v1814_v63 = vsel %vm1174_vm7, %v6662_v39, %v4540_v34  ;;  %v4547_v24 = vadd.f32 -1.0, %v5373_v54  ;;  %vm1183_vm11 = vcmp.gt.f32.partialorder %v6683_v42, 0.0  ;;  %vm1189_vm12 = vcmp.gt.f32.partialorder %v6690_v22, 0.0  ;;  %v1112_v39 = vpop.f32.mrf.mxu1 }
 0x1b5   : > { %v1505_v43 = vmul.f32 1.442695, %v1333_v3  ;;  %v6794_v8 = vadd.f32 %v995_v47, %v6610_v2  ;;  %v5379_v28 = vpop.eup %5378  ;;  %v1994_v11 = vadd.f32 %v1962_v17, %v1808_v33  ;;  %v1815_v37 = vsel %vm1175_vm6, %v6665_v45, %v4541_v31 }
 0x1b6   : > { %5388 = vpow2.f32 %v1479_v4  ;;  %v6800_v25 = vadd.f32 %v999_v1, %v6596_v27  ;;  %v5381_v41 = vpop.eup %5380  ;;  %v1995_v34 = vadd.f32 %v1963_v26, %v1815_v37  ;;  %v1493_v54 = vmul.f32 1.442695, %v1327_v9 }
 0x1b7   : > { %5390 = vpow2.f32 %v1489_v49  ;;  %v1335_v3 = vmin.f32 %v6781_v19, 0.0  ;;  %v1964_v47 = vadd.f32 %v6729_v35, %v1814_v63  ;;  %v4542_v12 = vadd.f32 -1.0, %v5375_v7  ;;  %v1114_v35 = vpop.f32.mrf.mxu1  ;;  %v1003_v7 = vpop.f32.mrf.mxu0 }
 0x1b8   : > { %5392 = vpow2.f32 %v1491_v50  ;;  %v1495_v17 = vmul.f32 1.442695, %v1328_v16  ;;  %v1821_v31 = vsel %vm1181_vm8, %v6674_v15, %v4547_v24  ;;  %v4548_v45 = vadd.f32 -1.0, %v5379_v28 }
 0x1b9   : > { %5394 = vpow2.f32 %v1505_v43  ;;  %v1334_v4 = vmin.f32 %v6794_v8, 0.0  ;;  %v6808_v1 = vmul.f32 0.25, %v1993_v0  ;;  %v4549_v26 = vadd.f32 -1.0, %v5377_v40 }
 0x1ba   : > { %vm1184_vm13 = vcmp.gt.f32.partialorder %v6707_v13, 0.0  ;;  %v4555_v49 = vadd.f32 -1.0, %v5381_v41  ;;  %v1341_v9 = vmin.f32 %v6800_v25, 0.0  ;;  %v6812_v33 = vmul.f32 0.25, %v1994_v11  ;;  %v5383_v16 = vpop.eup %5382  ;;  %v1005_v41 = vpop.f32.mrf.mxu0 }
 0x1bb   : > { %vm1191_vm14 = vcmp.gt.f32.partialorder %v6712_v38, 0.0  ;;  %5396 = vpow2.f32 %v1493_v54  ;;  %v1509_v15 = vmul.f32 1.442695, %v1335_v3  ;;  %v6816_v50 = vadd.f32 %v1108_v53, %v6634_v36  ;;  %v5385_v24 = vpop.eup %5384 }
 0x1bc   : > { %v1816_v0 = vsel %vm1176_vm9, %v6680_v59, %v4542_v12  ;;  %v1965_v40 = vadd.f32 %v6253_v21, %v1821_v31  ;;  %5398 = vpow2.f32 %v1495_v17  ;;  %v6823_v63 = vadd.f32 %v1112_v39, %v6624_v51  ;;  %v1116_v39 = vpop.f32.mrf.mxu1 }
 0x1bd   : > { %v6825_v43 = vmul.f32 0.25, %v1995_v34  ;;  %v1996_v28 = vadd.f32 %v1964_v47, %v1816_v0  ;;  %v1822_v53 = vsel %vm1182_vm10, %v6687_v46, %v4548_v45  ;;  %vm1190_vm15 = vcmp.gt.f32.partialorder %v6723_v6, 0.0 }
 0x1be   : > { %v1507_v11 = vmul.f32 1.442695, %v1334_v4  ;;  %v1823_v12 = vsel %vm1183_vm11, %v6683_v42, %v4549_v26  ;;  %v1829_v21 = vsel %vm1189_vm12, %v6690_v22, %v4555_v49  ;;  %v1521_v59 = vmul.f32 1.442695, %v1341_v9  ;;  %v5387_v34 = vpop.eup %5386  ;;  %v1118_v49 = vpop.f32.mrf.mxu1 }
 0x1bf   : > { %v6838_v37 = vadd.f32 %v1001_v23, %v6610_v2  ;;  %v4550_v54 = vadd.f32 -1.0, %v5383_v16  ;;  %5400 = vpow2.f32 %v1509_v15  ;;  %v1336_v46 = vmin.f32 %v6816_v50, 0.0  ;;  %v1009_v9 = vpop.f32.mrf.mxu0 }
 0x1c0   : > { %v6842_v3 = vadd.f32 %v1003_v7, %v6596_v27  ;;  %v1997_v47 = vadd.f32 %v1965_v40, %v1823_v12  ;;  %v1966_v42 = vadd.f32 %v6261_v57, %v1822_v53  ;;  %v4557_v17 = vadd.f32 -1.0, %v5385_v24 }
 0x1c1   : > { %v1343_v22 = vmin.f32 %v6823_v63, 0.0  ;;  %v6846_v31 = vmul.f32 0.25, %v1996_v28  ;;  %v1967_v23 = vadd.f32 %v6268_v56, %v1829_v21  ;;  %5402 = vpow2.f32 %v1507_v11 }
 0x1c2   : > { %v6850_v45 = vadd.f32 %v1114_v35, %v6634_v36  ;;  %v4556_v4 = vadd.f32 -1.0, %v5387_v34  ;;  %vm1192_vm0 = vcmp.gt.f32.partialorder %v6739_v48, 0.0  ;;  %vm1197_vm1 = vcmp.gt.f32.partialorder %v6744_v18, 0.0 }
 0x1c3   : > { %5404 = vpow2.f32 %v1521_v59  ;;  %v1342_v26 = vmin.f32 %v6838_v37, 0.0  ;;  %v6856_v57 = vadd.f32 %v1005_v41, %v6610_v2  ;;  %v5389_v7 = vpop.eup %5388  ;;  %v1824_v56 = vsel %vm1184_vm13, %v6707_v13, %v4550_v54 }
 0x1c4   : > { %vm1198_vm2 = vcmp.gt.f32.partialorder %v6748_v5, 0.0  ;;  %v1511_v35 = vmul.f32 1.442695, %v1336_v46  ;;  %v1349_v15 = vmin.f32 %v6842_v3, 0.0  ;;  %v6864_v16 = vadd.f32 %v1116_v39, %v6624_v51  ;;  %v5391_v0 = vpop.eup %5390 }
 0x1c5   : > { %v6866_v40 = vmul.f32 0.25, %v1997_v47  ;;  %v1998_v24 = vadd.f32 %v1966_v42, %v1824_v56  ;;  %v1831_v28 = vsel %vm1191_vm14, %v6712_v38, %v4557_v17  ;;  %v1525_v53 = vmul.f32 1.442695, %v1343_v22  ;;  %v5393_v11 = vpop.eup %5392  ;;  %v1122_v38 = vpop.f32.mrf.mxu1 }
 0x1c6   : > { %v1999_v12 = vadd.f32 %v1967_v23, %v1831_v28  ;;  %vm1205_vm3 = vcmp.gt.f32.partialorder %v6753_v52, 0.0  ;;  %v1344_v13 = vmin.f32 %v6850_v45, 0.0  ;;  %v6874_v21 = vadd.f32 %v1009_v9, %v6596_v27  ;;  %v5395_v59 = vpop.eup %5394  ;;  %v1011_v17 = vpop.f32.mrf.mxu0 }
 0x1c7   : > { %v1830_v39 = vsel %vm1190_vm15, %v6723_v6, %v4556_v4  ;;  %v4558_v41 = vadd.f32 -1.0, %v5389_v7  ;;  %v1523_v34 = vmul.f32 1.442695, %v1342_v26  ;;  %v1350_v54 = vmin.f32 %v6856_v57, 0.0  ;;  %v1124_v28 = vpop.f32.mrf.mxu1 }
 0x1c8   : > { %v4563_v46 = vadd.f32 -1.0, %v5391_v0  ;;  %vm1199_vm4 = vcmp.gt.f32.partialorder %v6762_v14, 0.0  ;;  %vm1200_vm5 = vcmp.gt.f32.partialorder %v6769_v58, 0.0  ;;  %5406 = vpow2.f32 %v1511_v35  ;;  %v5397_v22 = vpop.eup %5396 }
 0x1c9   : > { %v1537_v47 = vmul.f32 1.442695, %v1349_v15  ;;  %v1351_v42 = vmin.f32 %v6864_v16, 0.0  ;;  %v6883_v23 = vmul.f32 0.25, %v1998_v24  ;;  %v4564_v9 = vadd.f32 -1.0, %v5393_v11  ;;  %v5399_v4 = vpop.eup %5398 }
 0x1ca   : > { %5408 = vpow2.f32 %v1525_v53  ;;  %v1357_v6 = vmin.f32 %v6874_v21, 0.0  ;;  %v6886_v26 = vmul.f32 0.25, %v1999_v12  ;;  %v4571_v7 = vadd.f32 -1.0, %v5395_v59  ;;  %v1013_v12 = vpop.f32.mrf.mxu0 }
 0x1cb   : > { %8615 = vst [vmem:[#allocation39_spill] sm:$0xff] %v6883_v23  ;;  %v1527_v56 = vmul.f32 1.442695, %v1344_v13  ;;  %v6889_v0 = vadd.f32 %v1118_v49, %v6634_v36  ;;  %v1968_v35 = vadd.f32 %v6276_v62, %v1830_v39  ;;  %vm1207_vm6 = vcmp.gt.f32.partialorder %v6781_v19, 0.0 }
 0x1cc   : > { %8616 = vst [vmem:[#allocation40_spill] sm:$0xff] %v6886_v26  ;;  %5410 = vpow2.f32 %v1523_v34  ;;  %v1539_v15 = vmul.f32 1.442695, %v1350_v54  ;;  %v6894_v24 = vadd.f32 %v1122_v38, %v6624_v51  ;;  %v1832_v53 = vsel %vm1192_vm0, %v6739_v48, %v4558_v41  ;;  %v5401_v62 = vpop.eup %5400 }
 0x1cd   : > { %v1837_v11 = vsel %vm1197_vm1, %v6744_v18, %v4563_v46  ;;  %5412 = vpow2.f32 %v1537_v47  ;;  %v1541_v49 = vmul.f32 1.442695, %v1351_v42  ;;  %v4565_v13 = vadd.f32 -1.0, %v5397_v22  ;;  %v1126_v47 = vpop.f32.mrf.mxu1 }
 0x1ce   : > { %v1838_v59 = vsel %vm1198_vm2, %v6748_v5, %v4564_v9  ;;  %v4566_v39 = vadd.f32 -1.0, %v5399_v4  ;;  %vm1206_vm7 = vcmp.gt.f32.partialorder %v6794_v8, 0.0  ;;  %v1553_v34 = vmul.f32 1.442695, %v1357_v6  ;;  %v5403_v54 = vpop.eup %5402  ;;  %v1015_v6 = vpop.f32.mrf.mxu0 }
 0x1cf   : > { %v1845_v48 = vsel %vm1205_vm3, %v6753_v52, %v4571_v7  ;;  %5414 = vpow2.f32 %v1527_v56  ;;  %v1352_v18 = vmin.f32 %v6889_v0, 0.0  ;;  %v6911_v41 = vadd.f32 %v1011_v17, %v6610_v2 }
 0x1d0   : > { %v2000_v38 = vadd.f32 %v1968_v35, %v1832_v53  ;;  %v1969_v46 = vadd.f32 %v6300_v32, %v1837_v11  ;;  %5416 = vpow2.f32 %v1539_v15  ;;  %v1359_v5 = vmin.f32 %v6894_v24, 0.0  ;;  %v5405_v42 = vpop.eup %5404 }
 0x1d1   : > { %v1970_v22 = vadd.f32 %v6315_v60, %v1838_v59  ;;  %v4573_v9 = vadd.f32 -1.0, %v5401_v62  ;;  %5418 = vpow2.f32 %v1541_v49  ;;  %v6917_v52 = vadd.f32 %v1013_v12, %v6596_v27  ;;  %v1128_v49 = vpop.f32.mrf.mxu1 }
 0x1d2   : > { %v1839_v17 = vsel %vm1199_vm4, %v6762_v14, %v4565_v13  ;;  %v1840_v32 = vsel %vm1200_vm5, %v6769_v58, %v4566_v39  ;;  %v1971_v4 = vadd.f32 %v6350_v29, %v1845_v48  ;;  %5420 = vpow2.f32 %v1553_v34 }
 0x1d3   : > { %v4572_v7 = vadd.f32 -1.0, %v5403_v54  ;;  %v1543_v56 = vmul.f32 1.442695, %v1352_v18  ;;  %v1358_v60 = vmin.f32 %v6911_v41, 0.0  ;;  %v6928_v35 = vadd.f32 %v1124_v28, %v6634_v36  ;;  %v1019_v28 = vpop.f32.mrf.mxu0 }
 0x1d4   : > { %v4579_v15 = vadd.f32 -1.0, %v5405_v42  ;;  %v1557_v53 = vmul.f32 1.442695, %v1359_v5  ;;  %v1365_v11 = vmin.f32 %v6917_v52, 0.0  ;;  %v6932_v14 = vadd.f32 %v1015_v6, %v6610_v2  ;;  %v1132_v5 = vpop.f32.mrf.mxu1 }
 0x1d5   : > { %v2001_v12 = vadd.f32 %v1969_v46, %v1839_v17  ;;  %v2002_v58 = vadd.f32 %v1970_v22, %v1840_v32  ;;  %v1847_v29 = vsel %vm1207_vm6, %v6781_v19, %v4573_v9  ;;  %vm1208_vm8 = vcmp.gt.f32.partialorder %v6816_v50, 0.0  ;;  %v5407_v62 = vpop.eup %5406 }
 0x1d6   : > { %vm1213_vm9 = vcmp.gt.f32.partialorder %v6800_v25, 0.0  ;;  %v6939_v13 = vmul.f32 0.25, %v2000_v38  ;;  %v2003_v59 = vadd.f32 %v1971_v4, %v1847_v29  ;;  %vm1215_vm10 = vcmp.gt.f32.partialorder %v6823_v63, 0.0 }
 0x1d7   : > { %v6943_v39 = vadd.f32 %v1126_v47, %v6624_v51  ;;  %v5409_v34 = vpop.eup %5408  ;;  %v1846_v48 = vsel %vm1206_vm7, %v6794_v8, %v4572_v7  ;;  %vm1214_vm11 = vcmp.gt.f32.partialorder %v6838_v37, 0.0  ;;  %5422 = vpow2.f32 %v1543_v56  ;;  %v1021_v8 = vpop.f32.mrf.mxu0 }
 0x1d8   : > { %8617 = vst [vmem:[#allocation41_spill] sm:$0xff] %v6939_v13  ;;  %v1555_v19 = vmul.f32 1.442695, %v1358_v60  ;;  %v1360_v18 = vmin.f32 %v6928_v35, 0.0  ;;  %v1853_v54 = vsel %vm1213_vm9, %v6800_v25, %v4579_v15  ;;  %5424 = vpow2.f32 %v1557_v53 }
 0x1d9   : > { %v1569_v38 = vmul.f32 1.442695, %v1365_v11  ;;  %v1366_v46 = vmin.f32 %v6932_v14, 0.0  ;;  %v5411_v47 = vpop.eup %5410  ;;  %v6952_v42 = vmul.f32 0.25, %v2001_v12  ;;  %v6954_v22 = vmul.f32 0.25, %v2002_v58  ;;  %v1134_v58 = vpop.f32.mrf.mxu1 }
 0x1da   : > { %v4574_v9 = vadd.f32 -1.0, %v5407_v62  ;;  %vm1221_vm12 = vcmp.gt.f32.partialorder %v6842_v3, 0.0  ;;  %v5413_v6 = vpop.eup %5412  ;;  %v4581_v17 = vadd.f32 -1.0, %v5409_v34  ;;  %vm1216_vm13 = vcmp.gt.f32.partialorder %v6850_v45, 0.0  ;;  %v1023_v62 = vpop.f32.mrf.mxu0 }
 0x1db   : > { %v1367_v25 = vmin.f32 %v6943_v39, 0.0  ;;  %v6960_v32 = vadd.f32 %v1128_v49, %v6634_v36  ;;  %v6963_v4 = vadd.f32 %v1019_v28, %v6596_v27  ;;  %v1972_v7 = vadd.f32 %v6731_v55, %v1846_v48 }
 0x1dc   : > { %v1973_v56 = vadd.f32 %v6371_v20, %v1853_v54  ;;  %vm1222_vm14 = vcmp.gt.f32.partialorder %v6856_v57, 0.0  ;;  %5426 = vpow2.f32 %v1555_v19  ;;  %v1559_v60 = vmul.f32 1.442695, %v1360_v18  ;;  %v5415_v15 = vpop.eup %5414 }
 0x1dd   : > { %v6968_v53 = vmul.f32 0.25, %v2003_v59  ;;  %v4580_v11 = vadd.f32 -1.0, %v5411_v47  ;;  %5428 = vpow2.f32 %v1569_v38  ;;  %v1571_v12 = vmul.f32 1.442695, %v1366_v46  ;;  %v5417_v49 = vpop.eup %5416 }
 0x1de   : > { %v4587_v29 = vadd.f32 -1.0, %v5413_v6  ;;  %vm1223_vm15 = vcmp.gt.f32.partialorder %v6864_v16, 0.0  ;;  %vm1229_vm0 = vcmp.gt.f32.partialorder %v6874_v21, 0.0  ;;  %v1373_v55 = vmin.f32 %v6963_v4, 0.0  ;;  %v5419_v59 = vpop.eup %5418 }
 0x1df   : > { %v6974_v20 = vadd.f32 %v1132_v5, %v6624_v51  ;;  %v6977_v28 = vadd.f32 %v1021_v8, %v6610_v2  ;;  %v1848_v34 = vsel %vm1208_vm8, %v6816_v50, %v4574_v9  ;;  %v1855_v48 = vsel %vm1215_vm10, %v6823_v63, %v4581_v17  ;;  %v5421_v54 = vpop.eup %5420  ;;  %v1136_v9 = vpop.f32.mrf.mxu1 }
 0x1e0   : > { %v1573_v19 = vmul.f32 1.442695, %v1367_v25  ;;  %v1368_v18 = vmin.f32 %v6960_v32, 0.0  ;;  %v2004_v38 = vadd.f32 %v1972_v7, %v1848_v34  ;;  %v2005_v46 = vadd.f32 %v1973_v56, %v1855_v48  ;;  %v1025_v7 = vpop.f32.mrf.mxu0 }
 0x1e1   : > { %v4582_v5 = vadd.f32 -1.0, %v5415_v15  ;;  %5430 = vpow2.f32 %v1559_v60  ;;  %v1854_v47 = vsel %vm1214_vm11, %v6838_v37, %v4580_v11  ;;  %v4588_v8 = vadd.f32 -1.0, %v5417_v49  ;;  %v1138_v34 = vpop.f32.mrf.mxu1 }
 0x1e2   : > { %5432 = vpow2.f32 %v1571_v12  ;;  %v1375_v50 = vmin.f32 %v6974_v20, 0.0  ;;  %v1861_v63 = vsel %vm1221_vm12, %v6842_v3, %v4587_v29  ;;  %v4589_v6 = vadd.f32 -1.0, %v5419_v59 }
 0x1e3   : > { %v1585_v17 = vmul.f32 1.442695, %v1373_v55  ;;  %v1374_v25 = vmin.f32 %v6977_v28, 0.0  ;;  %vm1224_vm1 = vcmp.gt.f32.partialorder %v6889_v0, 0.0  ;;  %v4595_v56 = vadd.f32 -1.0, %v5421_v54  ;;  %v8619_v54 = vld [vmem:[#allocation18_spill] sm:$0xff] }
 0x1e4   : > { %5434 = vpow2.f32 %v1573_v19  ;;  %v1575_v60 = vmul.f32 1.442695, %v1368_v18  ;;  %v6996_v37 = vadd.f32 %v1023_v62, %v6596_v27  ;;  %v6998_v15 = vmul.f32 0.25, %v2004_v38  ;;  %v5423_v49 = vpop.eup %5422  ;;  %v1029_v18 = vpop.f32.mrf.mxu0 }
 0x1e5   : > { %v7000_v11 = vmul.f32 0.25, %v2005_v46  ;;  %v1974_v12 = vadd.f32 %v6395_v61, %v1854_v47  ;;  %v1856_v3 = vsel %vm1216_vm13, %v6850_v45, %v4582_v5  ;;  %vm1231_vm2 = vcmp.gt.f32.partialorder %v6894_v24, 0.0  ;;  %v5425_v48 = vpop.eup %5424 }
 0x1e6   : > { %v1975_v29 = vadd.f32 %v6406_v30, %v1861_v63  ;;  %v1862_v55 = vsel %vm1222_vm14, %v6856_v57, %v4588_v8  ;;  %v1589_v62 = vmul.f32 1.442695, %v1375_v50  ;;  %v7012_v59 = vadd.f32 %v1134_v58, %v6634_v36  ;;  %v8620_v63 = vld [vmem:[#allocation19_spill] sm:$0xff] }
 0x1e7   : > { %8618 = vst [vmem:[#allocation42_spill] sm:$0xff] %v7000_v11  ;;  %5436 = vpow2.f32 %v1585_v17  ;;  %v1587_v61 = vmul.f32 1.442695, %v1374_v25  ;;  %v1381_v19 = vmin.f32 %v6996_v37, 0.0  ;;  %v7016_v45 = vadd.f32 %v1136_v9, %v6624_v51 }
 0x1e8   : > { %v1863_v30 = vsel %vm1223_vm15, %v6864_v16, %v4589_v6  ;;  %v1869_v57 = vsel %vm1229_vm0, %v6874_v21, %v4595_v56  ;;  %vm1230_vm3 = vcmp.gt.f32.partialorder %v6911_v41, 0.0  ;;  %5438 = vpow2.f32 %v1575_v60 }
 0x1e9   : > { %v7026_v58 = vadd.f32 %v1025_v7, %v6610_v2  ;;  %v1976_v38 = vadd.f32 %v8619_v54, %v1862_v55  ;;  %v4590_v46 = vadd.f32 -1.0, %v5423_v49  ;;  %v1601_v5 = vmul.f32 1.442695, %v1381_v19  ;;  %v5427_v8 = vpop.eup %5426  ;;  %v1142_v7 = vpop.f32.mrf.mxu1 }
 0x1ea   : > { %v7030_v47 = vadd.f32 %v1138_v34, %v6634_v36  ;;  %v4597_v50 = vadd.f32 -1.0, %v5425_v48  ;;  %5440 = vpow2.f32 %v1589_v62  ;;  %v1376_v16 = vmin.f32 %v7012_v59, 0.0  ;;  %v5429_v9 = vpop.eup %5428  ;;  %v1031_v49 = vpop.f32.mrf.mxu0 }
 0x1eb   : > { %v7034_v21 = vadd.f32 %v1029_v18, %v6596_v27  ;;  %v1977_v6 = vadd.f32 %v8620_v63, %v1869_v57  ;;  %5442 = vpow2.f32 %v1587_v61  ;;  %v1383_v17 = vmin.f32 %v7016_v45, 0.0 }
 0x1ec   : > { %v1382_v25 = vmin.f32 %v7026_v58, 0.0  ;;  %v2006_v56 = vadd.f32 %v1974_v12, %v1856_v3  ;;  %v2007_v60 = vadd.f32 %v1975_v29, %v1863_v30  ;;  %vm1237_vm4 = vcmp.gt.f32.partialorder %v6917_v52, 0.0 }
 0x1ed   : > { %5444 = vpow2.f32 %v1601_v5  ;;  %v1864_v55 = vsel %vm1224_vm1, %v6889_v0, %v4590_v46  ;;  %v4596_v62 = vadd.f32 -1.0, %v5427_v8  ;;  %vm1238_vm5 = vcmp.gt.f32.partialorder %v6932_v14, 0.0  ;;  %v1144_v46 = vpop.f32.mrf.mxu1 }
 0x1ee   : > { %v1603_v34 = vmul.f32 1.442695, %v1382_v25  ;;  %v1384_v48 = vmin.f32 %v7030_v47, 0.0  ;;  %v5431_v61 = vpop.eup %5430  ;;  %v1871_v12 = vsel %vm1231_vm2, %v6894_v24, %v4597_v50  ;;  %vm1232_vm6 = vcmp.gt.f32.partialorder %v6928_v35, 0.0  ;;  %v1033_v50 = vpop.f32.mrf.mxu0 }
 0x1ef   : > { %v4603_v3 = vadd.f32 -1.0, %v5429_v9  ;;  %v1591_v29 = vmul.f32 1.442695, %v1376_v16  ;;  %v1389_v19 = vmin.f32 %v7034_v21, 0.0  ;;  %v5433_v18 = vpop.eup %5432  ;;  %v2008_v30 = vadd.f32 %v1976_v38, %v1864_v55  ;;  %v1146_v55 = vpop.f32.mrf.mxu1 }
 0x1f0   : > { %v2009_v0 = vadd.f32 %v1977_v6, %v1871_v12  ;;  %vm1239_vm7 = vcmp.gt.f32.partialorder %v6943_v39, 0.0  ;;  %v1605_v57 = vmul.f32 1.442695, %v1383_v17  ;;  %v7052_v54 = vadd.f32 %v1142_v7, %v6624_v51 }
 0x1f1   : > { %v7054_v5 = vmul.f32 0.25, %v2006_v56  ;;  %v7056_v8 = vmul.f32 0.25, %v2007_v60  ;;  %5446 = vpow2.f32 %v1603_v34  ;;  %v1617_v24 = vmul.f32 1.442695, %v1389_v19  ;;  %v5435_v16 = vpop.eup %5434 }
 0x1f2   : > { %v1870_v38 = vsel %vm1230_vm3, %v6911_v41, %v4596_v62  ;;  %v1607_v9 = vmul.f32 1.442695, %v1384_v48  ;;  %v1391_v63 = vmin.f32 %v7052_v54, 0.0  ;;  %v7063_v6 = vadd.f32 %v1031_v49, %v6610_v2  ;;  %v1035_v48 = vpop.f32.mrf.mxu0 }
 0x1f3   : > { %8621 = vst [vmem:[#allocation18_spill] sm:$0xff] %v7054_v5  ;;  %8622 = vst [vmem:[#allocation19_spill] sm:$0xff] %v7056_v8  ;;  %v1877_v17 = vsel %vm1237_vm4, %v6917_v52, %v4603_v3  ;;  %v4604_v25 = vadd.f32 -1.0, %v5433_v18  ;;  %vm1245_vm8 = vcmp.gt.f32.partialorder %v6963_v4, 0.0  ;;  %5448 = vpow2.f32 %v1591_v29  ;;  %v8625_v3 = vld [vmem:[#allocation20_spill] sm:$0xff] }
 0x1f4   : > { %v7070_v7 = vadd.f32 %v1144_v46, %v6634_v36  ;;  %v7072_v56 = vmul.f32 0.25, %v2008_v30  ;;  %v7074_v41 = vmul.f32 0.25, %v2009_v0  ;;  %v4598_v60 = vadd.f32 -1.0, %v5431_v61  ;;  %v5437_v49 = vpop.eup %5436 }
 0x1f5   : > { %5450 = vpow2.f32 %v1605_v57  ;;  %v1978_v62 = vadd.f32 %v6458_v44, %v1870_v38  ;;  %v4605_v34 = vadd.f32 -1.0, %v5435_v16  ;;  %vm1240_vm9 = vcmp.gt.f32.partialorder %v6960_v32, 0.0  ;;  %v5439_v12 = vpop.eup %5438 }
 0x1f6   : > { %8623 = vst [vmem:[#allocation43_spill] sm:$0xff] %v7072_v56  ;;  %8624 = vst [vmem:[#allocation44_spill] sm:$0xff] %v7074_v41  ;;  %5452 = vpow2.f32 %v1617_v24  ;;  %v1390_v52 = vmin.f32 %v7063_v6, 0.0  ;;  %v1979_v29 = vadd.f32 %v8625_v3, %v1877_v17  ;;  %v1621_v19 = vmul.f32 1.442695, %v1391_v63  ;;  %v1039_v17 = vpop.f32.mrf.mxu0 }
 0x1f7   : > { %5454 = vpow2.f32 %v1607_v9  ;;  %v7081_v18 = vadd.f32 %v1033_v50, %v6596_v27  ;;  %v1878_v61 = vsel %vm1238_vm5, %v6932_v14, %v4604_v25  ;;  %vm1247_vm10 = vcmp.gt.f32.partialorder %v6974_v20, 0.0  ;;  %v5441_v57 = vpop.eup %5440  ;;  %v1148_v50 = vpop.f32.mrf.mxu1 }
 0x1f8   : > { %vm1246_vm11 = vcmp.gt.f32.partialorder %v6977_v28, 0.0  ;;  %v1619_v44 = vmul.f32 1.442695, %v1390_v52  ;;  %v1392_v30 = vmin.f32 %v7070_v7, 0.0  ;;  %v7090_v0 = vadd.f32 %v1146_v55, %v6624_v51  ;;  %v5443_v16 = vpop.eup %5442  ;;  %v8626_v52 = vld [vmem:[#allocation21_spill] sm:$0xff] }
 0x1f9   : > { %v1872_v46 = vsel %vm1232_vm6, %v6928_v35, %v4598_v60  ;;  %v4611_v24 = vadd.f32 -1.0, %v5437_v49  ;;  %vm1253_vm12 = vcmp.gt.f32.partialorder %v6996_v37, 0.0  ;;  %v1397_v14 = vmin.f32 %v7081_v18, 0.0 }
 0x1fa   : > { %v2010_v38 = vadd.f32 %v1978_v62, %v1872_v46  ;;  %v1879_v9 = vsel %vm1239_vm7, %v6943_v39, %v4605_v34  ;;  %v4606_v63 = vadd.f32 -1.0, %v5439_v12  ;;  %5456 = vpow2.f32 %v1619_v44  ;;  %v5445_v25 = vpop.eup %5444 }
 0x1fb   : > { %v2011_v55 = vadd.f32 %v1979_v29, %v1879_v9  ;;  %v1980_v3 = vadd.f32 %v8626_v52, %v1878_v61  ;;  %5458 = vpow2.f32 %v1621_v19  ;;  %v1633_v35 = vmul.f32 1.442695, %v1397_v14  ;;  %v1152_v19 = vpop.f32.mrf.mxu1  ;;  %v8627_v14 = vld [vmem:[#allocation22_spill] sm:$0xff] }
 0x1fc   : > { %v1623_v60 = vmul.f32 1.442695, %v1392_v30  ;;  %v1399_v49 = vmin.f32 %v7090_v0, 0.0  ;;  %v7103_v41 = vadd.f32 %v1035_v48, %v6610_v2  ;;  %v7106_v62 = vadd.f32 %v1148_v50, %v6634_v36 }
 0x1fd   : > { %v1885_v39 = vsel %vm1245_vm8, %v6963_v4, %v4611_v24  ;;  %v4613_v34 = vadd.f32 -1.0, %v5441_v57  ;;  %v4612_v12 = vadd.f32 -1.0, %v5443_v16  ;;  %v7112_v29 = vadd.f32 %v1039_v17, %v6596_v27  ;;  %v1154_v52 = vpop.f32.mrf.mxu1 }
 0x1fe   : > { %v7114_v61 = vmul.f32 0.25, %v2010_v38  ;;  %v4619_v44 = vadd.f32 -1.0, %v5445_v25  ;;  %5460 = vpow2.f32 %v1633_v35  ;;  %v1637_v30 = vmul.f32 1.442695, %v1399_v49  ;;  %v5447_v48 = vpop.eup %5446  ;;  %v1041_v38 = vpop.f32.mrf.mxu0 }
 0x1ff   : > { %v1880_v46 = vsel %vm1240_vm9, %v6960_v32, %v4606_v63  ;;  %vm1248_vm13 = vcmp.gt.f32.partialorder %v7012_v59, 0.0  ;;  %vm1254_vm14 = vcmp.gt.f32.partialorder %v7026_v58, 0.0  ;;  %v1398_v4 = vmin.f32 %v7103_v41, 0.0 }
 0x200   : > { %v1400_v57 = vmin.f32 %v7106_v62, 0.0  ;;  %v2012_v24 = vadd.f32 %v1980_v3, %v1880_v46  ;;  %v1981_v50 = vadd.f32 %v8627_v14, %v1885_v39  ;;  %vm1255_vm15 = vcmp.gt.f32.partialorder %v7016_v45, 0.0  ;;  %v5449_v9 = vpop.eup %5448 }
 0x201   : > { %5462 = vpow2.f32 %v1623_v60  ;;  %v1405_v16 = vmin.f32 %v7112_v29, 0.0  ;;  %v7126_v17 = vmul.f32 0.25, %v2011_v55  ;;  %v1887_v32 = vsel %vm1247_vm10, %v6974_v20, %v4613_v34 }
 0x202   : > { %v1886_v63 = vsel %vm1246_vm11, %v6977_v28, %v4612_v12  ;;  %vm1261_vm0 = vcmp.gt.f32.partialorder %v7034_v21, 0.0  ;;  %v1635_v25 = vmul.f32 1.442695, %v1398_v4  ;;  %v5451_v3 = vpop.eup %5450  ;;  %v1893_v35 = vsel %vm1253_vm12, %v6996_v37, %v4619_v44  ;;  %v1043_v44 = vpop.f32.mrf.mxu0 }
 0x203   : > { %8628 = vst [vmem:[#allocation20_spill] sm:$0xff] %v7126_v17  ;;  %v4620_v60 = vadd.f32 -1.0, %v5447_v48  ;;  %vm1256_vm1 = vcmp.gt.f32.partialorder %v7030_v47, 0.0  ;;  %5464 = vpow2.f32 %v1637_v30  ;;  %v1649_v55 = vmul.f32 1.442695, %v1405_v16  ;;  %v5453_v49 = vpop.eup %5452  ;;  %v8629_v48 = vld [vmem:[#allocation23_spill] sm:$0xff] }
 0x204   : > { %5466 = vpow2.f32 %v1635_v25  ;;  %v1639_v20 = vmul.f32 1.442695, %v1400_v57  ;;  %v7140_v39 = vadd.f32 %v1152_v19, %v6624_v51  ;;  %v7143_v28 = vadd.f32 %v1041_v38, %v6610_v2  ;;  %v5455_v34 = vpop.eup %5454  ;;  %v1156_v38 = vpop.f32.mrf.mxu1 }
 0x205   : > { %v7145_v12 = vmul.f32 0.25, %v2012_v24  ;;  %v2013_v46 = vadd.f32 %v1981_v50, %v1887_v32  ;;  %v4614_v4 = vadd.f32 -1.0, %v5449_v9  ;;  %v7148_v37 = vadd.f32 %v1154_v52, %v6634_v36 }
 0x206   : > { %v1982_v30 = vadd.f32 %v6522_v10, %v1886_v63  ;;  %v1983_v14 = vadd.f32 %v8629_v48, %v1893_v35  ;;  %v4621_v57 = vadd.f32 -1.0, %v5451_v3  ;;  %vm1262_vm2 = vcmp.gt.f32.partialorder %v7063_v6, 0.0 }
 0x207   : > { %5468 = vpow2.f32 %v1649_v55  ;;  %v1894_v19 = vsel %vm1254_vm14, %v7026_v58, %v4620_v60  ;;  %v4627_v24 = vadd.f32 -1.0, %v5453_v49  ;;  %v1407_v50 = vmin.f32 %v7140_v39, 0.0  ;;  %v5457_v9 = vpop.eup %5456  ;;  %v8631_v55 = vld [vmem:[#allocation24_spill] sm:$0xff] }
 0x208   : > { %v1406_v16 = vmin.f32 %v7143_v28, 0.0  ;;  %v4622_v32 = vadd.f32 -1.0, %v5455_v34  ;;  %vm1263_vm3 = vcmp.gt.f32.partialorder %v7052_v54, 0.0  ;;  %5470 = vpow2.f32 %v1639_v20  ;;  %v5459_v25 = vpop.eup %5458 }
 0x209   : > { %v1408_v10 = vmin.f32 %v7148_v37, 0.0  ;;  %v7161_v63 = vadd.f32 %v1043_v44, %v6596_v27  ;;  %v7163_v52 = vmul.f32 0.25, %v2013_v46  ;;  %v1888_v58 = vsel %vm1248_vm13, %v7012_v59, %v4614_v4  ;;  %v1045_v4 = vpop.f32.mrf.mxu0  ;;  %v1158_v44 = vpop.f32.mrf.mxu1 }
 0x20a   : > { %v1653_v3 = vmul.f32 1.442695, %v1407_v50  ;;  %v1651_v35 = vmul.f32 1.442695, %v1406_v16  ;;  %v1895_v60 = vsel %vm1255_vm15, %v7016_v45, %v4621_v57  ;;  %v1984_v49 = vadd.f32 %v8631_v55, %v1894_v19 }
 0x20b   : > { %8630 = vst [vmem:[#allocation21_spill] sm:$0xff] %v7163_v52  ;;  %vm1269_vm4 = vcmp.gt.f32.partialorder %v7081_v18, 0.0  ;;  %v1655_v20 = vmul.f32 1.442695, %v1408_v10  ;;  %v1413_v27 = vmin.f32 %v7161_v63, 0.0  ;;  %v1901_v34 = vsel %vm1261_vm0, %v7034_v21, %v4627_v24  ;;  %v5461_v48 = vpop.eup %5460 }
 0x20c   : > { %v4628_v46 = vadd.f32 -1.0, %v5457_v9  ;;  %5472 = vpow2.f32 %v1653_v3  ;;  %v7178_v59 = vadd.f32 %v1156_v38, %v6624_v51  ;;  %v2014_v45 = vadd.f32 %v1982_v30, %v1888_v58  ;;  %v8632_v38 = vld [vmem:[#allocation25_spill] sm:$0xff] }
 0x20d   : > { %v2015_v57 = vadd.f32 %v1983_v14, %v1895_v60  ;;  %v1896_v19 = vsel %vm1256_vm1, %v7030_v47, %v4622_v32  ;;  %vm1264_vm5 = vcmp.gt.f32.partialorder %v7070_v7, 0.0  ;;  %5474 = vpow2.f32 %v1651_v35 }
 0x20e   : > { %v4629_v50 = vadd.f32 -1.0, %v5459_v25  ;;  %5476 = vpow2.f32 %v1655_v20  ;;  %v1665_v21 = vmul.f32 1.442695, %v1413_v27  ;;  %v1415_v24 = vmin.f32 %v7178_v59, 0.0  ;;  %v5463_v16 = vpop.eup %5462  ;;  %v7199_v25 = vld [vmem:[%s8517_s2 + $0x8] sm:$0xff]  ;;  %v8636_v20 = vld [vmem:[#allocation26_spill] sm:$0xff] }
 0x20f   : > { %v2016_v51 = vadd.f32 %v1984_v49, %v1896_v19  ;;  %v1985_v9 = vadd.f32 %v8632_v38, %v1901_v34  ;;  %v7187_v10 = vadd.f32 %v1045_v4, %v6610_v2  ;;  %v7190_v30 = vadd.f32 %v1158_v44, %v6634_v36  ;;  %8633 = vst [vmem:[#allocation22_spill] sm:$0xff] %v7199_v25 }
 0x210   : > { %v1902_v47 = vsel %vm1262_vm2, %v7063_v6, %v4628_v46  ;;  %v4635_v14 = vadd.f32 -1.0, %v5461_v48  ;;  %vm1271_vm6 = vcmp.gt.f32.partialorder %v7090_v0, 0.0  ;;  %5478 = vpow2.f32 %v1665_v21  ;;  %v5465_v58 = vpop.eup %5464  ;;  %v8637_v46 = vld [vmem:[#allocation13_spill] sm:$0xff] }
 0x211   : > { %v1669_v32 = vmul.f32 1.442695, %v1415_v24  ;;  %v7201_v2 = vmul.f32 0.25, %v2014_v45  ;;  %vm1270_vm7 = vcmp.gt.f32.partialorder %v7103_v41, 0.0  ;;  %vm1277_vm8 = vcmp.gt.f32.partialorder %v7112_v29, 0.0  ;;  %v5467_v6 = vpop.eup %5466 }
 0x212   : > { %v1414_v36 = vmin.f32 %v7187_v10, 0.0  ;;  %v7206_v3 = vmul.f32 0.25, %v2015_v57  ;;  %v1903_v35 = vsel %vm1263_vm3, %v7052_v54, %v4629_v50  ;;  %v4630_v60 = vadd.f32 -1.0, %v5463_v16  ;;  %v8639_v16 = vld [vmem:[#allocation17_spill] sm:$0xff] }
 0x213   : > { %8634 = vst [vmem:[#allocation23_spill] sm:$0xff] %v7201_v2  ;;  %v1416_v55 = vmin.f32 %v7190_v30, 0.0  ;;  %v2017_v49 = vadd.f32 %v1985_v9, %v1903_v35  ;;  %v1986_v27 = vadd.f32 %v8636_v20, %v1902_v47  ;;  %v7215_v4 = vrot.slane %v7199_v25, %v8637_v46  ;;  %v8643_v20 = vld [vmem:[#allocation29_spill] sm:$0xff] }
 0x214   : > { %8635 = vst [vmem:[#allocation24_spill] sm:$0xff] %v7206_v3  ;;  %v1667_v34 = vmul.f32 1.442695, %v1414_v36  ;;  %v5469_v44 = vpop.eup %5468  ;;  %v7217_v48 = vmul.f32 0.25, %v2016_v51  ;;  %v1909_v45 = vsel %vm1269_vm4, %v7081_v18, %v4635_v14  ;;  %5480 = vpow2.f32 %v1669_v32  ;;  %v8640_v18 = vld [vmem:[#allocation15_spill] sm:$0xff]  ;;  %v8642_v14 = vld [vmem:[#allocation28_spill] sm:$0xff] }
 0x215   : > { %v1671_v54 = vmul.f32 1.442695, %v1416_v55  ;;  %v4637_v57 = vadd.f32 -1.0, %v5465_v58  ;;  %v4636_v19 = vadd.f32 -1.0, %v5467_v6  ;;  %vm1272_vm9 = vcmp.gt.f32.partialorder %v7106_v62, 0.0  ;;  %v5471_v50 = vpop.eup %5470 }
 0x216   : > { %8638 = vst [vmem:[#allocation25_spill] sm:$0xff] %v7217_v48  ;;  %vm1278_vm10 = vcmp.gt.f32.partialorder %v7143_v28, 0.0  ;;  %5482 = vpow2.f32 %v1667_v34  ;;  %v1904_v21 = vsel %vm1264_vm5, %v7070_v7, %v4630_v60  ;;  %v4643_v24 = vadd.f32 -1.0, %v5469_v44 }
 0x217   : > { %v7229_v51 = vrot.slane %v7199_v25, %v8639_v16  ;;  %v7233_v38 = vrot.slane %v7199_v25, %v8640_v18  ;;  %v7235_v9 = vmul.f32 0.25, %v2017_v49  ;;  %v2018_v47 = vadd.f32 %v1986_v27, %v1904_v21 }
 0x218   : > { %v1987_v32 = vadd.f32 %v8642_v14, %v1909_v45  ;;  %v2068_v58 = vmul.f32 %v7215_v4, %v6812_v33  ;;  %vm1279_vm11 = vcmp.gt.f32.partialorder %v7140_v39, 0.0  ;;  %5484 = vpow2.f32 %v1671_v54 }
 0x219   : > { %8641 = vst [vmem:[#allocation26_spill] sm:$0xff] %v7235_v9  ;;  %v2070_v7 = vmul.f32 %v7215_v4, %v6846_v31  ;;  %v2116_v36 = vmul.f32 %v7233_v38, %v6954_v22  ;;  %v2118_v6 = vmul.f32 %v7233_v38, %v6998_v15  ;;  %v5473_v35 = vpop.eup %5472  ;;  %v1911_v60 = vsel %vm1271_vm6, %v7090_v0, %v4637_v57  ;;  %v8645_v9 = vld [vmem:[#allocation35_spill] sm:$0xff] }
 0x21a   : > { %v1910_v55 = vsel %vm1270_vm7, %v7103_v41, %v4636_v19  ;;  %v4638_v49 = vadd.f32 -1.0, %v5471_v50  ;;  %vm1280_vm12 = vcmp.gt.f32.partialorder %v7148_v37, 0.0  ;;  %v7256_v27 = vrot.slane %v7199_v25, %v8643_v20  ;;  %v5475_v34 = vpop.eup %5474 }
 0x21b   : > { %v1917_v44 = vsel %vm1277_vm8, %v7112_v29, %v4643_v24  ;;  %vm1285_vm13 = vcmp.gt.f32.partialorder %v7161_v63, 0.0  ;;  %v2124_v45 = vadd.f32 %v2116_v36, %v2068_v58  ;;  %v2126_v0 = vadd.f32 %v2118_v6, %v2070_v7  ;;  %v5477_v41 = vpop.eup %5476  ;;  %v8644_v29 = vld [vmem:[#allocation30_spill] sm:$0xff] }
 0x21c   : > { %v2092_v54 = vmul.f32 %v7229_v51, %v6812_v33  ;;  %v4644_v57 = vadd.f32 -1.0, %v5475_v34  ;;  %v2094_v19 = vmul.f32 %v7229_v51, %v6846_v31  ;;  %v2140_v50 = vmul.f32 %v7256_v27, %v6954_v22 }
 0x21d   : > { %v2142_v21 = vmul.f32 %v7256_v27, %v6998_v15  ;;  %v2019_v14 = vadd.f32 %v1987_v32, %v1911_v60  ;;  %v1988_v24 = vadd.f32 %v8644_v29, %v1910_v55  ;;  %v7272_v58 = vadd.f32 %v8645_v9, %v2124_v45  ;;  %v5479_v36 = vpop.eup %5478  ;;  %v8647_v60 = vld [vmem:[#allocation31_spill] sm:$0xff]  ;;  %v8648_v29 = vld [vmem:[#allocation32_spill] sm:$0xff] }
 0x21e   : > { %v7275_v7 = vadd.f32 %v8645_v9, %v2126_v0  ;;  %v4645_v6 = vadd.f32 -1.0, %v5473_v35  ;;  %v1918_v34 = vsel %vm1278_vm10, %v7143_v28, %v4644_v57  ;;  %v2148_v3 = vadd.f32 %v2140_v50, %v2092_v54 }
 0x21f   : > { %v2150_v52 = vadd.f32 %v2142_v21, %v2094_v19  ;;  %v7280_v48 = vmul.f32 0.25, %v2018_v47  ;;  %v1912_v32 = vsel %vm1272_vm9, %v7106_v62, %v4638_v49  ;;  %v1989_v55 = vadd.f32 %v8647_v60, %v1917_v44  ;;  %v7293_v47 = vld [vmem:[%s8517_s2] sm:$0xff]  ;;  %v8651_v49 = vld [vmem:[#allocation14_spill] sm:$0xff] }
 0x220   : > { %v4646_v45 = vadd.f32 -1.0, %v5477_v41  ;;  %v1990_v0 = vadd.f32 %v8648_v29, %v1918_v34  ;;  %v4651_v2 = vadd.f32 -1.0, %v5479_v36  ;;  %vm1287_vm14 = vcmp.gt.f32.partialorder %v7178_v59, 0.0  ;;  %8649 = vst [vmem:[#allocation17_spill] sm:$0xff] %v7293_v47  ;;  %v8652_v41 = vld [vmem:[#allocation38_spill] sm:$0xff] }
 0x221   : > { %8646 = vst [vmem:[#allocation13_spill] sm:$0xff] %v7280_v48  ;;  %v2755_v35 = vmin.f32 %v7272_v58, 0.0  ;;  %v2759_v28 = vmin.f32 %v7275_v7, 0.0  ;;  %v7295_v54 = vmul.f32 0.25, %v2019_v14  ;;  %v2020_v62 = vadd.f32 %v1988_v24, %v1912_v32  ;;  %v5481_v19 = vpop.eup %5480 }
 0x222   : > { %vm1286_vm15 = vcmp.gt.f32.partialorder %v7187_v10, 0.0  ;;  %v7300_v44 = vrot.slane %v7199_v25, %v8651_v49  ;;  %v7303_v57 = vadd.f32 %v8652_v41, %v2148_v3  ;;  %v1919_v50 = vsel %vm1279_vm11, %v7140_v39, %v4645_v6  ;;  %v8653_v6 = vld [vmem:[#allocation27_spill] sm:$0xff] }
 0x223   : > { %8650 = vst [vmem:[#allocation15_spill] sm:$0xff] %v7295_v54  ;;  %v2836_v21 = vmul.f32 1.442695, %v2755_v35  ;;  %v2844_v36 = vmul.f32 1.442695, %v2759_v28  ;;  %v7309_v14 = vadd.f32 %v8652_v41, %v2150_v52  ;;  %v5483_v24 = vpop.eup %5482  ;;  %v2021_v34 = vadd.f32 %v1989_v55, %v1919_v50 }
 0x224   : > { %v1920_v32 = vsel %vm1280_vm12, %v7148_v37, %v4646_v45  ;;  %v2757_v60 = vmin.f32 %v7303_v57, 0.0  ;;  %v7317_v3 = vrot.slane %v7293_v47, %v8637_v46  ;;  %v1925_v39 = vsel %vm1285_vm13, %v7161_v63, %v4651_v2 }
 0x225   : > { %v2022_v29 = vadd.f32 %v1990_v0, %v1920_v32  ;;  %v7324_v52 = vrot.slane %v7199_v25, %v8653_v6  ;;  %5486 = vpow2.f32 %v2836_v21  ;;  %v4653_v55 = vadd.f32 -1.0, %v5481_v19  ;;  %v5485_v35 = vpop.eup %5484  ;;  %v8656_v21 = vld [vmem:[#allocation33_spill] sm:$0xff] }
 0x226   : > { %vm1288_vm0 = vcmp.gt.f32.partialorder %v7190_v30, 0.0  ;;  %5488 = vpow2.f32 %v2844_v36  ;;  %v2761_v37 = vmin.f32 %v7309_v14, 0.0  ;;  %v2840_v45 = vmul.f32 1.442695, %v2757_v60 }
 0x227   : > { %v7328_v46 = vmul.f32 0.25, %v2020_v62  ;;  %v4652_v0 = vadd.f32 -1.0, %v5483_v24  ;;  %v7332_v28 = vrot.slane %v7293_v47, %v8639_v16  ;;  %v7336_v63 = vrot.slane %v7293_v47, %v8640_v18 }
 0x228   : > { %v7338_v2 = vmul.f32 0.25, %v2021_v34  ;;  %5490 = vpow2.f32 %v2840_v45  ;;  %v2848_v19 = vmul.f32 1.442695, %v2761_v37  ;;  %v2067_v50 = vmul.f32 %v7317_v3, %v6808_v1 }
 0x229   : > { %8654 = vst [vmem:[#allocation28_spill] sm:$0xff] %v7328_v46  ;;  %v7343_v36 = vadd.f32 %v8656_v21, %v1925_v39  ;;  %v2069_v62 = vmul.f32 %v7317_v3, %v6825_v43  ;;  %v2115_v16 = vmul.f32 %v7336_v63, %v6952_v42  ;;  %v2117_v18 = vmul.f32 %v7336_v63, %v6968_v53 }
 0x22a   : > { %8655 = vst [vmem:[#allocation29_spill] sm:$0xff] %v7338_v2  ;;  %v7351_v24 = vmul.f32 0.25, %v2022_v29  ;;  %v7356_v34 = vsel %vm1287_vm14, %v7178_v59, %v4653_v55  ;;  %v4654_v32 = vadd.f32 -1.0, %v5485_v35  ;;  %5492 = vpow2.f32 %v2848_v19  ;;  %v8660_v35 = vld [vmem:[#allocation36_spill] sm:$0xff]  ;;  %v8661_v2 = vld [vmem:[#allocation34_spill] sm:$0xff] }
 0x22b   : > { %8657 = vst [vmem:[#allocation30_spill] sm:$0xff] %v7343_v36  ;;  %8659 = vst [vmem:[#allocation31_spill] sm:$0xff] %v7356_v34  ;;  %v1926_v60 = vsel %vm1286_vm15, %v7187_v10, %v4652_v0  ;;  %v2123_v39 = vadd.f32 %v2115_v16, %v2067_v50  ;;  %v2125_v37 = vadd.f32 %v2117_v18, %v2069_v62  ;;  %vm2675_vm1 = vcmp.gt.f32.partialorder %v7272_v58, 0.0 }
 0x22c   : > { %8658 = vst [vmem:[#allocation35_spill] sm:$0xff] %v7351_v24  ;;  %v7363_v45 = vrot.slane %v7293_v47, %v8643_v20  ;;  %v2072_v29 = vmul.f32 %v7215_v4, %v6883_v23  ;;  %v2074_v59 = vmul.f32 %v7215_v4, %v6939_v13  ;;  %v2120_v55 = vmul.f32 %v7233_v38, %v7054_v5 }
 0x22d   : > { %v2122_v10 = vmul.f32 %v7233_v38, %v7072_v56  ;;  %vm2679_vm2 = vcmp.gt.f32.partialorder %v7275_v7, 0.0  ;;  %v7376_v0 = vadd.f32 %v8660_v35, %v2123_v39  ;;  %v7379_v20 = vadd.f32 %v8660_v35, %v2125_v37 }
 0x22e   : > { %v2139_v19 = vmul.f32 %v7363_v45, %v6952_v42  ;;  %v2141_v50 = vmul.f32 %v7363_v45, %v6968_v53  ;;  %v2091_v21 = vmul.f32 %v7332_v28, %v6808_v1  ;;  %v2093_v62 = vmul.f32 %v7332_v28, %v6825_v43 }
 0x22f   : > { %v2128_v16 = vadd.f32 %v2120_v55, %v2072_v29  ;;  %v2130_v18 = vadd.f32 %v2122_v10, %v2074_v59  ;;  %v1992_v39 = vadd.f32 %v8661_v2, %v1926_v60  ;;  %v1928_v37 = vsel %vm1288_vm0, %v7190_v30, %v4654_v32  ;;  %v8663_v55 = vld [vmem:[#allocation37_spill] sm:$0xff] }
 0x230   : > { %v2754_v24 = vmin.f32 %v7376_v0, 0.0  ;;  %v2758_v54 = vmin.f32 %v7379_v20, 0.0  ;;  %vm2677_vm3 = vcmp.gt.f32.partialorder %v7303_v57, 0.0  ;;  %v2147_v46 = vadd.f32 %v2139_v19, %v2091_v21 }
 0x231   : > { %v2149_v48 = vadd.f32 %v2141_v50, %v2093_v62  ;;  %v7397_v25 = vadd.f32 %v8645_v9, %v2128_v16  ;;  %v7400_v29 = vadd.f32 %v8645_v9, %v2130_v18  ;;  %vm2681_vm4 = vcmp.gt.f32.partialorder %v7309_v14, 0.0 }
 0x232   : > { %v7405_v2 = vrot.slane %v7293_v47, %v8651_v49  ;;  %v7409_v30 = vrot.slane %v7293_v47, %v8653_v6  ;;  %v2834_v32 = vmul.f32 1.442695, %v2754_v24  ;;  %v2842_v60 = vmul.f32 1.442695, %v2758_v54  ;;  %v5487_v59 = vpop.eup %5486 }
 0x233   : > { %v7412_v10 = vadd.f32 %v8663_v55, %v2147_v46  ;;  %v7415_v19 = vadd.f32 %v8663_v55, %v2149_v48  ;;  %v2096_v50 = vmul.f32 %v7229_v51, %v6883_v23  ;;  %v2144_v49 = vmul.f32 %v7256_v27, %v7054_v5  ;;  %v5489_v21 = vpop.eup %5488 }
 0x234   : > { %8662 = vst [vmem:[#allocation32_spill] sm:$0xff] %v7409_v30  ;;  %v4657_v62 = vadd.f32 -1.0, %v5487_v59  ;;  %5494 = vpow2.f32 %v2834_v32  ;;  %v2763_v6 = vmin.f32 %v7397_v25, 0.0  ;;  %v2767_v54 = vmin.f32 %v7400_v29, 0.0 }
 0x235   : > { %v4661_v24 = vadd.f32 -1.0, %v5489_v21  ;;  %5496 = vpow2.f32 %v2842_v60  ;;  %v2098_v46 = vmul.f32 %v7229_v51, %v6939_v13  ;;  %v2146_v48 = vmul.f32 %v7256_v27, %v7072_v56  ;;  %v5491_v16 = vpop.eup %5490 }
 0x236   : > { %v3075_v18 = vsel %vm2675_vm1, %v7272_v58, %v4657_v62  ;;  %v2756_v59 = vmin.f32 %v7412_v10, 0.0  ;;  %v2760_v32 = vmin.f32 %v7415_v19, 0.0  ;;  %v2852_v47 = vmul.f32 1.442695, %v2763_v6 }
 0x237   : > { %v3079_v60 = vsel %vm2679_vm2, %v7275_v7, %v4661_v24  ;;  %v4659_v21 = vadd.f32 -1.0, %v5491_v16  ;;  %v2860_v5 = vmul.f32 1.442695, %v2767_v54  ;;  %v2152_v13 = vadd.f32 %v2144_v49, %v2096_v50  ;;  %v5493_v23 = vpop.eup %5492 }
 0x238   : > { %v3155_v36 = vpack.c.bf16 %v3079_v60, %v3075_v18  ;;  %v2838_v56 = vmul.f32 1.442695, %v2756_v59  ;;  %v2846_v34 = vmul.f32 1.442695, %v2760_v32  ;;  %5498 = vpow2.f32 %v2852_v47 }
 0x239   : > { %v7435_v30 = vadd.f32 %v1992_v39, %v1928_v37  ;;  %v4663_v58 = vadd.f32 -1.0, %v5493_v23  ;;  %5500 = vpow2.f32 %v2860_v5  ;;  %v2154_v62 = vadd.f32 %v2146_v48, %v2098_v46 }
 0x23a   : > { %3483 = vmatprep.mubr.bf16.mxu0 %v3155_v36  ;;  %v3077_v6 = vsel %vm2677_vm3, %v7303_v57, %v4659_v21  ;;  %5502 = vpow2.f32 %v2838_v56  ;;  %v7441_v7 = vadd.f32 %v8652_v41, %v2152_v13  ;;  %v2071_v50 = vmul.f32 %v7317_v3, %v6866_v40 }
 0x23b   : > { %v3081_v47 = vsel %vm2681_vm4, %v7309_v14, %v4663_v58  ;;  %5504 = vpow2.f32 %v2846_v34  ;;  %v7449_v23 = vadd.f32 %v8652_v41, %v2154_v62  ;;  %v2119_v5 = vmul.f32 %v7336_v63, %v7000_v11 }
 0x23c   : > { %v3157_v36 = vpack.c.bf16 %v3081_v47, %v3077_v6  ;;  %v2765_v56 = vmin.f32 %v7441_v7, 0.0  ;;  %v2073_v13 = vmul.f32 %v7317_v3, %v6886_v26  ;;  %v2121_v57 = vmul.f32 %v7336_v63, %v7056_v8 }
 0x23d   : > { %vm2674_vm5 = vcmp.gt.f32.partialorder %v7376_v0, 0.0  ;;  %vm2678_vm6 = vcmp.gt.f32.partialorder %v7379_v20, 0.0  ;;  %v2769_v14 = vmin.f32 %v7449_v23, 0.0  ;;  %v2127_v34 = vadd.f32 %v2119_v5, %v2071_v50 }
 0x23e   : > { %3596 = vmatprep.mubr.bf16.mxu1 %v3157_v36  ;;  %v2856_v39 = vmul.f32 1.442695, %v2765_v56  ;;  %v2129_v37 = vadd.f32 %v2121_v57, %v2073_v13  ;;  %v2095_v49 = vmul.f32 %v7332_v28, %v6866_v40  ;;  %v2143_v54 = vmul.f32 %v7363_v45, %v7000_v11 }
 0x23f   : > { %v2864_v24 = vmul.f32 1.442695, %v2769_v14  ;;  %v7466_v46 = vadd.f32 %v8660_v35, %v2127_v34  ;;  %v2097_v48 = vmul.f32 %v7332_v28, %v6886_v26  ;;  %v2145_v16 = vmul.f32 %v7363_v45, %v7056_v8 }
 0x240   : > { %vm2683_vm7 = vcmp.gt.f32.partialorder %v7397_v25, 0.0  ;;  %5506 = vpow2.f32 %v2856_v39  ;;  %v7474_v18 = vadd.f32 %v8660_v35, %v2129_v37  ;;  %v2151_v59 = vadd.f32 %v2143_v54, %v2095_v49 }
 0x241   : > { %v5495_v32 = vpop.eup %5494  ;;  %vm2687_vm8 = vcmp.gt.f32.partialorder %v7400_v29, 0.0  ;;  %5508 = vpow2.f32 %v2864_v24  ;;  %v2762_v60 = vmin.f32 %v7466_v46, 0.0  ;;  %v2153_v21 = vadd.f32 %v2145_v16, %v2097_v48 }
 0x242   : > { %v5497_v58 = vpop.eup %5496  ;;  %v4656_v62 = vadd.f32 -1.0, %v5495_v32  ;;  %vm2676_vm9 = vcmp.gt.f32.partialorder %v7412_v10, 0.0  ;;  %v2766_v6 = vmin.f32 %v7474_v18, 0.0  ;;  %v7481_v50 = vadd.f32 %v8663_v55, %v2151_v59 }
 0x243   : > { %v4660_v47 = vadd.f32 -1.0, %v5497_v58  ;;  %vm2680_vm10 = vcmp.gt.f32.partialorder %v7415_v19, 0.0  ;;  %v2850_v5 = vmul.f32 1.442695, %v2762_v60  ;;  %v7485_v36 = vadd.f32 %v8663_v55, %v2153_v21 }
 0x244   : > { %v2858_v56 = vmul.f32 1.442695, %v2766_v6  ;;  %v2764_v13 = vmin.f32 %v7481_v50, 0.0  ;;  %v2164_v57 = vmul.f32 %v7300_v44, %v6812_v33  ;;  %v2204_v14 = vmul.f32 %v7215_v4, %v6954_v22 }
 0x245   : > { %v5499_v34 = vpop.eup %5498  ;;  %v3074_v39 = vsel %vm2674_vm5, %v7376_v0, %v4656_v62  ;;  %v3078_v37 = vsel %vm2678_vm6, %v7379_v20, %v4660_v47  ;;  %5510 = vpow2.f32 %v2850_v5  ;;  %v2768_v49 = vmin.f32 %v7485_v36, 0.0 }
 0x246   : > { %v5501_v54 = vpop.eup %5500  ;;  %v3154_v24 = vpack.c.bf16 %v3078_v37, %v3074_v39  ;;  %v4665_v48 = vadd.f32 -1.0, %v5499_v34  ;;  %5512 = vpow2.f32 %v2858_v56  ;;  %v2854_v16 = vmul.f32 1.442695, %v2764_v13 }
 0x247   : > { %v5503_v59 = vpop.eup %5502  ;;  %v4669_v32 = vadd.f32 -1.0, %v5501_v54  ;;  %vm2685_vm11 = vcmp.gt.f32.partialorder %v7441_v7, 0.0  ;;  %v2862_v60 = vmul.f32 1.442695, %v2768_v49  ;;  %v2166_v0 = vmul.f32 %v7300_v44, %v6846_v31 }
 0x248   : > { %v2206_v21 = vmul.f32 %v7215_v4, %v6998_v15  ;;  %v5505_v20 = vpop.eup %5504  ;;  %3484 = vmatmul.mubr.bf16.vlgmr.msra.gmra.mxu0 %v3154_v24  ;;  %v4658_v58 = vadd.f32 -1.0, %v5503_v59  ;;  %vm2689_vm12 = vcmp.gt.f32.partialorder %v7449_v23, 0.0  ;;  %5514 = vpow2.f32 %v2854_v16 }
 0x249   : > { %v2212_v62 = vadd.f32 %v2204_v14, %v2164_v57  ;;  %v2236_v6 = vmul.f32 %v7233_v38, %v7114_v61  ;;  %v4662_v47 = vadd.f32 -1.0, %v5505_v20  ;;  %v3083_v5 = vsel %vm2683_vm7, %v7397_v25, %v4665_v48 }
 0x24a   : > { %v3087_v56 = vsel %vm2687_vm8, %v7400_v29, %v4669_v32  ;;  %5516 = vpow2.f32 %v2862_v60  ;;  %v2214_v34 = vadd.f32 %v2206_v21, %v2166_v0  ;;  %v2238_v39 = vmul.f32 %v7233_v38, %v7145_v12 }
 0x24b   : > { %v3159_v13 = vpack.c.bf16 %v3087_v56, %v3083_v5  ;;  %v2244_v37 = vadd.f32 %v2236_v6, %v2212_v62  ;;  %v3076_v57 = vsel %vm2676_vm9, %v7412_v10, %v4658_v58  ;;  %v3080_v14 = vsel %vm2680_vm10, %v7415_v19, %v4662_v47 }
 0x24c   : > { %v2188_v25 = vmul.f32 %v7324_v52, %v6812_v33  ;;  %v2220_v29 = vmul.f32 %v7229_v51, %v6954_v22  ;;  %v3156_v49 = vpack.c.bf16 %v3080_v14, %v3076_v57  ;;  %v2246_v54 = vadd.f32 %v2238_v39, %v2214_v34 }
 0x24d   : > { %3491 = vmatprep.mubr.bf16.mxu0 %v3159_v13  ;;  %v7526_v24 = vadd.f32 %v8645_v9, %v2244_v37  ;;  %v2222_v48 = vmul.f32 %v7229_v51, %v6998_v15  ;;  %v5507_v10 = vpop.eup %5506  ;;  %v2190_v16 = vmul.f32 %v7324_v52, %v6846_v31  ;;  %v2252_v59 = vmul.f32 %v7256_v27, %v7114_v61 }
 0x24e   : > { %v2228_v19 = vadd.f32 %v2220_v29, %v2188_v25  ;;  %v2254_v32 = vmul.f32 %v7256_v27, %v7145_v12  ;;  %v5509_v60 = vpop.eup %5508  ;;  %3597 = vmatmul.mubr.bf16.vlgmr.msra.gmra.mxu1 %v3156_v49  ;;  %v4667_v0 = vadd.f32 -1.0, %v5507_v10  ;;  %vm2682_vm13 = vcmp.gt.f32.partialorder %v7466_v46, 0.0 }
 0x24f   : > { %v7538_v21 = vadd.f32 %v8645_v9, %v2246_v54  ;;  %v2771_v20 = vmin.f32 %v7526_v24, 0.0  ;;  %v4671_v58 = vadd.f32 -1.0, %v5509_v60  ;;  %vm2686_vm14 = vcmp.gt.f32.partialorder %v7474_v18, 0.0 }
 0x250   : > { %v2230_v62 = vadd.f32 %v2222_v48, %v2190_v16  ;;  %v2260_v6 = vadd.f32 %v2252_v59, %v2228_v19  ;;  %v3085_v47 = vsel %vm2685_vm11, %v7441_v7, %v4667_v0  ;;  %v2163_v13 = vmul.f32 %v7405_v2, %v6808_v1 }
 0x251   : > { %v2775_v5 = vmin.f32 %v7538_v21, 0.0  ;;  %v2868_v56 = vmul.f32 1.442695, %v2771_v20  ;;  %v3089_v34 = vsel %vm2689_vm12, %v7449_v23, %v4671_v58  ;;  %v2203_v57 = vmul.f32 %v7317_v3, %v6952_v42 }
 0x252   : > { %v2262_v39 = vadd.f32 %v2254_v32, %v2230_v62  ;;  %v7552_v37 = vadd.f32 %v8652_v41, %v2260_v6  ;;  %v5511_v14 = vpop.eup %5510  ;;  %v3161_v25 = vpack.c.bf16 %v3089_v34, %v3085_v47  ;;  %v2205_v29 = vmul.f32 %v7317_v3, %v6968_v53  ;;  %v8664_v47 = vld [vmem:[#allocation44_spill] sm:$0xff] }
 0x253   : > { %5518 = vpow2.f32 %v2868_v56  ;;  %v2876_v7 = vmul.f32 1.442695, %v2775_v5  ;;  %v5513_v49 = vpop.eup %5512  ;;  %v4664_v54 = vadd.f32 -1.0, %v5511_v14  ;;  %v2165_v10 = vmul.f32 %v7405_v2, %v6825_v43 }
 0x254   : > { %v7559_v48 = vadd.f32 %v8652_v41, %v2262_v39  ;;  %v2773_v23 = vmin.f32 %v7552_v37, 0.0  ;;  %3604 = vmatprep.mubr.bf16.mxu1 %v3161_v25  ;;  %v4668_v16 = vadd.f32 -1.0, %v5513_v49  ;;  %vm2684_vm15 = vcmp.gt.f32.partialorder %v7481_v50, 0.0  ;;  %v8665_v25 = vld [vmem:[#allocation32_spill] sm:$0xff] }
 0x255   : > { %5520 = vpow2.f32 %v2876_v7  ;;  %v2211_v19 = vadd.f32 %v2203_v57, %v2163_v13  ;;  %v5515_v59 = vpop.eup %5514  ;;  %v3082_v32 = vsel %vm2682_vm13, %v7466_v46, %v4664_v54  ;;  %v2213_v20 = vadd.f32 %v2205_v29, %v2165_v10 }
 0x256   : > { %v2777_v60 = vmin.f32 %v7559_v48, 0.0  ;;  %v2872_v0 = vmul.f32 1.442695, %v2773_v23  ;;  %v3086_v62 = vsel %vm2686_vm14, %v7474_v18, %v4668_v16  ;;  %v4666_v6 = vadd.f32 -1.0, %v5515_v59  ;;  %v8666_v59 = vld [vmem:[#allocation31_spill] sm:$0xff] }
 0x257   : > { %v5517_v58 = vpop.eup %5516  ;;  %v2235_v5 = vmul.f32 %v7336_v63, %v8664_v47  ;;  %v2237_v56 = vmul.f32 %v7336_v63, %v7126_v17  ;;  %v3158_v13 = vpack.c.bf16 %v3086_v62, %v3082_v32  ;;  %vm2688_vm0 = vcmp.gt.f32.partialorder %v7485_v36, 0.0  ;;  %v8667_v32 = vld [vmem:[#allocation30_spill] sm:$0xff] }
 0x258   : > { %v4670_v34 = vadd.f32 -1.0, %v5517_v58  ;;  %5522 = vpow2.f32 %v2872_v0  ;;  %v2880_v46 = vmul.f32 1.442695, %v2777_v60  ;;  %v3084_v39 = vsel %vm2684_vm15, %v7481_v50, %v4666_v6  ;;  %v8669_v58 = vld [vmem:[#allocation39_spill] sm:$0xff] }
 0x259   : > { %v2243_v57 = vadd.f32 %v2235_v5, %v2211_v19  ;;  %v2245_v14 = vadd.f32 %v2237_v56, %v2213_v20  ;;  %3492 = vmatmul.mubr.bf16.gmra.mxu0 %v3158_v13  ;;  %v2187_v7 = vmul.f32 %v8665_v25, %v6808_v1  ;;  %v2219_v29 = vmul.f32 %v7332_v28, %v6952_v42  ;;  %v8670_v56 = vld [vmem:[#allocation41_spill] sm:$0xff] }
 0x25a   : > { %v3088_v18 = vsel %vm2688_vm0, %v7485_v36, %v4670_v34  ;;  %5524 = vpow2.f32 %v2880_v46  ;;  %v2221_v50 = vmul.f32 %v7332_v28, %v6968_v53  ;;  %v2189_v36 = vmul.f32 %v8665_v25, %v6825_v43  ;;  %v8671_v34 = vld [vmem:[#allocation18_spill] sm:$0xff] }
 0x25b   : > { %v3160_v49 = vpack.c.bf16 %v3088_v18, %v3084_v39  ;;  %v7586_v54 = vadd.f32 %v8660_v35, %v2243_v57  ;;  %v7589_v23 = vadd.f32 %v8660_v35, %v2245_v14  ;;  %v2227_v10 = vadd.f32 %v2219_v29, %v2187_v7  ;;  %v8672_v14 = vld [vmem:[#allocation43_spill] sm:$0xff] }
 0x25c   : > { %v2251_v16 = vmul.f32 %v7363_v45, %v8664_v47  ;;  %v2253_v19 = vmul.f32 %v7363_v45, %v7126_v17  ;;  %v7601_v60 = vadd.f32 %v8667_v32, %v8666_v59  ;;  %v2168_v62 = vmul.f32 %v7300_v44, %v8669_v58  ;;  %v8673_v7 = vld [vmem:[#allocation23_spill] sm:$0xff] }
 0x25d   : > { %3605 = vmatmul.mubr.bf16.gmra.mxu1 %v3160_v49  ;;  %v2770_v0 = vmin.f32 %v7586_v54, 0.0  ;;  %v2774_v20 = vmin.f32 %v7589_v23, 0.0  ;;  %v2229_v6 = vadd.f32 %v2221_v50, %v2189_v36  ;;  %v2170_v13 = vmul.f32 %v7300_v44, %v8670_v56 }
 0x25e   : > { %8668 = vst [vmem:[#allocation14_spill] sm:$0xff] %v7601_v60  ;;  %v2259_v5 = vadd.f32 %v2251_v16, %v2227_v10  ;;  %v2208_v46 = vmul.f32 %v7215_v4, %v8671_v34  ;;  %v2210_v18 = vmul.f32 %v7215_v4, %v8672_v14  ;;  %v2240_v29 = vmul.f32 %v7233_v38, %v8673_v7  ;;  %v8675_v10 = vld [vmem:[#allocation25_spill] sm:$0xff] }
 0x25f   : > { %v2866_v39 = vmul.f32 1.442695, %v2770_v0  ;;  %v2874_v57 = vmul.f32 1.442695, %v2774_v20  ;;  %v7616_v59 = vmul.f32 0.25, %v7435_v30  ;;  %v2261_v50 = vadd.f32 %v2253_v19, %v2229_v6 }
 0x260   : > { %v5519_v49 = vpop.eup %5518  ;;  %v7619_v36 = vadd.f32 %v8663_v55, %v2259_v5  ;;  %v2242_v16 = vmul.f32 %v7233_v38, %v8675_v10  ;;  %v2216_v0 = vadd.f32 %v2208_v46, %v2168_v62  ;;  %v2218_v20 = vadd.f32 %v2210_v18, %v2170_v13 }
 0x261   : > { %8674 = vst [vmem:[#allocation38_spill] sm:$0xff] %v7616_v59  ;;  %v4673_v32 = vadd.f32 -1.0, %v5519_v49  ;;  %5526 = vpow2.f32 %v2866_v39  ;;  %vm2691_vm1 = vcmp.gt.f32.partialorder %v7526_v24, 0.0  ;;  %v7625_v17 = vadd.f32 %v8663_v55, %v2261_v50 }
 0x262   : > { %v5521_v60 = vpop.eup %5520  ;;  %5528 = vpow2.f32 %v2874_v57  ;;  %v2772_v30 = vmin.f32 %v7619_v36, 0.0  ;;  %vm2695_vm2 = vcmp.gt.f32.partialorder %v7538_v21, 0.0  ;;  %v2248_v6 = vadd.f32 %v2240_v29, %v2216_v0 }
 0x263   : > { %v4677_v19 = vadd.f32 -1.0, %v5521_v60  ;;  %v2250_v5 = vadd.f32 %v2242_v16, %v2218_v20  ;;  %v3091_v59 = vsel %vm2691_vm1, %v7526_v24, %v4673_v32  ;;  %vm2693_vm3 = vcmp.gt.f32.partialorder %v7552_v37, 0.0 }
 0x264   : > { %v2776_v62 = vmin.f32 %v7625_v17, 0.0  ;;  %v2870_v13 = vmul.f32 1.442695, %v2772_v30  ;;  %v7634_v57 = vadd.f32 %v8645_v9, %v2248_v6  ;;  %v2224_v60 = vmul.f32 %v7229_v51, %v8671_v34 }
 0x265   : > { %v5523_v46 = vpop.eup %5522  ;;  %v3095_v39 = vsel %vm2695_vm2, %v7538_v21, %v4677_v19  ;;  %v7637_v18 = vadd.f32 %v8645_v9, %v2250_v5  ;;  %vm2697_vm4 = vcmp.gt.f32.partialorder %v7559_v48, 0.0  ;;  %v2192_v32 = vmul.f32 %v7324_v52, %v8669_v58 }
 0x266   : > { %v3163_v29 = vpack.c.bf16 %v3095_v39, %v3091_v59  ;;  %v4675_v49 = vadd.f32 -1.0, %v5523_v46  ;;  %5530 = vpow2.f32 %v2870_v13  ;;  %v2878_v24 = vmul.f32 1.442695, %v2776_v62 }
 0x267   : > { %v5525_v50 = vpop.eup %5524  ;;  %v2779_v16 = vmin.f32 %v7634_v57, 0.0  ;;  %v2783_v21 = vmin.f32 %v7637_v18, 0.0  ;;  %v2194_v20 = vmul.f32 %v7324_v52, %v8670_v56  ;;  %v2226_v59 = vmul.f32 %v7229_v51, %v8672_v14 }
 0x268   : > { %3499 = vmatprep.mubr.bf16.mxu0 %v3163_v29  ;;  %v4679_v0 = vadd.f32 -1.0, %v5525_v50  ;;  %5532 = vpow2.f32 %v2878_v24  ;;  %v2232_v6 = vadd.f32 %v2224_v60, %v2192_v32  ;;  %v2256_v5 = vmul.f32 %v7256_v27, %v8673_v7 }
 0x269   : > { %v2884_v30 = vmul.f32 1.442695, %v2779_v16  ;;  %v2892_v19 = vmul.f32 1.442695, %v2783_v21  ;;  %v3093_v62 = vsel %vm2693_vm3, %v7552_v37, %v4675_v49  ;;  %v2234_v46 = vadd.f32 %v2226_v59, %v2194_v20  ;;  %v8676_v21 = vld [vmem:[#allocation21_spill] sm:$0xff] }
 0x26a   : > { %v3097_v13 = vsel %vm2697_vm4, %v7559_v48, %v4679_v0  ;;  %v2258_v39 = vmul.f32 %v7256_v27, %v8675_v10  ;;  %v2264_v24 = vadd.f32 %v2256_v5, %v2232_v6  ;;  %v2167_v50 = vmul.f32 %v7405_v2, %v6866_v40  ;;  %v8677_v0 = vld [vmem:[#allocation24_spill] sm:$0xff] }
 0x26b   : > { %v3165_v29 = vpack.c.bf16 %v3097_v13, %v3093_v62  ;;  %5534 = vpow2.f32 %v2884_v30  ;;  %v2207_v16 = vmul.f32 %v7317_v3, %v7000_v11  ;;  %v2209_v37 = vmul.f32 %v7317_v3, %v7056_v8 }
 0x26c   : > { %5536 = vpow2.f32 %v2892_v19  ;;  %v2266_v60 = vadd.f32 %v2258_v39, %v2234_v46  ;;  %v7665_v48 = vadd.f32 %v8652_v41, %v2264_v24  ;;  %v2169_v49 = vmul.f32 %v7405_v2, %v6886_v26 }
 0x26d   : > { %3612 = vmatprep.mubr.bf16.mxu1 %v3165_v29  ;;  %v2239_v32 = vmul.f32 %v7336_v63, %v8676_v21  ;;  %v2241_v20 = vmul.f32 %v7336_v63, %v8677_v0  ;;  %vm2690_vm5 = vcmp.gt.f32.partialorder %v7586_v54, 0.0  ;;  %vm2694_vm6 = vcmp.gt.f32.partialorder %v7589_v23, 0.0 }
 0x26e   : > { %v5527_v59 = vpop.eup %5526  ;;  %v7676_v30 = vadd.f32 %v8652_v41, %v2266_v60  ;;  %v2215_v19 = vadd.f32 %v2207_v16, %v2167_v50  ;;  %vm2692_vm7 = vcmp.gt.f32.partialorder %v7619_v36, 0.0  ;;  %vm2696_vm8 = vcmp.gt.f32.partialorder %v7625_v17, 0.0 }
 0x26f   : > { %v5529_v6 = vpop.eup %5528  ;;  %v4672_v5 = vadd.f32 -1.0, %v5527_v59  ;;  %v2781_v62 = vmin.f32 %v7665_v48, 0.0  ;;  %v2217_v13 = vadd.f32 %v2209_v37, %v2169_v49  ;;  %v2223_v24 = vmul.f32 %v7332_v28, %v7000_v11 }
 0x270   : > { %v4676_v46 = vadd.f32 -1.0, %v5529_v6  ;;  %v2785_v39 = vmin.f32 %v7676_v30, 0.0  ;;  %v2247_v29 = vadd.f32 %v2239_v32, %v2215_v19  ;;  %v2191_v50 = vmul.f32 %v8665_v25, %v6866_v40 }
 0x271   : > { %v2888_v10 = vmul.f32 1.442695, %v2781_v62  ;;  %v2249_v60 = vadd.f32 %v2241_v20, %v2217_v13  ;;  %v2225_v16 = vmul.f32 %v7332_v28, %v7056_v8  ;;  %v3090_v59 = vsel %vm2690_vm5, %v7586_v54, %v4672_v5  ;;  %v8681_v8 = vld [vmem:[#allocation28_spill] sm:$0xff] }
 0x272   : > { %v3094_v37 = vsel %vm2694_vm6, %v7589_v23, %v4676_v46  ;;  %v2896_v49 = vmul.f32 1.442695, %v2785_v39  ;;  %v7695_v32 = vadd.f32 %v8660_v35, %v2247_v29  ;;  %vm2699_vm9 = vcmp.gt.f32.partialorder %v7634_v57, 0.0 }
 0x273   : > { %v5531_v19 = vpop.eup %5530  ;;  %v3162_v20 = vpack.c.bf16 %v3094_v37, %v3090_v59  ;;  %5538 = vpow2.f32 %v2888_v10  ;;  %v7699_v6 = vadd.f32 %v8660_v35, %v2249_v60  ;;  %v2193_v62 = vmul.f32 %v8665_v25, %v6886_v26  ;;  %v8678_v37 = vld [vmem:[#allocation12_spill] sm:$0xff] }
 0x274   : > { %v4674_v54 = vadd.f32 -1.0, %v5531_v19  ;;  %5540 = vpow2.f32 %v2896_v49  ;;  %v2778_v5 = vmin.f32 %v7695_v32, 0.0  ;;  %v2231_v23 = vadd.f32 %v2223_v24, %v2191_v50  ;;  %v8679_v49 = vld [vmem:[#allocation22_spill] sm:$0xff] }
 0x275   : > { %v5533_v13 = vpop.eup %5532  ;;  %3500 = vmatmul.mubr.bf16.gmra.mxu0 %v3162_v20  ;;  %v2782_v46 = vmin.f32 %v7699_v6, 0.0  ;;  %v2233_v39 = vadd.f32 %v2225_v16, %v2193_v62  ;;  %v2255_v29 = vmul.f32 %v7363_v45, %v8676_v21  ;;  %v2257_v10 = vmul.f32 %v7363_v45, %v8677_v0 }
 0x276   : > { %v4678_v60 = vadd.f32 -1.0, %v5533_v13  ;;  %vm2703_vm10 = vcmp.gt.f32.partialorder %v7637_v18, 0.0  ;;  %v2882_v59 = vmul.f32 1.442695, %v2778_v5  ;;  %v7712_v19 = vrot.slane %v8679_v49, %v8678_v37 }
 0x277   : > { %v2890_v24 = vmul.f32 1.442695, %v2782_v46  ;;  %v2263_v50 = vadd.f32 %v2255_v29, %v2231_v23  ;;  %v2265_v20 = vadd.f32 %v2257_v10, %v2233_v39  ;;  %v2316_v16 = vmul.f32 %v7300_v44, %v6954_v22 }
 0x278   : > { %v5535_v62 = vpop.eup %5534  ;;  %v3092_v21 = vsel %vm2692_vm7, %v7619_v36, %v4674_v54  ;;  %v3096_v13 = vsel %vm2696_vm8, %v7625_v17, %v4678_v60  ;;  %5542 = vpow2.f32 %v2882_v59  ;;  %v2276_v5 = vmul.f32 %v7712_v19, %v6812_v33 }
 0x279   : > { %v5537_v0 = vpop.eup %5536  ;;  %v3164_v46 = vpack.c.bf16 %v3096_v13, %v3092_v21  ;;  %v4681_v23 = vadd.f32 -1.0, %v5535_v62  ;;  %5544 = vpow2.f32 %v2890_v24  ;;  %v7725_v39 = vadd.f32 %v8663_v55, %v2263_v50 }
 0x27a   : > { %v4685_v29 = vadd.f32 -1.0, %v5537_v0  ;;  %v7728_v10 = vadd.f32 %v8663_v55, %v2265_v20  ;;  %v2278_v36 = vmul.f32 %v7712_v19, %v6846_v31  ;;  %v2318_v17 = vmul.f32 %v7300_v44, %v6998_v15 }
 0x27b   : > { %3613 = vmatmul.mubr.bf16.gmra.mxu1 %v3164_v46  ;;  %vm2701_vm11 = vcmp.gt.f32.partialorder %v7665_v48, 0.0  ;;  %vm2705_vm12 = vcmp.gt.f32.partialorder %v7676_v30, 0.0  ;;  %v2780_v21 = vmin.f32 %v7725_v39, 0.0  ;;  %v2324_v54 = vadd.f32 %v2316_v16, %v2276_v5  ;;  %v8680_v46 = vld [vmem:[#allocation13_spill] sm:$0xff] }
 0x27c   : > { %v2348_v0 = vmul.f32 %v7215_v4, %v7114_v61  ;;  %v3099_v60 = vsel %vm2699_vm9, %v7634_v57, %v4681_v23  ;;  %v3103_v59 = vsel %vm2703_vm10, %v7637_v18, %v4685_v29  ;;  %v2784_v24 = vmin.f32 %v7728_v10, 0.0  ;;  %v8682_v23 = vld [vmem:[#allocation16_spill] sm:$0xff] }
 0x27d   : > { %v2326_v50 = vadd.f32 %v2318_v17, %v2278_v36  ;;  %v3167_v20 = vpack.c.bf16 %v3103_v59, %v3099_v60  ;;  %v2886_v62 = vmul.f32 1.442695, %v2780_v21  ;;  %v2350_v13 = vmul.f32 %v7215_v4, %v7145_v12 }
 0x27e   : > { %v2356_v16 = vadd.f32 %v2348_v0, %v2324_v54  ;;  %v2894_v5 = vmul.f32 1.442695, %v2784_v24  ;;  %v2380_v26 = vmul.f32 %v7233_v38, %v8680_v46  ;;  %v2382_v57 = vmul.f32 %v7233_v38, %v8681_v8 }
 0x27f   : > { %v7754_v11 = vrot.slane %v8679_v49, %v8682_v23  ;;  %3507 = vmatprep.mubr.bf16.mxu0 %v3167_v20  ;;  %5546 = vpow2.f32 %v2886_v62  ;;  %v2358_v18 = vadd.f32 %v2350_v13, %v2326_v50  ;;  %v2332_v29 = vmul.f32 %v7324_v52, %v6954_v22 }
 0x280   : > { %v2334_v36 = vmul.f32 %v7324_v52, %v6998_v15  ;;  %v5539_v17 = vpop.eup %5538  ;;  %5548 = vpow2.f32 %v2894_v5  ;;  %v2388_v21 = vadd.f32 %v2380_v26, %v2356_v16  ;;  %v2364_v24 = vmul.f32 %v7229_v51, %v7114_v61 }
 0x281   : > { %v2300_v54 = vmul.f32 %v7754_v11, %v6812_v33  ;;  %v2302_v0 = vmul.f32 %v7754_v11, %v6846_v31  ;;  %v5541_v49 = vpop.eup %5540  ;;  %v4683_v60 = vadd.f32 -1.0, %v5539_v17  ;;  %v2390_v59 = vadd.f32 %v2382_v57, %v2358_v18 }
 0x282   : > { %v2366_v50 = vmul.f32 %v7229_v51, %v7145_v12  ;;  %v4687_v20 = vadd.f32 -1.0, %v5541_v49  ;;  %vm2698_vm13 = vcmp.gt.f32.partialorder %v7695_v32, 0.0  ;;  %v7770_v26 = vadd.f32 %v8645_v9, %v2388_v21 }
 0x283   : > { %v2340_v62 = vadd.f32 %v2332_v29, %v2300_v54  ;;  %v7773_v33 = vadd.f32 %v8645_v9, %v2390_v59  ;;  %v2342_v31 = vadd.f32 %v2334_v36, %v2302_v0  ;;  %v2396_v13 = vmul.f32 %v7256_v27, %v8680_v46 }
 0x284   : > { %v2398_v16 = vmul.f32 %v7256_v27, %v8681_v8  ;;  %v3101_v5 = vsel %vm2701_vm11, %v7665_v48, %v4683_v60  ;;  %v3105_v57 = vsel %vm2705_vm12, %v7676_v30, %v4687_v20  ;;  %v2787_v18 = vmin.f32 %v7770_v26, 0.0  ;;  %v8683_v48 = vld [vmem:[#allocation17_spill] sm:$0xff] }
 0x285   : > { %v2372_v29 = vadd.f32 %v2364_v24, %v2340_v62  ;;  %v5543_v17 = vpop.eup %5542  ;;  %v3169_v21 = vpack.c.bf16 %v3105_v57, %v3101_v5  ;;  %vm2702_vm14 = vcmp.gt.f32.partialorder %v7699_v6, 0.0  ;;  %v2791_v36 = vmin.f32 %v7773_v33, 0.0 }
 0x286   : > { %v2374_v54 = vadd.f32 %v2366_v50, %v2342_v31  ;;  %v5545_v0 = vpop.eup %5544  ;;  %v4680_v49 = vadd.f32 -1.0, %v5543_v17  ;;  %v2900_v59 = vmul.f32 1.442695, %v2787_v18  ;;  %v7790_v60 = vrot.slane %v8683_v48, %v8678_v37 }
 0x287   : > { %v2404_v8 = vadd.f32 %v2396_v13, %v2372_v29  ;;  %3620 = vmatprep.mubr.bf16.mxu1 %v3169_v21  ;;  %v4684_v30 = vadd.f32 -1.0, %v5545_v0  ;;  %v2908_v20 = vmul.f32 1.442695, %v2791_v36  ;;  %v2315_v24 = vmul.f32 %v7405_v2, %v6952_v42  ;;  %v8684_v21 = vld [vmem:[#allocation20_spill] sm:$0xff] }
 0x288   : > { %v2406_v46 = vadd.f32 %v2398_v16, %v2374_v54  ;;  %v3098_v62 = vsel %vm2698_vm13, %v7695_v32, %v4680_v49  ;;  %vm2700_vm15 = vcmp.gt.f32.partialorder %v7725_v39, 0.0  ;;  %5550 = vpow2.f32 %v2900_v59  ;;  %v8685_v54 = vld [vmem:[#allocation26_spill] sm:$0xff] }
 0x289   : > { %v7799_v50 = vadd.f32 %v8652_v41, %v2404_v8  ;;  %v3102_v37 = vsel %vm2702_vm14, %v7699_v6, %v4684_v30  ;;  %5552 = vpow2.f32 %v2908_v20  ;;  %v2275_v13 = vmul.f32 %v7790_v60, %v6808_v1 }
 0x28a   : > { %v7805_v31 = vadd.f32 %v8652_v41, %v2406_v46  ;;  %v3166_v16 = vpack.c.bf16 %v3102_v37, %v3098_v62  ;;  %v2277_v5 = vmul.f32 %v7790_v60, %v6825_v43  ;;  %v2317_v8 = vmul.f32 %v7405_v2, %v6968_v53  ;;  %v8686_v62 = vld [vmem:[#allocation15_spill] sm:$0xff] }
 0x28b   : > { %v2789_v32 = vmin.f32 %v7799_v50, 0.0  ;;  %vm2704_vm0 = vcmp.gt.f32.partialorder %v7728_v10, 0.0  ;;  %v2323_v57 = vadd.f32 %v2315_v24, %v2275_v13  ;;  %v2347_v46 = vmul.f32 %v7317_v3, %v8664_v47 }
 0x28c   : > { %v2793_v6 = vmin.f32 %v7805_v31, 0.0  ;;  %v5547_v18 = vpop.eup %5546  ;;  %3508 = vmatmul.mubr.bf16.gmra.mxu0 %v3166_v16  ;;  %v2325_v17 = vadd.f32 %v2317_v8, %v2277_v5  ;;  %v2349_v36 = vmul.f32 %v7317_v3, %v8684_v21  ;;  %v2379_v0 = vmul.f32 %v7336_v63, %v8685_v54 }
 0x28d   : > { %v2904_v29 = vmul.f32 1.442695, %v2789_v32  ;;  %v5549_v49 = vpop.eup %5548  ;;  %v4682_v59 = vadd.f32 -1.0, %v5547_v18  ;;  %v2355_v20 = vadd.f32 %v2347_v46, %v2323_v57  ;;  %v2381_v24 = vmul.f32 %v7336_v63, %v8686_v62 }
 0x28e   : > { %v2912_v30 = vmul.f32 1.442695, %v2793_v6  ;;  %v4686_v37 = vadd.f32 -1.0, %v5549_v49  ;;  %v2357_v13 = vadd.f32 %v2349_v36, %v2325_v17  ;;  %v7826_v16 = vrot.slane %v8683_v48, %v8682_v23 }
 0x28f   : > { %5554 = vpow2.f32 %v2904_v29  ;;  %v3100_v32 = vsel %vm2700_vm15, %v7725_v39, %v4682_v59  ;;  %v2387_v5 = vadd.f32 %v2379_v0, %v2355_v20  ;;  %v2331_v8 = vmul.f32 %v8665_v25, %v6952_v42 }
 0x290   : > { %5556 = vpow2.f32 %v2912_v30  ;;  %v3104_v6 = vsel %vm2704_vm0, %v7728_v10, %v4686_v37  ;;  %v2389_v57 = vadd.f32 %v2381_v24, %v2357_v13  ;;  %v2299_v46 = vmul.f32 %v7826_v16, %v6808_v1 }
 0x291   : > { %v2301_v23 = vmul.f32 %v7826_v16, %v6825_v43  ;;  %v3168_v48 = vpack.c.bf16 %v3104_v6, %v3100_v32  ;;  %v7841_v18 = vadd.f32 %v8660_v35, %v2387_v5  ;;  %v2333_v39 = vmul.f32 %v8665_v25, %v6968_v53 }
 0x292   : > { %v2363_v29 = vmul.f32 %v7332_v28, %v8664_v47  ;;  %v7848_v17 = vadd.f32 %v8660_v35, %v2389_v57  ;;  %v2339_v10 = vadd.f32 %v2331_v8, %v2299_v46  ;;  %v2365_v1 = vmul.f32 %v7332_v28, %v8684_v21 }
 0x293   : > { %v2395_v43 = vmul.f32 %v7363_v45, %v8685_v54  ;;  %3621 = vmatmul.mubr.bf16.gmra.mxu1 %v3168_v48  ;;  %vm2707_vm1 = vcmp.gt.f32.partialorder %v7770_v26, 0.0  ;;  %v2786_v36 = vmin.f32 %v7841_v18, 0.0  ;;  %v2341_v0 = vadd.f32 %v2333_v39, %v2301_v23 }
 0x294   : > { %v2397_v49 = vmul.f32 %v7363_v45, %v8686_v62  ;;  %vm2711_vm2 = vcmp.gt.f32.partialorder %v7773_v33, 0.0  ;;  %v2790_v59 = vmin.f32 %v7848_v17, 0.0  ;;  %v2371_v30 = vadd.f32 %v2363_v29, %v2339_v10 }
 0x295   : > { %v2280_v20 = vmul.f32 %v7712_v19, %v8669_v58  ;;  %v5551_v24 = vpop.eup %5550  ;;  %v2898_v37 = vmul.f32 1.442695, %v2786_v36  ;;  %v2373_v13 = vadd.f32 %v2365_v1, %v2341_v0  ;;  %v2282_v32 = vmul.f32 %v7712_v19, %v8670_v56 }
 0x296   : > { %v2320_v5 = vmul.f32 %v7300_v44, %v8671_v34  ;;  %v5553_v8 = vpop.eup %5552  ;;  %v4689_v6 = vadd.f32 -1.0, %v5551_v24  ;;  %v2906_v57 = vmul.f32 1.442695, %v2790_v59  ;;  %v2403_v46 = vadd.f32 %v2395_v43, %v2371_v30  ;;  %v8687_v59 = vld [vmem:[#allocation25_spill] sm:$0xff]  ;;  %v8688_v24 = vld [vmem:[#allocation35_spill] sm:$0xff] }
 0x297   : > { %v2322_v23 = vmul.f32 %v7300_v44, %v8672_v14  ;;  %v4693_v48 = vadd.f32 -1.0, %v5553_v8  ;;  %5558 = vpow2.f32 %v2898_v37  ;;  %v2405_v39 = vadd.f32 %v2397_v49, %v2373_v13 }
 0x298   : > { %v2328_v29 = vadd.f32 %v2320_v5, %v2280_v20  ;;  %v3107_v10 = vsel %vm2707_vm1, %v7770_v26, %v4689_v6  ;;  %5560 = vpow2.f32 %v2906_v57  ;;  %v7872_v1 = vadd.f32 %v8663_v55, %v2403_v46  ;;  %v8689_v46 = vld [vmem:[#allocation38_spill] sm:$0xff] }
 0x299   : > { %v2330_v36 = vadd.f32 %v2322_v23, %v2282_v32  ;;  %v3111_v43 = vsel %vm2711_vm2, %v7773_v33, %v4693_v48  ;;  %v7878_v0 = vadd.f32 %v8663_v55, %v2405_v39  ;;  %v2352_v49 = vmul.f32 %v7215_v4, %v8673_v7 }
 0x29a   : > { %v2354_v30 = vmul.f32 %v7215_v4, %v8687_v59  ;;  %v3171_v20 = vpack.c.bf16 %v3111_v43, %v3107_v10  ;;  %vm2709_vm3 = vcmp.gt.f32.partialorder %v7799_v50, 0.0  ;;  %v2788_v26 = vmin.f32 %v7872_v1, 0.0 }
 0x29b   : > { %v2384_v37 = vmul.f32 %v7233_v38, %v8688_v24  ;;  %vm2713_vm4 = vcmp.gt.f32.partialorder %v7805_v31, 0.0  ;;  %v2792_v33 = vmin.f32 %v7878_v0, 0.0  ;;  %v2360_v32 = vadd.f32 %v2352_v49, %v2328_v29 }
 0x29c   : > { %v5555_v13 = vpop.eup %5554  ;;  %v2362_v5 = vadd.f32 %v2354_v30, %v2330_v36  ;;  %3515 = vmatprep.mubr.bf16.mxu0 %v3171_v20  ;;  %v2902_v57 = vmul.f32 1.442695, %v2788_v26  ;;  %v2386_v23 = vmul.f32 %v7233_v38, %v8689_v46  ;;  %v2304_v48 = vmul.f32 %v7754_v11, %v8669_v58 }
 0x29d   : > { %v5557_v8 = vpop.eup %5556  ;;  %v4691_v6 = vadd.f32 -1.0, %v5555_v13  ;;  %v2910_v10 = vmul.f32 1.442695, %v2792_v33  ;;  %v2392_v43 = vadd.f32 %v2384_v37, %v2360_v32  ;;  %v2306_v62 = vmul.f32 %v7754_v11, %v8670_v56  ;;  %v8690_v37 = vld [vmem:[#allocation14_spill] sm:$0xff] }
 0x29e   : > { %v4695_v39 = vadd.f32 -1.0, %v5557_v8  ;;  %5562 = vpow2.f32 %v2902_v57  ;;  %v2394_v36 = vadd.f32 %v2386_v23, %v2362_v5  ;;  %v2336_v49 = vmul.f32 %v7324_v52, %v8671_v34 }
 0x29f   : > { %v3109_v29 = vsel %vm2709_vm3, %v7799_v50, %v4691_v6  ;;  %5564 = vpow2.f32 %v2910_v10  ;;  %v7905_v58 = vadd.f32 %v8645_v9, %v2392_v43  ;;  %v2338_v56 = vmul.f32 %v7324_v52, %v8672_v14 }
 0x2a0   : > { %v3113_v38 = vsel %vm2713_vm4, %v7805_v31, %v4695_v39  ;;  %v7910_v20 = vadd.f32 %v8645_v9, %v2394_v36  ;;  %v2344_v50 = vadd.f32 %v2336_v49, %v2304_v48  ;;  %v2368_v26 = vmul.f32 %v7229_v51, %v8673_v7 }
 0x2a1   : > { %v3173_v30 = vpack.c.bf16 %v3113_v38, %v3109_v29  ;;  %v7915_v13 = vmul.f32 0.25, %v8690_v37  ;;  %v2795_v31 = vmin.f32 %v7905_v58, 0.0  ;;  %v2346_v33 = vadd.f32 %v2338_v56, %v2306_v62  ;;  %v8691_v29 = vld [vmem:[#allocation42_spill] sm:$0xff]  ;;  %v8693_v37 = vld [vmem:[#allocation40_spill] sm:$0xff] }
 0x2a2   : > { %v2370_v32 = vmul.f32 %v7229_v51, %v8687_v59  ;;  %vm2706_vm5 = vcmp.gt.f32.partialorder %v7841_v18, 0.0  ;;  %v2799_v5 = vmin.f32 %v7910_v20, 0.0  ;;  %v2376_v8 = vadd.f32 %v2368_v26, %v2344_v50 }
 0x2a3   : > { %3628 = vmatprep.mubr.bf16.mxu1 %v3173_v30  ;;  %v2400_v6 = vmul.f32 %v7256_v27, %v8688_v24  ;;  %vm2710_vm6 = vcmp.gt.f32.partialorder %v7848_v17, 0.0  ;;  %v2916_v57 = vmul.f32 1.442695, %v2795_v31  ;;  %v2402_v48 = vmul.f32 %v7256_v27, %v8689_v46  ;;  %v8692_v30 = vld [vmem:[#allocation19_spill] sm:$0xff] }
 0x2a4   : > { %v2378_v23 = vadd.f32 %v2370_v32, %v2346_v33  ;;  %v5559_v62 = vpop.eup %5558  ;;  %v2924_v39 = vmul.f32 1.442695, %v2799_v5  ;;  %v2279_v43 = vmul.f32 %v7790_v60, %v6866_v40  ;;  %v2319_v36 = vmul.f32 %v7405_v2, %v8691_v29  ;;  %v5191_v46 = vld [vmem:[#allocation7 + $0x38] sm:$0xff]  }
 0x2a5   : > { %v2408_v10 = vadd.f32 %v2400_v6, %v2376_v8  ;;  %v5561_v49 = vpop.eup %5560  ;;  %v4688_v38 = vadd.f32 -1.0, %v5559_v62  ;;  %vm2708_vm7 = vcmp.gt.f32.partialorder %v7872_v1, 0.0  ;;  %5566 = vpow2.f32 %v2916_v57  ;;  %v8694_v8 = vld [vmem:[#allocation21_spill] sm:$0xff]  ;;  %v8695_v62 = vld [vmem:[#allocation24_spill] sm:$0xff] }
 0x2a6   : > { %v2410_v56 = vadd.f32 %v2402_v48, %v2378_v23  ;;  %v2321_v50 = vmul.f32 %v7405_v2, %v8692_v30  ;;  %v4692_v26 = vadd.f32 -1.0, %v5561_v49  ;;  %5568 = vpow2.f32 %v2924_v39 }
 0x2a7   : > { %v7935_v27 = vadd.f32 %v8652_v41, %v2408_v10  ;;  %v2281_v31 = vmul.f32 %v7790_v60, %v8693_v37  ;;  %v3106_v33 = vsel %vm2706_vm5, %v7841_v18, %v4688_v38  ;;  %v2327_v5 = vadd.f32 %v2319_v36, %v2279_v43  ;;  %v8696_v38 = vld [vmem:[#allocation29_spill] sm:$0xff] }
 0x2a8   : > { %v7943_v32 = vadd.f32 %v8652_v41, %v2410_v56  ;;  %v2351_v6 = vmul.f32 %v7317_v3, %v8694_v8  ;;  %v3110_v57 = vsel %vm2710_vm6, %v7848_v17, %v4692_v26  ;;  %v2353_v39 = vmul.f32 %v7317_v3, %v8695_v62  ;;  %v5190_v26 = vld [vmem:[#allocation7 + $0x78] sm:$0xff]  }
 0x2a9   : > { %v2797_v23 = vmin.f32 %v7935_v27, 0.0  ;;  %v2329_v48 = vadd.f32 %v2321_v50, %v2281_v31  ;;  %v3170_v10 = vpack.c.bf16 %v3110_v57, %v3106_v33  ;;  %vm2712_vm8 = vcmp.gt.f32.partialorder %v7878_v0, 0.0  ;;  %4987 = vmatprep.subr.bf16.mxu0 %v5190_v26 }
 0x2aa   : > { %v2801_v18 = vmin.f32 %v7943_v32, 0.0  ;;  %v2359_v49 = vadd.f32 %v2351_v6, %v2327_v5  ;;  %v2383_v56 = vmul.f32 %v7336_v63, %v8696_v38  ;;  %v2385_v17 = vmul.f32 %v7336_v63, %v7915_v13  ;;  %4988 = vmatpush3.bf16.msra.mxu0 %v5191_v46 }
 0x2ab   : > { %v2920_v43 = vmul.f32 1.442695, %v2797_v23  ;;  %v2361_v36 = vadd.f32 %v2353_v39, %v2329_v48  ;;  %v5563_v50 = vpop.eup %5562  ;;  %3516 = vmatmul.mubr.bf16.gmra.mxu0 %v3170_v10  ;;  %v2303_v33 = vmul.f32 %v7826_v16, %v6866_v40  ;;  %v2305_v57 = vmul.f32 %v7826_v16, %v8693_v37 }
 0x2ac   : > { %v2928_v31 = vmul.f32 1.442695, %v2801_v18  ;;  %v2335_v5 = vmul.f32 %v8665_v25, %v8691_v29  ;;  %v5565_v6 = vpop.eup %5564  ;;  %v4690_v23 = vadd.f32 -1.0, %v5563_v50  ;;  %v2391_v48 = vadd.f32 %v2383_v56, %v2359_v49  ;;  %v5192_v56 = vld [vmem:[#allocation7 + $0x70] sm:$0xff]  }
 0x2ad   : > { %5570 = vpow2.f32 %v2920_v43  ;;  %v2393_v39 = vadd.f32 %v2385_v17, %v2361_v36  ;;  %v4694_v63 = vadd.f32 -1.0, %v5565_v6  ;;  %v2337_v10 = vmul.f32 %v8665_v25, %v8692_v30  ;;  %v5193_v17 = vld [vmem:[#allocation7 + $0x30] sm:$0xff]   ;;  %4989 = vmatprep.subr.bf16.mxu0 %v5192_v56 }
 0x2ae   : > { %5572 = vpow2.f32 %v2928_v31  ;;  %v2343_v18 = vadd.f32 %v2335_v5, %v2303_v33  ;;  %v3108_v40 = vsel %vm2708_vm7, %v7872_v1, %v4690_v23  ;;  %v7971_v37 = vadd.f32 %v8660_v35, %v2391_v48  ;;  %4990 = vmatpush3.bf16.msra.mxu0 %v5193_v17 }
 0x2af   : > { %v7974_v50 = vadd.f32 %v8660_v35, %v2393_v39  ;;  %v2367_v49 = vmul.f32 %v7332_v28, %v8694_v8  ;;  %v3112_v43 = vsel %vm2712_vm8, %v7878_v0, %v4694_v63  ;;  %v2345_v36 = vadd.f32 %v2337_v10, %v2305_v57 }
 0x2b0   : > { %v2369_v46 = vmul.f32 %v7332_v28, %v8695_v62  ;;  %v2399_v1 = vmul.f32 %v7363_v45, %v8696_v38  ;;  %v3172_v26 = vpack.c.bf16 %v3112_v43, %v3108_v40  ;;  %vm2715_vm9 = vcmp.gt.f32.partialorder %v7905_v58, 0.0 }
 0x2b1   : > { %vm2719_vm10 = vcmp.gt.f32.partialorder %v7910_v20, 0.0  ;;  %v2794_v31 = vmin.f32 %v7971_v37, 0.0  ;;  %v2798_v33 = vmin.f32 %v7974_v50, 0.0  ;;  %v2375_v5 = vadd.f32 %v2367_v49, %v2343_v18 }
 0x2b2   : > { %v2377_v0 = vadd.f32 %v2369_v46, %v2345_v36  ;;  %v2401_v57 = vmul.f32 %v7363_v45, %v7915_v13  ;;  %v5567_v6 = vpop.eup %5566  ;;  %3629 = vmatmul.mubr.bf16.gmra.mxu1 %v3172_v26  ;;  %v2412_v48 = vmul.f32 %v7712_v19, %v6954_v22  ;;  %v2414_v39 = vmul.f32 %v7712_v19, %v6998_v15 }
 0x2b3   : > { %v2914_v23 = vmul.f32 1.442695, %v2794_v31  ;;  %v2444_v63 = vmul.f32 %v7300_v44, %v7114_v61  ;;  %v5569_v10 = vpop.eup %5568  ;;  %v4697_v18 = vadd.f32 -1.0, %v5567_v6  ;;  %v2922_v40 = vmul.f32 1.442695, %v2798_v33  ;;  %v8697_v33 = vld [vmem:[#allocation13_spill] sm:$0xff] }
 0x2b4   : > { %v2407_v49 = vadd.f32 %v2399_v1, %v2375_v5  ;;  %v2409_v43 = vadd.f32 %v2401_v57, %v2377_v0  ;;  %v4701_v45 = vadd.f32 -1.0, %v5569_v10  ;;  %v2446_v36 = vmul.f32 %v7300_v44, %v7145_v12  ;;  %v8698_v0 = vld [vmem:[#allocation28_spill] sm:$0xff] }
 0x2b5   : > { %5574 = vpow2.f32 %v2914_v23  ;;  %v2452_v46 = vadd.f32 %v2444_v63, %v2412_v48  ;;  %v3115_v56 = vsel %vm2715_vm9, %v7905_v58, %v4697_v18  ;;  %v2476_v5 = vmul.f32 %v7215_v4, %v8697_v33 }
 0x2b6   : > { %5576 = vpow2.f32 %v2922_v40  ;;  %v8003_v26 = vadd.f32 %v8663_v55, %v2407_v49  ;;  %v8006_v17 = vadd.f32 %v8663_v55, %v2409_v43  ;;  %v3119_v1 = vsel %vm2719_vm10, %v7910_v20, %v4701_v45 }
 0x2b7   : > { %v2454_v31 = vadd.f32 %v2446_v36, %v2414_v39  ;;  %v2478_v57 = vmul.f32 %v7215_v4, %v8698_v0  ;;  %v3175_v6 = vpack.c.bf16 %v3119_v1, %v3115_v56  ;;  %v2484_v48 = vadd.f32 %v2476_v5, %v2452_v46  ;;  %v5194_v56 = vld [vmem:[#allocation7 + $0x68] sm:$0xff]  }
 0x2b8   : > { %v2796_v58 = vmin.f32 %v8003_v26, 0.0  ;;  %v2800_v23 = vmin.f32 %v8006_v17, 0.0  ;;  %v2428_v10 = vmul.f32 %v7754_v11, %v6954_v22  ;;  %v2430_v39 = vmul.f32 %v7754_v11, %v6998_v15  ;;  %4991 = vmatprep.subr.bf16.mxu0 %v5194_v56 }
 0x2b9   : > { %v2486_v63 = vadd.f32 %v2478_v57, %v2454_v31  ;;  %3523 = vmatprep.mubr.bf16.mxu0 %v3175_v6  ;;  %v2460_v40 = vmul.f32 %v7324_v52, %v7114_v61  ;;  %v2462_v49 = vmul.f32 %v7324_v52, %v7145_v12  ;;  %v8026_v46 = vadd.f32 %v8645_v9, %v2484_v48 }
 0x2ba   : > { %v5571_v18 = vpop.eup %5570  ;;  %v2918_v20 = vmul.f32 1.442695, %v2796_v58  ;;  %v2926_v36 = vmul.f32 1.442695, %v2800_v23  ;;  %vm2717_vm11 = vcmp.gt.f32.partialorder %v7935_v27, 0.0  ;;  %vm2721_vm12 = vcmp.gt.f32.partialorder %v7943_v32, 0.0 }
 0x2bb   : > { %v5573_v43 = vpop.eup %5572  ;;  %v4699_v45 = vadd.f32 -1.0, %v5571_v18  ;;  %v8029_v22 = vadd.f32 %v8645_v9, %v2486_v63  ;;  %vm2714_vm13 = vcmp.gt.f32.partialorder %v7971_v37, 0.0  ;;  %v2468_v31 = vadd.f32 %v2460_v40, %v2428_v10 }
 0x2bc   : > { %v4703_v15 = vadd.f32 -1.0, %v5573_v43  ;;  %5578 = vpow2.f32 %v2918_v20  ;;  %v2470_v5 = vadd.f32 %v2462_v49, %v2430_v39  ;;  %v2803_v6 = vmin.f32 %v8026_v46, 0.0 }
 0x2bd   : > { %v3117_v1 = vsel %vm2717_vm11, %v7935_v27, %v4699_v45  ;;  %5580 = vpow2.f32 %v2926_v36  ;;  %v2807_v58 = vmin.f32 %v8029_v22, 0.0  ;;  %v2492_v23 = vmul.f32 %v7229_v51, %v8697_v33  ;;  %v8699_v45 = vld [vmem:[#allocation15_spill] sm:$0xff] }
 0x2be   : > { %v3121_v57 = vsel %vm2721_vm12, %v7943_v32, %v4703_v15  ;;  %v2494_v63 = vmul.f32 %v7229_v51, %v8698_v0  ;;  %v2411_v27 = vmul.f32 %v7790_v60, %v6952_v42  ;;  %v2413_v10 = vmul.f32 %v7790_v60, %v6968_v53 }
 0x2bf   : > { %v3177_v48 = vpack.c.bf16 %v3121_v57, %v3117_v1  ;;  %v2932_v18 = vmul.f32 1.442695, %v2803_v6  ;;  %v2940_v32 = vmul.f32 1.442695, %v2807_v58  ;;  %v2500_v20 = vadd.f32 %v2492_v23, %v2468_v31 }
 0x2c0   : > { %v2443_v39 = vmul.f32 %v7405_v2, %v8664_v47  ;;  %v2502_v40 = vadd.f32 %v2494_v63, %v2470_v5  ;;  %v2445_v49 = vmul.f32 %v7405_v2, %v8684_v21  ;;  %v2475_v43 = vmul.f32 %v7317_v3, %v8685_v54 }
 0x2c1   : > { %3636 = vmatprep.mubr.bf16.mxu1 %v3177_v48  ;;  %v2477_v36 = vmul.f32 %v7317_v3, %v8699_v45  ;;  %vm2718_vm14 = vcmp.gt.f32.partialorder %v7974_v50, 0.0  ;;  %5582 = vpow2.f32 %v2932_v18  ;;  %v8056_v56 = vadd.f32 %v8652_v41, %v2500_v20 }
 0x2c2   : > { %v5575_v15 = vpop.eup %5574  ;;  %v2451_v1 = vadd.f32 %v2443_v39, %v2411_v27  ;;  %5584 = vpow2.f32 %v2940_v32  ;;  %v8059_v5 = vadd.f32 %v8652_v41, %v2502_v40  ;;  %v2453_v6 = vadd.f32 %v2445_v49, %v2413_v10 }
 0x2c3   : > { %v5577_v31 = vpop.eup %5576  ;;  %v4696_v57 = vadd.f32 -1.0, %v5575_v15  ;;  %vm2716_vm15 = vcmp.gt.f32.partialorder %v8003_v26, 0.0  ;;  %v2805_v23 = vmin.f32 %v8056_v56, 0.0  ;;  %vm2720_vm0 = vcmp.gt.f32.partialorder %v8006_v17, 0.0  ;;  %v5196_v15 = vld [vmem:[#allocation7 + $0xf8] sm:$0xff]  }
 0x2c4   : > { %v4700_v58 = vadd.f32 -1.0, %v5577_v31  ;;  %v2483_v48 = vadd.f32 %v2475_v43, %v2451_v1  ;;  %v2809_v63 = vmin.f32 %v8059_v5, 0.0  ;;  %v2485_v18 = vadd.f32 %v2477_v36, %v2453_v6  ;;  %v5195_v36 = vld [vmem:[#allocation7 + $0x28] sm:$0xff]   ;;  %v5197_v1 = vld [vmem:[#allocation7 + $0xb8] sm:$0xff]   ;;  %5015 = vmatprep.subr.bf16.mxu1 %v5196_v15 }
 0x2c5   : > { %v2427_v27 = vmul.f32 %v7826_v16, %v6952_v42  ;;  %v3114_v32 = vsel %vm2714_vm13, %v7971_v37, %v4696_v57  ;;  %v2936_v20 = vmul.f32 1.442695, %v2805_v23  ;;  %v2459_v42 = vmul.f32 %v8665_v25, %v8664_v47  ;;  %4992 = vmatpush3.bf16.msra.mxu0 %v5195_v36  ;;  %5016 = vmatpush3.bf16.msra.mxu1 %v5197_v1 }
 0x2c6   : > { %v3118_v10 = vsel %vm2718_vm14, %v7974_v50, %v4700_v58  ;;  %v8074_v39 = vadd.f32 %v8660_v35, %v2483_v48  ;;  %v2944_v49 = vmul.f32 1.442695, %v2809_v63  ;;  %v8077_v43 = vadd.f32 %v8660_v35, %v2485_v18 }
 0x2c7   : > { %v3174_v40 = vpack.c.bf16 %v3118_v10, %v3114_v32  ;;  %5586 = vpow2.f32 %v2936_v20  ;;  %v2429_v50 = vmul.f32 %v7826_v16, %v6968_v53  ;;  %v2461_v31 = vmul.f32 %v8665_v25, %v8684_v21 }
 0x2c8   : > { %v2802_v37 = vmin.f32 %v8074_v39, 0.0  ;;  %vm2723_vm1 = vcmp.gt.f32.partialorder %v8026_v46, 0.0  ;;  %5588 = vpow2.f32 %v2944_v49  ;;  %v2806_v6 = vmin.f32 %v8077_v43, 0.0 }
 0x2c9   : > { %v5579_v57 = vpop.eup %5578  ;;  %3524 = vmatmul.mubr.bf16.gmra.mxu0 %v3174_v40  ;;  %v2467_v58 = vadd.f32 %v2459_v42, %v2427_v27  ;;  %v2469_v18 = vadd.f32 %v2461_v31, %v2429_v50  ;;  %v2491_v32 = vmul.f32 %v7332_v28, %v8685_v54  ;;  %v2493_v20 = vmul.f32 %v7332_v28, %v8699_v45 }
 0x2ca   : > { %v5581_v23 = vpop.eup %5580  ;;  %v4698_v48 = vadd.f32 -1.0, %v5579_v57  ;;  %v2930_v63 = vmul.f32 1.442695, %v2802_v37  ;;  %v2938_v10 = vmul.f32 1.442695, %v2806_v6  ;;  %v2416_v40 = vmul.f32 %v7712_v19, %v8671_v34 }
 0x2cb   : > { %v4702_v53 = vadd.f32 -1.0, %v5581_v23  ;;  %v2499_v49 = vadd.f32 %v2491_v32, %v2467_v58  ;;  %v2418_v42 = vmul.f32 %v7712_v19, %v8672_v14  ;;  %v2501_v15 = vadd.f32 %v2493_v20, %v2469_v18  ;;  %v8700_v58 = vld [vmem:[#allocation38_spill] sm:$0xff] }
 0x2cc   : > { %v3116_v27 = vsel %vm2716_vm15, %v8003_v26, %v4698_v48  ;;  %5590 = vpow2.f32 %v2930_v63  ;;  %v2448_v1 = vmul.f32 %v7300_v44, %v8673_v7  ;;  %v2450_v26 = vmul.f32 %v7300_v44, %v8687_v59 }
 0x2cd   : > { %v3120_v36 = vsel %vm2720_vm0, %v8006_v17, %v4702_v53  ;;  %5592 = vpow2.f32 %v2938_v10  ;;  %v8105_v50 = vadd.f32 %v8663_v55, %v2499_v49  ;;  %v2480_v31 = vmul.f32 %v7215_v4, %v8688_v24 }
 0x2ce   : > { %v3176_v37 = vpack.c.bf16 %v3120_v36, %v3116_v27  ;;  %v5583_v57 = vpop.eup %5582  ;;  %vm2727_vm2 = vcmp.gt.f32.partialorder %v8029_v22, 0.0  ;;  %v8113_v17 = vadd.f32 %v8663_v55, %v2501_v15  ;;  %v2456_v6 = vadd.f32 %v2448_v1, %v2416_v40 }
 0x2cf   : > { %v2482_v23 = vmul.f32 %v7215_v4, %v8700_v58  ;;  %v5585_v48 = vpop.eup %5584  ;;  %v4705_v63 = vadd.f32 -1.0, %v5583_v57  ;;  %vm2725_vm3 = vcmp.gt.f32.partialorder %v8056_v56, 0.0  ;;  %v2804_v18 = vmin.f32 %v8105_v50, 0.0 }
 0x2d0   : > { %3637 = vmatmul.mubr.bf16.gmra.mxu1 %v3176_v37  ;;  %v2458_v32 = vadd.f32 %v2450_v26, %v2418_v42  ;;  %v4709_v53 = vadd.f32 -1.0, %v5585_v48  ;;  %v2808_v10 = vmin.f32 %v8113_v17, 0.0  ;;  %v2488_v20 = vadd.f32 %v2480_v31, %v2456_v6 }
 0x2d1   : > { %v2432_v27 = vmul.f32 %v7754_v11, %v8671_v34  ;;  %v3123_v40 = vsel %vm2723_vm1, %v8026_v46, %v4705_v63  ;;  %v2934_v4 = vmul.f32 1.442695, %v2804_v18  ;;  %v2434_v36 = vmul.f32 %v7754_v11, %v8672_v14 }
 0x2d2   : > { %v2490_v49 = vadd.f32 %v2482_v23, %v2458_v32  ;;  %v3127_v42 = vsel %vm2727_vm2, %v8029_v22, %v4709_v53  ;;  %v2942_v15 = vmul.f32 1.442695, %v2808_v10  ;;  %v8131_v1 = vadd.f32 %v8645_v9, %v2488_v20 }
 0x2d3   : > { %v2464_v34 = vmul.f32 %v7324_v52, %v8673_v7  ;;  %v3179_v37 = vpack.c.bf16 %v3127_v42, %v3123_v40  ;;  %5594 = vpow2.f32 %v2934_v4  ;;  %v2466_v26 = vmul.f32 %v7324_v52, %v8687_v59 }
 0x2d4   : > { %v8136_v46 = vadd.f32 %v8645_v9, %v2490_v49  ;;  %v5587_v14 = vpop.eup %5586  ;;  %vm2729_vm4 = vcmp.gt.f32.partialorder %v8059_v5, 0.0  ;;  %vm2722_vm5 = vcmp.gt.f32.partialorder %v8074_v39, 0.0  ;;  %5596 = vpow2.f32 %v2942_v15 }
 0x2d5   : > { %v2811_v22 = vmin.f32 %v8131_v1, 0.0  ;;  %v5589_v31 = vpop.eup %5588  ;;  %3531 = vmatprep.mubr.bf16.mxu0 %v3179_v37  ;;  %v4707_v57 = vadd.f32 -1.0, %v5587_v14  ;;  %v2472_v23 = vadd.f32 %v2464_v34, %v2432_v27  ;;  %v2474_v48 = vadd.f32 %v2466_v26, %v2434_v36 }
 0x2d6   : > { %v2815_v6 = vmin.f32 %v8136_v46, 0.0  ;;  %v4711_v63 = vadd.f32 -1.0, %v5589_v31  ;;  %v2496_v32 = vmul.f32 %v7229_v51, %v8688_v24  ;;  %v2498_v53 = vmul.f32 %v7229_v51, %v8700_v58 }
 0x2d7   : > { %v2948_v18 = vmul.f32 1.442695, %v2811_v22  ;;  %v3125_v10 = vsel %vm2725_vm3, %v8056_v56, %v4707_v57  ;;  %vm2726_vm6 = vcmp.gt.f32.partialorder %v8077_v43, 0.0  ;;  %v2415_v40 = vmul.f32 %v7790_v60, %v8691_v29 }
 0x2d8   : > { %v2956_v20 = vmul.f32 1.442695, %v2815_v6  ;;  %v3129_v4 = vsel %vm2729_vm4, %v8059_v5, %v4711_v63  ;;  %v2504_v49 = vadd.f32 %v2496_v32, %v2472_v23  ;;  %v2506_v36 = vadd.f32 %v2498_v53, %v2474_v48 }
 0x2d9   : > { %v5591_v27 = vpop.eup %5590  ;;  %5598 = vpow2.f32 %v2948_v18  ;;  %v3181_v51 = vpack.c.bf16 %v3129_v4, %v3125_v10  ;;  %v2447_v56 = vmul.f32 %v7405_v2, %v8694_v8  ;;  %v2449_v5 = vmul.f32 %v7405_v2, %v8695_v62 }
 0x2da   : > { %v5593_v42 = vpop.eup %5592  ;;  %v4704_v15 = vadd.f32 -1.0, %v5591_v27  ;;  %5600 = vpow2.f32 %v2956_v20  ;;  %v8160_v37 = vadd.f32 %v8652_v41, %v2504_v49  ;;  %v8163_v26 = vadd.f32 %v8652_v41, %v2506_v36  ;;  %v5199_v27 = vld [vmem:[#allocation7 + $0x20] sm:$0xff]  }
 0x2db   : > { %v4708_v34 = vadd.f32 -1.0, %v5593_v42  ;;  %3644 = vmatprep.mubr.bf16.mxu1 %v3181_v51  ;;  %v2417_v14 = vmul.f32 %v7790_v60, %v8692_v30  ;;  %v2455_v22 = vadd.f32 %v2447_v56, %v2415_v40  ;;  %v2479_v31 = vmul.f32 %v7317_v3, %v8696_v38  ;;  %v5198_v40 = vld [vmem:[#allocation7 + $0x60] sm:$0xff]  }
 0x2dc   : > { %v2481_v57 = vmul.f32 %v7317_v3, %v7915_v13  ;;  %v3122_v6 = vsel %vm2722_vm5, %v8074_v39, %v4704_v15  ;;  %v2813_v48 = vmin.f32 %v8160_v37, 0.0  ;;  %v2817_v18 = vmin.f32 %v8163_v26, 0.0  ;;  %4993 = vmatprep.subr.bf16.mxu0 %v5198_v40 }
 0x2dd   : > { %v3126_v23 = vsel %vm2726_vm6, %v8077_v43, %v4708_v34  ;;  %v2457_v32 = vadd.f32 %v2449_v5, %v2417_v14  ;;  %v2487_v53 = vadd.f32 %v2479_v31, %v2455_v22  ;;  %v2431_v20 = vmul.f32 %v7826_v16, %v8691_v29  ;;  %4994 = vmatpush3.bf16.msra.mxu0 %v5199_v27 }
 0x2de   : > { %v3178_v63 = vpack.c.bf16 %v3126_v23, %v3122_v6  ;;  %v2952_v10 = vmul.f32 1.442695, %v2813_v48  ;;  %v2433_v3 = vmul.f32 %v7826_v16, %v8692_v30  ;;  %v2463_v39 = vmul.f32 %v8665_v25, %v8694_v8  ;;  %v5201_v6 = vld [vmem:[#allocation7 + $0xb0] sm:$0xff]  }
 0x2df   : > { %v2960_v43 = vmul.f32 1.442695, %v2817_v18  ;;  %v2489_v4 = vadd.f32 %v2481_v57, %v2457_v32  ;;  %v8188_v49 = vadd.f32 %v8660_v35, %v2487_v53  ;;  %v2465_v36 = vmul.f32 %v8665_v25, %v8695_v62  ;;  %v5200_v57 = vld [vmem:[#allocation7 + $0xf0] sm:$0xff]  }
 0x2e0   : > { %3532 = vmatmul.mubr.bf16.gmra.mxu0 %v3178_v63  ;;  %v5595_v42 = vpop.eup %5594  ;;  %5602 = vpow2.f32 %v2952_v10  ;;  %v2471_v29 = vadd.f32 %v2463_v39, %v2431_v20  ;;  %v2495_v30 = vmul.f32 %v7332_v28, %v8696_v38  ;;  %v2497_v51 = vmul.f32 %v7332_v28, %v7915_v13  ;;  %5017 = vmatprep.subr.bf16.mxu1 %v5200_v57 }
 0x2e1   : > { %v5597_v15 = vpop.eup %5596  ;;  %vm2724_vm7 = vcmp.gt.f32.partialorder %v8105_v50, 0.0  ;;  %v4706_v56 = vadd.f32 -1.0, %v5595_v42  ;;  %5604 = vpow2.f32 %v2960_v43  ;;  %v8198_v34 = vadd.f32 %v8660_v35, %v2489_v4  ;;  %5018 = vmatpush3.bf16.msra.mxu1 %v5201_v6 }
 0x2e2   : > { %v4710_v5 = vadd.f32 -1.0, %v5597_v15  ;;  %v2810_v14 = vmin.f32 %v8188_v49, 0.0  ;;  %v2473_v22 = vadd.f32 %v2465_v36, %v2433_v3  ;;  %v2503_v31 = vadd.f32 %v2495_v30, %v2471_v29 }
 0x2e3   : > { %vm2728_vm8 = vcmp.gt.f32.partialorder %v8113_v17, 0.0  ;;  %v3124_v28 = vsel %vm2724_vm7, %v8105_v50, %v4706_v56  ;;  %vm2731_vm9 = vcmp.gt.f32.partialorder %v8131_v1, 0.0  ;;  %v2814_v23 = vmin.f32 %v8198_v34, 0.0 }
 0x2e4   : > { %v3128_v48 = vsel %vm2728_vm8, %v8113_v17, %v4710_v5  ;;  %v2946_v63 = vmul.f32 1.442695, %v2810_v14  ;;  %v2505_v18 = vadd.f32 %v2497_v51, %v2473_v22  ;;  %v8207_v32 = vadd.f32 %v8663_v55, %v2503_v31 }
 0x2e5   : > { %v3180_v10 = vpack.c.bf16 %v3128_v48, %v3124_v28  ;;  %v2954_v20 = vmul.f32 1.442695, %v2814_v23  ;;  %v2508_v3 = vmul.f32 %v7712_v19, %v7114_v61  ;;  %v2540_v50 = vmul.f32 %v7300_v44, %v8697_v33 }
 0x2e6   : > { %v5599_v53 = vpop.eup %5598  ;;  %5606 = vpow2.f32 %v2946_v63  ;;  %v8214_v17 = vadd.f32 %v8663_v55, %v2505_v18  ;;  %v2510_v27 = vmul.f32 %v7712_v19, %v7145_v12  ;;  %v2812_v4 = vmin.f32 %v8207_v32, 0.0 }
 0x2e7   : > { %v5601_v39 = vpop.eup %5600  ;;  %v4713_v40 = vadd.f32 -1.0, %v5599_v53  ;;  %3645 = vmatmul.mubr.bf16.gmra.mxu1 %v3180_v10  ;;  %5608 = vpow2.f32 %v2954_v20  ;;  %v2542_v36 = vmul.f32 %v7300_v44, %v8698_v0  ;;  %vm2735_vm10 = vcmp.gt.f32.partialorder %v8136_v46, 0.0 }
 0x2e8   : > { %v4717_v43 = vadd.f32 -1.0, %v5601_v39  ;;  %v2816_v29 = vmin.f32 %v8214_v17, 0.0  ;;  %v2548_v30 = vadd.f32 %v2540_v50, %v2508_v3  ;;  %v2950_v15 = vmul.f32 1.442695, %v2812_v4 }
 0x2e9   : > { %v3131_v42 = vsel %vm2731_vm9, %v8131_v1, %v4713_v40  ;;  %v2550_v56 = vadd.f32 %v2542_v36, %v2510_v27  ;;  %v2524_v5 = vmul.f32 %v7754_v11, %v7114_v61  ;;  %v2526_v57 = vmul.f32 %v7754_v11, %v7145_v12 }
 0x2ea   : > { %v3135_v51 = vsel %vm2735_vm10, %v8136_v46, %v4717_v43  ;;  %v2958_v22 = vmul.f32 1.442695, %v2816_v29  ;;  %v8230_v31 = vadd.f32 %v8645_v9, %v2548_v30  ;;  %5610 = vpow2.f32 %v2950_v15 }
 0x2eb   : > { %v3183_v14 = vpack.c.bf16 %v3135_v51, %v3131_v42  ;;  %v8235_v1 = vadd.f32 %v8645_v9, %v2550_v56  ;;  %v2556_v46 = vmul.f32 %v7324_v52, %v8697_v33  ;;  %v2558_v6 = vmul.f32 %v7324_v52, %v8698_v0 }
 0x2ec   : > { %vm2733_vm11 = vcmp.gt.f32.partialorder %v8160_v37, 0.0  ;;  %5612 = vpow2.f32 %v2958_v22  ;;  %v2819_v61 = vmin.f32 %v8230_v31, 0.0  ;;  %vm2737_vm12 = vcmp.gt.f32.partialorder %v8163_v26, 0.0 }
 0x2ed   : > { %3539 = vmatprep.mubr.bf16.mxu0 %v3183_v14  ;;  %v5603_v28 = vpop.eup %5602  ;;  %v2823_v12 = vmin.f32 %v8235_v1, 0.0  ;;  %v2564_v23 = vadd.f32 %v2556_v46, %v2524_v5  ;;  %v2566_v48 = vadd.f32 %v2558_v6, %v2526_v57  ;;  %v2507_v33 = vmul.f32 %v7790_v60, %v8664_v47 }
 0x2ee   : > { %v5605_v63 = vpop.eup %5604  ;;  %v4715_v18 = vadd.f32 -1.0, %v5603_v28  ;;  %v2964_v53 = vmul.f32 1.442695, %v2819_v61  ;;  %v2539_v0 = vmul.f32 %v7405_v2, %v8685_v54  ;;  %v2509_v39 = vmul.f32 %v7790_v60, %v8684_v21 }
 0x2ef   : > { %v4719_v10 = vadd.f32 -1.0, %v5605_v63  ;;  %v2972_v20 = vmul.f32 1.442695, %v2823_v12  ;;  %v8250_v3 = vadd.f32 %v8652_v41, %v2564_v23  ;;  %v8253_v50 = vadd.f32 %v8652_v41, %v2566_v48 }
 0x2f0   : > { %5614 = vpow2.f32 %v2964_v53  ;;  %v2541_v40 = vmul.f32 %v7405_v2, %v8699_v45  ;;  %v2547_v27 = vadd.f32 %v2539_v0, %v2507_v33  ;;  %v3133_v43 = vsel %vm2733_vm11, %v8160_v37, %v4715_v18 }
 0x2f1   : > { %v3137_v4 = vsel %vm2737_vm12, %v8163_v26, %v4719_v10  ;;  %5616 = vpow2.f32 %v2972_v20  ;;  %v2821_v42 = vmin.f32 %v8250_v3, 0.0  ;;  %v2825_v29 = vmin.f32 %v8253_v50, 0.0 }
 0x2f2   : > { %v3185_v36 = vpack.c.bf16 %v3137_v4, %v3133_v43  ;;  %v2549_v30 = vadd.f32 %v2541_v40, %v2509_v39  ;;  %vm2730_vm13 = vcmp.gt.f32.partialorder %v8188_v49, 0.0  ;;  %vm2734_vm14 = vcmp.gt.f32.partialorder %v8198_v34, 0.0 }
 0x2f3   : > { %v5607_v51 = vpop.eup %5606  ;;  %v8270_v15 = vadd.f32 %v8660_v35, %v2547_v27  ;;  %v2555_v37 = vmul.f32 %v8665_v25, %v8685_v54  ;;  %v2968_v5 = vmul.f32 1.442695, %v2821_v42  ;;  %v2976_v14 = vmul.f32 1.442695, %v2825_v29 }
 0x2f4   : > { %v5609_v56 = vpop.eup %5608  ;;  %3652 = vmatprep.mubr.bf16.mxu1 %v3185_v36  ;;  %v4712_v26 = vadd.f32 -1.0, %v5607_v51  ;;  %v8275_v22 = vadd.f32 %v8660_v35, %v2549_v30  ;;  %v2523_v6 = vmul.f32 %v7826_v16, %v8664_v47  ;;  %v2557_v61 = vmul.f32 %v8665_v25, %v8699_v45 }
 0x2f5   : > { %v4716_v57 = vadd.f32 -1.0, %v5609_v56  ;;  %v2818_v46 = vmin.f32 %v8270_v15, 0.0  ;;  %5618 = vpow2.f32 %v2968_v5  ;;  %v2525_v12 = vmul.f32 %v7826_v16, %v8684_v21 }
 0x2f6   : > { %v3130_v28 = vsel %vm2730_vm13, %v8188_v49, %v4712_v26  ;;  %v2822_v54 = vmin.f32 %v8275_v22, 0.0  ;;  %5620 = vpow2.f32 %v2976_v14  ;;  %v2563_v63 = vadd.f32 %v2555_v37, %v2523_v6 }
 0x2f7   : > { %v3134_v23 = vsel %vm2734_vm14, %v8198_v34, %v4716_v57  ;;  %v2962_v48 = vmul.f32 1.442695, %v2818_v46  ;;  %v5611_v18 = vpop.eup %5610  ;;  %vm2732_vm15 = vcmp.gt.f32.partialorder %v8207_v32, 0.0  ;;  %v2565_v53 = vadd.f32 %v2557_v61, %v2525_v12 }
 0x2f8   : > { %v3182_v47 = vpack.c.bf16 %v3134_v23, %v3130_v28  ;;  %v2970_v45 = vmul.f32 1.442695, %v2822_v54  ;;  %v4714_v33 = vadd.f32 -1.0, %v5611_v18  ;;  %v8291_v0 = vadd.f32 %v8663_v55, %v2563_v63 }
 0x2f9   : > { %v5613_v49 = vpop.eup %5612  ;;  %5622 = vpow2.f32 %v2962_v48  ;;  %v2512_v21 = vmul.f32 %v7712_v19, %v8673_v7  ;;  %v8296_v10 = vadd.f32 %v8663_v55, %v2565_v53  ;;  %v2544_v20 = vmul.f32 %v7300_v44, %v8688_v24 }
 0x2fa   : > { %3540 = vmatmul.mubr.bf16.gmra.mxu0 %v3182_v47  ;;  %v4718_v34 = vadd.f32 -1.0, %v5613_v49  ;;  %5624 = vpow2.f32 %v2970_v45  ;;  %vm2736_vm0 = vcmp.gt.f32.partialorder %v8214_v17, 0.0  ;;  %v2820_v39 = vmin.f32 %v8291_v0, 0.0 }
 0x2fb   : > { %v2514_v40 = vmul.f32 %v7712_v19, %v8687_v59  ;;  %v2546_v27 = vmul.f32 %v7300_v44, %v8700_v58  ;;  %v3132_v43 = vsel %vm2732_vm15, %v8207_v32, %v4714_v33  ;;  %v2824_v36 = vmin.f32 %v8296_v10, 0.0 }
 0x2fc   : > { %v3136_v4 = vsel %vm2736_vm0, %v8214_v17, %v4718_v34  ;;  %v2552_v42 = vadd.f32 %v2544_v20, %v2512_v21  ;;  %vm2739_vm1 = vcmp.gt.f32.partialorder %v8230_v31, 0.0  ;;  %v2966_v51 = vmul.f32 1.442695, %v2820_v39 }
 0x2fd   : > { %v5615_v29 = vpop.eup %5614  ;;  %v3184_v30 = vpack.c.bf16 %v3136_v4, %v3132_v43  ;;  %v2554_v37 = vadd.f32 %v2546_v27, %v2514_v40  ;;  %vm2743_vm2 = vcmp.gt.f32.partialorder %v8235_v1, 0.0  ;;  %v2974_v44 = vmul.f32 1.442695, %v2824_v36 }
 0x2fe   : > { %v5617_v56 = vpop.eup %5616  ;;  %v4721_v19 = vadd.f32 -1.0, %v5615_v29  ;;  %v8314_v26 = vadd.f32 %v8645_v9, %v2552_v42  ;;  %5626 = vpow2.f32 %v2966_v51  ;;  %v2560_v5 = vmul.f32 %v7324_v52, %v8688_v24 }
 0x2ff   : > { %3653 = vmatmul.mubr.bf16.gmra.mxu1 %v3184_v30  ;;  %v4725_v32 = vadd.f32 -1.0, %v5617_v56  ;;  %v8317_v17 = vadd.f32 %v8645_v9, %v2554_v37  ;;  %5628 = vpow2.f32 %v2974_v44  ;;  %v2528_v57 = vmul.f32 %v7754_v11, %v8673_v7 }
 0x300   : > { %v2827_v14 = vmin.f32 %v8314_v26, 0.0  ;;  %v2530_v46 = vmul.f32 %v7754_v11, %v8687_v59  ;;  %v3139_v6 = vsel %vm2739_vm1, %v8230_v31, %v4721_v19  ;;  %v2562_v24 = vmul.f32 %v7324_v52, %v8700_v58 }
 0x301   : > { %v3143_v61 = vsel %vm2743_vm2, %v8235_v1, %v4725_v32  ;;  %v2831_v9 = vmin.f32 %v8317_v17, 0.0  ;;  %v2568_v12 = vadd.f32 %v2560_v5, %v2528_v57  ;;  %v2511_v7 = vmul.f32 %v7790_v60, %v8694_v8  ;;  %v5202_v32 = vld [vmem:[#allocation7 + $0x58] sm:$0xff]  }
 0x302   : > { %v3187_v28 = vpack.c.bf16 %v3143_v61, %v3139_v6  ;;  %v2980_v54 = vmul.f32 1.442695, %v2827_v14  ;;  %v5619_v23 = vpop.eup %5618  ;;  %v2570_v11 = vadd.f32 %v2562_v24, %v2530_v46  ;;  %v2513_v59 = vmul.f32 %v7790_v60, %v8695_v62  ;;  %4995 = vmatprep.subr.bf16.mxu0 %v5202_v32  ;;  %v5204_v24 = vld [vmem:[#allocation7 + $0xe8] sm:$0xff]   ;;  %v5211_v32 = vld [vmem:[#allocation7] sm:$0xff]  }
 0x303   : > { %v2988_v48 = vmul.f32 1.442695, %v2831_v9  ;;  %v2543_v31 = vmul.f32 %v7405_v2, %v8696_v38  ;;  %v5621_v1 = vpop.eup %5620  ;;  %v4723_v63 = vadd.f32 -1.0, %v5619_v23  ;;  %v8340_v52 = vadd.f32 %v8652_v41, %v2568_v12  ;;  %v5203_v9 = vld [vmem:[#allocation7 + $0x18] sm:$0xff]   ;;  %5019 = vmatprep.subr.bf16.mxu1 %v5204_v24 }
 0x304   : > { %3547 = vmatprep.mubr.bf16.mxu0 %v3187_v28  ;;  %5630 = vpow2.f32 %v2980_v54  ;;  %v2545_v58 = vmul.f32 %v7405_v2, %v7915_v13  ;;  %v4727_v18 = vadd.f32 -1.0, %v5621_v1  ;;  %v8345_v47 = vadd.f32 %v8652_v41, %v2570_v11  ;;  %v5205_v54 = vld [vmem:[#allocation7 + $0x50] sm:$0xff]   ;;  %4996 = vmatpush3.bf16.msra.mxu0 %v5203_v9 }
 0x305   : > { %5632 = vpow2.f32 %v2988_v48  ;;  %v2551_v45 = vadd.f32 %v2543_v31, %v2511_v7  ;;  %vm2741_vm3 = vcmp.gt.f32.partialorder %v8250_v3, 0.0  ;;  %vm2745_vm4 = vcmp.gt.f32.partialorder %v8253_v50, 0.0  ;;  %4997 = vmatprep.subr.bf16.mxu0 %v5205_v54 }
 0x306   : > { %v5623_v60 = vpop.eup %5622  ;;  %v2829_v53 = vmin.f32 %v8340_v52, 0.0  ;;  %v2553_v49 = vadd.f32 %v2545_v58, %v2513_v59  ;;  %v3141_v21 = vsel %vm2741_vm3, %v8250_v3, %v4723_v63  ;;  %v3145_v34 = vsel %vm2745_vm4, %v8253_v50, %v4727_v18  ;;  %v5208_v18 = vld [vmem:[#allocation7 + $0x48] sm:$0xff]  }
 0x307   : > { %v5625_v33 = vpop.eup %5624  ;;  %v4720_v2 = vadd.f32 -1.0, %v5623_v60  ;;  %v2833_v20 = vmin.f32 %v8345_v47, 0.0  ;;  %v3189_v39 = vpack.c.bf16 %v3145_v34, %v3141_v21  ;;  %v8354_v27 = vadd.f32 %v8660_v35, %v2551_v45 }
 0x308   : > { %v4724_v41 = vadd.f32 -1.0, %v5625_v33  ;;  %v2984_v40 = vmul.f32 1.442695, %v2829_v53  ;;  %vm2738_vm5 = vcmp.gt.f32.partialorder %v8270_v15, 0.0  ;;  %vm2742_vm6 = vcmp.gt.f32.partialorder %v8275_v22, 0.0  ;;  %v4851_v48 = vpop.f32.mrf.mxu0 }
 0x309   : > { %v2992_v43 = vmul.f32 1.442695, %v2833_v20  ;;  %v8359_v4 = vadd.f32 %v8660_v35, %v2553_v49  ;;  %3660 = vmatprep.mubr.bf16.mxu1 %v3189_v39  ;;  %v3138_v3 = vsel %vm2738_vm5, %v8270_v15, %v4720_v2  ;;  %v2826_v36 = vmin.f32 %v8354_v27, 0.0  ;;  %v5209_v20 = vld [vmem:[#allocation7 + $0x8] sm:$0xff]  }
 0x30a   : > { %v3142_v50 = vsel %vm2742_vm6, %v8275_v22, %v4724_v41  ;;  %5634 = vpow2.f32 %v2984_v40  ;;  %v2527_v30 = vmul.f32 %v7826_v16, %v8694_v8  ;;  %v2529_v35 = vmul.f32 %v7826_v16, %v8695_v62  ;;  %v4852_v58 = vpop.f32.mrf.mxu0 }
 0x30b   : > { %v3186_v42 = vpack.c.bf16 %v3142_v50, %v3138_v3  ;;  %5636 = vpow2.f32 %v2992_v43  ;;  %v2830_v29 = vmin.f32 %v8359_v4, 0.0  ;;  %v5627_v51 = vpop.eup %5626  ;;  %v2978_v37 = vmul.f32 1.442695, %v2826_v36 }
 0x30c   : > { %v2559_v15 = vmul.f32 %v8665_v25, %v8696_v38  ;;  %v2561_v22 = vmul.f32 %v8665_v25, %v7915_v13  ;;  %v5629_v56 = vpop.eup %5628  ;;  %v4722_v19 = vadd.f32 -1.0, %v5627_v51  ;;  %vm2740_vm7 = vcmp.gt.f32.partialorder %v8291_v0, 0.0  ;;  %v4854_v2 = vpop.f32.mrf.mxu0  ;;  %v5210_v51 = vld [vmem:[#allocation7 + $0x40] sm:$0xff]  }
 0x30d   : > { %3548 = vmatmul.mubr.bf16.gmra.mxu0 %v3186_v42  ;;  %v2986_v44 = vmul.f32 1.442695, %v2830_v29  ;;  %v4726_v5 = vadd.f32 -1.0, %v5629_v56  ;;  %5638 = vpow2.f32 %v2978_v37  ;;  %vm2744_vm8 = vcmp.gt.f32.partialorder %v8296_v10, 0.0 }
 0x30e   : > { %v2567_v14 = vadd.f32 %v2559_v15, %v2527_v30  ;;  %v2569_v8 = vadd.f32 %v2561_v22, %v2529_v35  ;;  %v3140_v16 = vsel %vm2740_vm7, %v8291_v0, %v4722_v19  ;;  %vm2747_vm9 = vcmp.gt.f32.partialorder %v8314_v26, 0.0  ;;  %v4927_v53 = vpop.f32.mrf.mxu1  ;;  %v4855_v40 = vpop.f32.mrf.mxu0 }
 0x30f   : > { %5640 = vpow2.f32 %v2986_v44  ;;  %v3144_v62 = vsel %vm2744_vm8, %v8296_v10, %v4726_v5  ;;  %v5206_v10 = vld [vmem:[#allocation7 + $0xa8] sm:$0xff]   ;;  %vm2751_vm10 = vcmp.gt.f32.partialorder %v8317_v17, 0.0  ;;  %vm2749_vm11 = vcmp.gt.f32.partialorder %v8340_v52, 0.0  ;;  %v5212_v5 = vld [vmem:[#allocation7 + $0xe0] sm:$0xff]  }
 0x310   : > { %v8378_v25 = vadd.f32 %v8663_v55, %v2567_v14  ;;  %v8381_v13 = vadd.f32 %v8663_v55, %v2569_v8  ;;  %v3188_v57 = vpack.c.bf16 %v3144_v62, %v3140_v16  ;;  %5020 = vmatpush3.bf16.msra.mxu1 %v5206_v10  ;;  %vm2753_vm12 = vcmp.gt.f32.partialorder %v8345_v47, 0.0  ;;  %v4928_v41 = vpop.f32.mrf.mxu1  ;;  %v5213_v14 = vld [vmem:[#allocation7 + $0xa0] sm:$0xff]  }
 0x311   : > { %v5631_v38 = vpop.eup %5630  ;;  %vm2746_vm13 = vcmp.gt.f32.partialorder %v8354_v27, 0.0  ;;  %vm2750_vm14 = vcmp.gt.f32.partialorder %v8359_v4, 0.0  ;;  %v4856_v19 = vadd.f32 %v4855_v40, %v4854_v2  ;;  %v4853_v8 = vadd.f32 %v4852_v58, %v4851_v48  ;;  %v8406_v62 = vld [vmem:[%s8520_s5 + $0x2] ss:$0 sm:$0xff]  ;;  %5021 = vmatprep.subr.bf16.mxu1 %v5212_v5 }
 0x312   : > { %v5633_v46 = vpop.eup %5632  ;;  %v4729_v6 = vadd.f32 -1.0, %v5631_v38  ;;  %v2828_v61 = vmin.f32 %v8378_v25, 0.0  ;;  %3661 = vmatmul.mubr.bf16.gmra.mxu1 %v3188_v57  ;;  %v2832_v0 = vmin.f32 %v8381_v13, 0.0  ;;  %v4930_v3 = vpop.f32.mrf.mxu1  ;;  %vm2748_vm15 = vcmp.gt.f32.partialorder %v8378_v25, 0.0 }
 0x313   : > { %v4733_v28 = vadd.f32 -1.0, %v5633_v46  ;;  %vm2752_vm0 = vcmp.gt.f32.partialorder %v8381_v13, 0.0  ;;  %v3486_v38 = vadd.f32 %v4853_v8, %v8406_v62  ;;  %v4929_v9 = vadd.f32 %v4928_v41, %v4927_v53 }
 0x314   : > { %v2982_v55 = vmul.f32 1.442695, %v2828_v61  ;;  %v3147_v12 = vsel %vm2747_vm9, %v8314_v26, %v4729_v6  ;;  %v2990_v23 = vmul.f32 1.442695, %v2832_v0  ;;  %v5207_v26 = vld [vmem:[#allocation7 + $0x10] sm:$0xff]   ;;  %v4931_v30 = vpop.f32.mrf.mxu1  ;;  %5022 = vmatpush3.bf16.msra.mxu1 %v5213_v14 }
 0x315   : > { %v3151_v7 = vsel %vm2751_vm10, %v8317_v17, %v4733_v28  ;;  %4998 = vmatpush3.bf16.msra.mxu0 %v5207_v26  ;;  %v4932_v57 = vadd.f32 %v4931_v30, %v4930_v3  ;;  %v8412_v0 = vadd.f32 %v4929_v9, %v3486_v38 }
 0x316   : > { %v3191_v11 = vpack.c.bf16 %v3151_v7, %v3147_v12  ;;  %5642 = vpow2.f32 %v2982_v55  ;;  %4999 = vmatprep.subr.bf16.mxu0 %v5208_v18 }
 0x317   : > { %v5635_v59 = vpop.eup %5634  ;;  %5644 = vpow2.f32 %v2990_v23  ;;  %vm3677_vm1 = vcmp.gt.f32.partialorder %v8412_v0, 0.0 }
 0x318   : > { %v5637_v31 = vpop.eup %5636  ;;  %3555 = vmatprep.mubr.bf16.mxu0 %v3191_v11  ;;  %v4731_v1 = vadd.f32 -1.0, %v5635_v59  ;;  %v3697_v11 = vmin.f32 %v8412_v0, 0.0 }
 0x319   : > { %v4735_v63 = vadd.f32 -1.0, %v5637_v31  ;;  %5000 = vmatpush3.bf16.msra.mxu0 %v5209_v20  ;;  %v8397_v29 = vpop.f32.mrf.mxu0 }
 0x31a   : > { %v5639_v17 = vpop.eup %5638  ;;  %v3149_v45 = vsel %vm2749_vm11, %v8340_v52, %v4731_v1  ;;  %5001 = vmatprep.subr.bf16.mxu0 %v5210_v51 }
 0x31b   : > { %v3153_v60 = vsel %vm2753_vm12, %v8345_v47, %v4735_v63  ;;  %v4728_v21 = vadd.f32 -1.0, %v5639_v17  ;;  %v4858_v35 = vpop.f32.mrf.mxu0  ;;  %v3717_v17 = vmul.f32 1.442695, %v3697_v11  ;;  %v5217_v11 = vld [vmem:[#allocation7 + $0x90] sm:$0xff]  }
 0x31c   : > { %v5641_v49 = vpop.eup %5640  ;;  %v3193_v33 = vpack.c.bf16 %v3153_v60, %v3149_v45  ;;  %v4859_v2 = vadd.f32 %v4858_v35, %v8397_v29 }
 0x31d   : > { %v4732_v34 = vadd.f32 -1.0, %v5641_v49  ;;  %v3146_v39 = vsel %vm2746_vm13, %v8354_v27, %v4728_v21  ;;  %v4933_v15 = vpop.f32.mrf.mxu1  ;;  %v4860_v22 = vpop.f32.mrf.mxu0  ;;  %5002 = vmatpush3.bf16.msra.mxu0 %v5211_v32  ;;  %v5214_v21 = vld [vmem:[#allocation7 + $0xd8] sm:$0xff]  }
 0x31e   : > { %3668 = vmatprep.mubr.bf16.mxu1 %v3193_v33  ;;  %5023 = vmatprep.subr.bf16.mxu1 %v5214_v21  ;;  %v3494_v41 = vadd.f32 %v4859_v2, %v8406_v62  ;;  %v5218_v2 = vld [vmem:[#allocation7 + $0x138] sm:$0xff]  }
 0x31f   : > { %v3150_v52 = vsel %vm2750_vm14, %v8359_v4, %v4732_v34  ;;  %v4934_v56 = vpop.f32.mrf.mxu1  ;;  %v4861_v44 = vpop.f32.mrf.mxu0  ;;  %v5215_v34 = vld [vmem:[#allocation7 + $0x98] sm:$0xff]   ;;  %5053 = vmatprep.subr.bf16.mxu0 %v5218_v2 }
 0x320   : > { %v3190_v47 = vpack.c.bf16 %v3150_v52, %v3146_v39  ;;  %v4862_v33 = vadd.f32 %v4861_v44, %v4860_v22  ;;  %5024 = vmatpush3.bf16.msra.mxu1 %v5215_v34  ;;  %v4935_v3 = vadd.f32 %v4934_v56, %v4933_v15 }
 0x321   : > { %v4936_v16 = vpop.f32.mrf.mxu1 }
 0x322   : > { %3556 = vmatmul.mubr.bf16.gmra.mxu0 %v3190_v47  ;;  %v3497_v39 = vadd.f32 %v4862_v33, %v8406_v62 }
 0x323   : > { %v5643_v43 = vpop.eup %5642  ;;  %v4937_v46 = vpop.f32.mrf.mxu1 }
 0x324   : > { %v5645_v50 = vpop.eup %5644  ;;  %v4730_v36 = vadd.f32 -1.0, %v5643_v43  ;;  %v4938_v47 = vadd.f32 %v4937_v46, %v4936_v16 }
 0x325   : > { %v4734_v42 = vadd.f32 -1.0, %v5645_v50 }
 0x326   : > { %v3148_v27 = vsel %vm2748_vm15, %v8378_v25, %v4730_v36  ;;  %v3489_v25 = vadd.f32 %v4856_v19, %v8406_v62  ;;  %v3610_v50 = vadd.f32 %v4938_v47, %v3497_v39  ;;  %v5221_v47 = vld [vmem:[#allocation7 + $0x130] sm:$0xff]  }
 0x327   : > { %v3152_v4 = vsel %vm2752_vm0, %v8381_v13, %v4734_v42 }
 0x328   : > { %v3192_v37 = vpack.c.bf16 %v3152_v4, %v3148_v27  ;;  %v8410_v24 = vadd.f32 %v4932_v57, %v3489_v25  ;;  %v8421_v4 = vadd.f32 %v4935_v3, %v3494_v41  ;;  %v3700_v22 = vmin.f32 %v3610_v50, 0.0  ;;  %v5220_v41 = vld [vmem:[#allocation7 + $0x88] sm:$0xff]  }
 0x329   : > { %vm3680_vm5 = vcmp.gt.f32.partialorder %v3610_v50, 0.0 }
 0x32a   : > { %3669 = vmatmul.mubr.bf16.gmra.mxu1 %v3192_v37  ;;  %v3698_v7 = vmin.f32 %v8410_v24, 0.0  ;;  %v3699_v56 = vmin.f32 %v8421_v4, 0.0  ;;  %vm3678_vm2 = vcmp.gt.f32.partialorder %v8410_v24, 0.0  ;;  %v3723_v38 = vmul.f32 1.442695, %v3700_v22 }
 0x32b   : > { %vm3679_vm8 = vcmp.gt.f32.partialorder %v8421_v4, 0.0 }
 0x32c   : > { %v3719_v63 = vmul.f32 1.442695, %v3698_v7 }
 0x32e   : > { %5646 = vpow2.f32 %v3719_v63 }
 0x335   : > { %v4863_v13 = vpop.f32.mrf.mxu0 }
 0x337   : > { %v4864_v6 = vpop.f32.mrf.mxu0 }
 0x338   : > { %v4865_v61 = vadd.f32 %v4864_v6, %v4863_v13 }
 0x339   : > { %v4866_v28 = vpop.f32.mrf.mxu0 }
 0x33a   : > { %v3502_v55 = vadd.f32 %v4865_v61, %v8406_v62 }
 0x33b   : > { %v4939_v54 = vpop.f32.mrf.mxu1  ;;  %v4867_v10 = vpop.f32.mrf.mxu0 }
 0x33c   : > { %v4868_v12 = vadd.f32 %v4867_v10, %v4866_v28  ;;  %v5647_v36 = vpop.eup %5646 }
 0x33d   : > { %v4940_v23 = vpop.f32.mrf.mxu1  ;;  %v4769_v35 = vadd.f32 -1.0, %v5647_v36  ;;  %v5223_v36 = vld [vmem:[#allocation7 + $0x80] sm:$0xff]  }
 0x33e   : > { %v4941_v48 = vadd.f32 %v4940_v23, %v4939_v54  ;;  %v3505_v1 = vadd.f32 %v4868_v12, %v8406_v62  ;;  %v3721_v54 = vmul.f32 1.442695, %v3699_v56 }
 0x33f   : > { %v4942_v59 = vpop.f32.mrf.mxu1  ;;  %v3778_v13 = vsel %vm3678_vm2, %v8410_v24, %v4769_v35 }
 0x340   : > { %v3615_v31 = vadd.f32 %v4941_v48, %v3502_v55  ;;  %v5216_v48 = vld [vmem:[#allocation7 + $0xd0] sm:$0xff]  }
 0x341   : > { %v4943_v58 = vpop.f32.mrf.mxu1  ;;  %5025 = vmatprep.subr.bf16.mxu1 %v5216_v48 }
 0x342   : > { %v3701_v26 = vmin.f32 %v3615_v31, 0.0  ;;  %v4944_v18 = vadd.f32 %v4943_v58, %v4942_v59  ;;  %vm3681_vm3 = vcmp.gt.f32.partialorder %v3615_v31, 0.0  ;;  %5026 = vmatpush3.bf16.msra.mxu1 %v5217_v11 }
 0x344   : > { %v3725_v45 = vmul.f32 1.442695, %v3701_v26  ;;  %v3618_v60 = vadd.f32 %v4944_v18, %v3505_v1 }
 0x346   : > { %5648 = vpow2.f32 %v3725_v45  ;;  %v3702_v53 = vmin.f32 %v3618_v60, 0.0  ;;  %vm3682_vm4 = vcmp.gt.f32.partialorder %v3618_v60, 0.0 }
 0x347   : > { %5650 = vpow2.f32 %v3717_v17 }
 0x348   : > { %v3727_v49 = vmul.f32 1.442695, %v3702_v53 }
 0x34a   : > { %5652 = vpow2.f32 %v3727_v49 }
 0x34b   : > { %5654 = vpow2.f32 %v3723_v38 }
 0x34c   : > { %v4869_v20 = vpop.f32.mrf.mxu0 }
 0x34e   : > { %v4870_v52 = vpop.f32.mrf.mxu0 }
 0x34f   : > { %v4871_v40 = vadd.f32 %v4870_v52, %v4869_v20  ;;  %v5219_v20 = vld [vmem:[#allocation7 + $0xc8] sm:$0xff]  }
 0x350   : > { %v4872_v43 = vpop.f32.mrf.mxu0  ;;  %5027 = vmatprep.subr.bf16.mxu1 %v5219_v20 }
 0x351   : > { %v3510_v51 = vadd.f32 %v4871_v40, %v8406_v62  ;;  %v5222_v40 = vld [vmem:[#allocation7 + $0xc0] sm:$0xff]   ;;  %5028 = vmatpush3.bf16.msra.mxu1 %v5220_v41 }
 0x352   : > { %v4873_v42 = vpop.f32.mrf.mxu0  ;;  %5029 = vmatprep.subr.bf16.mxu1 %v5222_v40 }
 0x353   : > { %v5649_v27 = vpop.eup %5648  ;;  %v4945_v30 = vpop.f32.mrf.mxu1  ;;  %v4874_v37 = vadd.f32 %v4873_v42, %v4872_v43  ;;  %v5225_v42 = vld [vmem:[#allocation7 + $0x120] sm:$0xff]  }
 0x354   : > { %v5651_v29 = vpop.eup %5650  ;;  %v4772_v32 = vadd.f32 -1.0, %v5649_v27 }
 0x355   : > { %v4946_v19 = vpop.f32.mrf.mxu1  ;;  %v4768_v15 = vadd.f32 -1.0, %v5651_v29  ;;  %v3513_v16 = vadd.f32 %v4874_v37, %v8406_v62  ;;  %5030 = vmatpush3.bf16.msra.mxu1 %v5223_v36  ;;  %v5227_v37 = vld [vmem:[#allocation7 + $0x110] sm:$0xff]  }
 0x356   : > { %v4947_v44 = vadd.f32 %v4946_v19, %v4945_v30  ;;  %v3781_v61 = vsel %vm3681_vm3, %v3615_v31, %v4772_v32  ;;  %v5226_v30 = vld [vmem:[#allocation7 + $0x118] sm:$0xff]   ;;  %v5228_v19 = vld [vmem:[#allocation7 + $0x108] sm:$0xff]  }
 0x357   : > { %v5653_v5 = vpop.eup %5652  ;;  %v4948_v14 = vpop.f32.mrf.mxu1  ;;  %v3777_v28 = vsel %vm3677_vm1, %v8412_v0, %v4768_v15  ;;  %v5229_v15 = vld [vmem:[#allocation7 + $0x100] sm:$0xff]  }
 0x358   : > { %v3623_v8 = vadd.f32 %v4947_v44, %v3510_v51  ;;  %v4773_v25 = vadd.f32 -1.0, %v5653_v5  ;;  %v3797_v55 = vpack.c.bf16 %v3778_v13, %v3777_v28  ;;  %v5655_v59 = vpop.eup %5654 }
 0x359   : > { %v4949_v57 = vpop.f32.mrf.mxu1  ;;  %v4771_v1 = vadd.f32 -1.0, %v5655_v59 }
 0x35a   : > { %v3703_v46 = vmin.f32 %v3623_v8, 0.0  ;;  %v4950_v6 = vadd.f32 %v4949_v57, %v4948_v14  ;;  %v3782_v9 = vsel %vm3682_vm4, %v3618_v60, %v4773_v25  ;;  %vm3683_vm6 = vcmp.gt.f32.partialorder %v3623_v8, 0.0 }
 0x35b   : > { %v3798_v10 = vpack.c.bf16 %v3782_v9, %v3781_v61  ;;  %v3780_v17 = vsel %vm3680_vm5, %v3610_v50, %v4771_v1  ;;  %v5224_v50 = vld [vmem:[#allocation7 + $0x128] sm:$0xff]  }
 0x35c   : > { %v3729_v12 = vmul.f32 1.442695, %v3703_v46  ;;  %v3626_v7 = vadd.f32 %v4950_v6, %v3513_v16 }
 0x35d   : > { %4160 = vmatprep.mubr.bf16.mxu0 %v3798_v10 }
 0x35e   : > { %5656 = vpow2.f32 %v3729_v12  ;;  %v3704_v24 = vmin.f32 %v3626_v7, 0.0  ;;  %4161 = vmatmul.mubr.bf16.vlgmr.msra.gmra.mxu0 %v3797_v55  ;;  %vm3684_vm7 = vcmp.gt.f32.partialorder %v3626_v7, 0.0 }
 0x35f   : > { %5658 = vpow2.f32 %v3721_v54  ;;  %5054 = vmatpush3.bf16.msra.mxu0 %v5218_v2 }
 0x360   : > { %v3731_v23 = vmul.f32 1.442695, %v3704_v24  ;;  %5055 = vmatprep.subr.bf16.mxu0 %v5221_v47 }
 0x362   : > { %5660 = vpow2.f32 %v3731_v23 }
 0x363   : > { %5056 = vmatpush3.bf16.msra.mxu0 %v5221_v47 }
 0x364   : > { %5057 = vmatprep.subr.bf16.mxu0 %v5224_v50 }
 0x367   : > { %5058 = vmatpush3.bf16.msra.mxu0 %v5224_v50 }
 0x368   : > { %5059 = vmatprep.subr.bf16.mxu0 %v5225_v42 }
 0x36b   : > { %v5657_v31 = vpop.eup %5656  ;;  %v4875_v21 = vpop.f32.mrf.mxu0  ;;  %5060 = vmatpush3.bf16.msra.mxu0 %v5225_v42 }
 0x36c   : > { %v5659_v0 = vpop.eup %5658  ;;  %v4774_v63 = vadd.f32 -1.0, %v5657_v31  ;;  %5061 = vmatprep.subr.bf16.mxu0 %v5226_v30 }
 0x36d   : > { %v4770_v26 = vadd.f32 -1.0, %v5659_v0  ;;  %v4876_v34 = vpop.f32.mrf.mxu0 }
 0x36e   : > { %v3783_v45 = vsel %vm3683_vm6, %v3623_v8, %v4774_v63  ;;  %v4877_v56 = vadd.f32 %v4876_v34, %v4875_v21 }
 0x36f   : > { %v5661_v58 = vpop.eup %5660  ;;  %v3779_v49 = vsel %vm3679_vm8, %v8421_v4, %v4770_v26  ;;  %v4878_v52 = vpop.f32.mrf.mxu0  ;;  %5062 = vmatpush3.bf16.msra.mxu0 %v5226_v30 }
 0x370   : > { %v4775_v18 = vadd.f32 -1.0, %v5661_v58  ;;  %v3802_v33 = vpack.c.bf16 %v3780_v17, %v3779_v49  ;;  %5063 = vmatprep.subr.bf16.mxu0 %v5227_v37  ;;  %v3518_v13 = vadd.f32 %v4877_v56, %v8406_v62 }
 0x371   : > { %v4879_v3 = vpop.f32.mrf.mxu0 }
 0x372   : > { %v3784_v60 = vsel %vm3684_vm7, %v3626_v7, %v4775_v18  ;;  %v4951_v39 = vpop.f32.mrf.mxu1  ;;  %v4880_v5 = vadd.f32 %v4879_v3, %v4878_v52 }
 0x373   : > { %v3803_v53 = vpack.c.bf16 %v3784_v60, %v3783_v45  ;;  %5064 = vmatpush3.bf16.msra.mxu0 %v5227_v37 }
 0x374   : > { %v4952_v43 = vpop.f32.mrf.mxu1  ;;  %5065 = vmatprep.subr.bf16.mxu0 %v5228_v19  ;;  %v3521_v16 = vadd.f32 %v4880_v5, %v8406_v62 }
 0x375   : > { %4168 = vmatprep.mubr.bf16.mxu0 %v3803_v53  ;;  %v4953_v61 = vadd.f32 %v4952_v43, %v4951_v39 }
 0x376   : > { %4169 = vmatmul.mubr.bf16.gmra.mxu0 %v3802_v33  ;;  %v4954_v27 = vpop.f32.mrf.mxu1 }
 0x377   : > { %5066 = vmatpush3.bf16.msra.mxu0 %v5228_v19  ;;  %v8436_v54 = vadd.f32 %v4953_v61, %v3518_v13 }
 0x378   : > { %v4955_v29 = vpop.f32.mrf.mxu1  ;;  %5067 = vmatprep.subr.bf16.mxu0 %v5229_v15 }
 0x379   : > { %v4956_v38 = vadd.f32 %v4955_v29, %v4954_v27  ;;  %v3705_v48 = vmin.f32 %v8436_v54, 0.0  ;;  %vm3685_vm9 = vcmp.gt.f32.partialorder %v8436_v54, 0.0 }
 0x37b   : > { %v3634_v9 = vadd.f32 %v4956_v38, %v3521_v16  ;;  %5068 = vmatpush3.bf16.msra.mxu0 %v5229_v15  ;;  %v3733_v26 = vmul.f32 1.442695, %v3705_v48 }
 0x37d   : > { %v3706_v7 = vmin.f32 %v3634_v9, 0.0  ;;  %vm3686_vm10 = vcmp.gt.f32.partialorder %v3634_v9, 0.0 }
 0x37f   : > { %v3735_v0 = vmul.f32 1.442695, %v3706_v7 }
 0x381   : > { %5662 = vpow2.f32 %v3735_v0 }
 0x389   : > { %v4881_v4 = vpop.f32.mrf.mxu0 }
 0x38b   : > { %v4882_v51 = vpop.f32.mrf.mxu0 }
 0x38c   : > { %v4883_v49 = vadd.f32 %v4882_v51, %v4881_v4 }
 0x38d   : > { %v4884_v22 = vpop.f32.mrf.mxu0 }
 0x38e   : > { %v3526_v34 = vadd.f32 %v4883_v49, %v8406_v62  ;;  %v5663_v47 = vpop.eup %5662 }
 0x38f   : > { %v4885_v32 = vpop.f32.mrf.mxu0  ;;  %v4777_v4 = vadd.f32 -1.0, %v5663_v47 }
 0x390   : > { %v4957_v35 = vpop.f32.mrf.mxu1  ;;  %v4886_v53 = vadd.f32 %v4885_v32, %v4884_v22 }
 0x392   : > { %v4958_v44 = vpop.f32.mrf.mxu1  ;;  %v3529_v33 = vadd.f32 %v4886_v53, %v8406_v62 }
 0x393   : > { %v4959_v39 = vadd.f32 %v4958_v44, %v4957_v35 }
 0x394   : > { %v4960_v14 = vpop.f32.mrf.mxu1 }
 0x395   : > { %v8445_v3 = vadd.f32 %v4959_v39, %v3526_v34 }
 0x396   : > { %v4961_v57 = vpop.f32.mrf.mxu1 }
 0x397   : > { %v4962_v2 = vadd.f32 %v4961_v57, %v4960_v14  ;;  %v3707_v44 = vmin.f32 %v8445_v3, 0.0  ;;  %v3786_v14 = vsel %vm3686_vm10, %v3634_v9, %v4777_v4  ;;  %vm3687_vm14 = vcmp.gt.f32.partialorder %v8445_v3, 0.0 }
 0x399   : > { %v8443_v52 = vadd.f32 %v4962_v2, %v3529_v33 }
 0x39b   : > { %v3708_v30 = vmin.f32 %v8443_v52, 0.0  ;;  %vm3688_vm13 = vcmp.gt.f32.partialorder %v8443_v52, 0.0 }
 0x3a0   : > { %v4887_v8 = vpop.f32.mrf.mxu0 }
 0x3a2   : > { %v4888_v25 = vpop.f32.mrf.mxu0 }
 0x3a3   : > { %v4889_v6 = vadd.f32 %v4888_v25, %v4887_v8  ;;  %v3739_v8 = vmul.f32 1.442695, %v3708_v30 }
 0x3a4   : > { %v4890_v46 = vpop.f32.mrf.mxu0 }
 0x3a5   : > { %v3534_v55 = vadd.f32 %v4889_v6, %v8406_v62  ;;  %v3737_v6 = vmul.f32 1.442695, %v3707_v44 }
 0x3a6   : > { %v4891_v28 = vpop.f32.mrf.mxu0 }
 0x3a7   : > { %v4963_v10 = vpop.f32.mrf.mxu1  ;;  %v4892_v12 = vadd.f32 %v4891_v28, %v4890_v46 }
 0x3a9   : > { %v4964_v24 = vpop.f32.mrf.mxu1  ;;  %v3537_v31 = vadd.f32 %v4892_v12, %v8406_v62 }
 0x3aa   : > { %v4965_v23 = vadd.f32 %v4964_v24, %v4963_v10 }
 0x3ab   : > { %v4966_v11 = vpop.f32.mrf.mxu1 }
 0x3ac   : > { %v3647_v59 = vadd.f32 %v4965_v23, %v3534_v55 }
 0x3ad   : > { %v4967_v1 = vpop.f32.mrf.mxu1 }
 0x3ae   : > { %v3709_v63 = vmin.f32 %v3647_v59, 0.0  ;;  %v4968_v58 = vadd.f32 %v4967_v1, %v4966_v11  ;;  %vm3689_vm11 = vcmp.gt.f32.partialorder %v3647_v59, 0.0 }
 0x3b0   : > { %v3741_v18 = vmul.f32 1.442695, %v3709_v63  ;;  %v3650_v17 = vadd.f32 %v4968_v58, %v3537_v31 }
 0x3b2   : > { %5664 = vpow2.f32 %v3741_v18  ;;  %v3710_v45 = vmin.f32 %v3650_v17, 0.0  ;;  %vm3690_vm12 = vcmp.gt.f32.partialorder %v3650_v17, 0.0 }
 0x3b3   : > { %5666 = vpow2.f32 %v3733_v26 }
 0x3b4   : > { %v3743_v60 = vmul.f32 1.442695, %v3710_v45 }
 0x3b6   : > { %5668 = vpow2.f32 %v3743_v60 }
 0x3b7   : > { %5670 = vpow2.f32 %v3739_v8 }
 0x3ba   : > { %v4893_v21 = vpop.f32.mrf.mxu0 }
 0x3bc   : > { %v4894_v20 = vpop.f32.mrf.mxu0 }
 0x3bd   : > { %v4895_v41 = vadd.f32 %v4894_v20, %v4893_v21 }
 0x3be   : > { %v4896_v40 = vpop.f32.mrf.mxu0 }
 0x3bf   : > { %v5665_v43 = vpop.eup %5664  ;;  %v4969_v50 = vpop.f32.mrf.mxu1  ;;  %v3542_v42 = vadd.f32 %v4895_v41, %v8406_v62 }
 0x3c0   : > { %v5667_v36 = vpop.eup %5666  ;;  %v4897_v27 = vpop.f32.mrf.mxu0  ;;  %v4780_v35 = vadd.f32 -1.0, %v5665_v43 }
 0x3c1   : > { %v4970_v29 = vpop.f32.mrf.mxu1  ;;  %v4898_v51 = vadd.f32 %v4897_v27, %v4896_v40  ;;  %v4776_v19 = vadd.f32 -1.0, %v5667_v36 }
 0x3c2   : > { %v4971_v37 = vadd.f32 %v4970_v29, %v4969_v50  ;;  %v3789_v38 = vsel %vm3689_vm11, %v3647_v59, %v4780_v35 }
 0x3c3   : > { %v5669_v22 = vpop.eup %5668  ;;  %v4972_v32 = vpop.f32.mrf.mxu1  ;;  %v3545_v15 = vadd.f32 %v4898_v51, %v8406_v62  ;;  %v3785_v46 = vsel %vm3685_vm9, %v8436_v54, %v4776_v19 }
 0x3c4   : > { %v3655_v5 = vadd.f32 %v4971_v37, %v3542_v42  ;;  %v4781_v56 = vadd.f32 -1.0, %v5669_v22  ;;  %v3799_v28 = vpack.c.bf16 %v3786_v14, %v3785_v46  ;;  %v5671_v1 = vpop.eup %5670 }
 0x3c5   : > { %v4973_v16 = vpop.f32.mrf.mxu1  ;;  %v4779_v53 = vadd.f32 -1.0, %v5671_v1 }
 0x3c6   : > { %v3711_v25 = vmin.f32 %v3655_v5, 0.0  ;;  %v4974_v13 = vadd.f32 %v4973_v16, %v4972_v32  ;;  %v3790_v57 = vsel %vm3690_vm12, %v3650_v17, %v4781_v56  ;;  %vm3691_vm15 = vcmp.gt.f32.partialorder %v3655_v5, 0.0 }
 0x3c7   : > { %v3800_v61 = vpack.c.bf16 %v3790_v57, %v3789_v38  ;;  %v3788_v47 = vsel %vm3688_vm13, %v8443_v52, %v4779_v53 }
 0x3c8   : > { %v3745_v10 = vmul.f32 1.442695, %v3711_v25  ;;  %v3658_v55 = vadd.f32 %v4974_v13, %v3545_v15 }
 0x3c9   : > { %4209 = vmatprep.mubr.bf16.mxu1 %v3800_v61 }
 0x3ca   : > { %5672 = vpow2.f32 %v3745_v10  ;;  %v3712_v9 = vmin.f32 %v3658_v55, 0.0  ;;  %4210 = vmatmul.mubr.bf16.vlgmr.msra.gmra.mxu1 %v3799_v28  ;;  %vm3692_vm0 = vcmp.gt.f32.partialorder %v3658_v55, 0.0 }
 0x3cb   : > { %5674 = vpow2.f32 %v3737_v6 }
 0x3cc   : > { %v3747_v12 = vmul.f32 1.442695, %v3712_v9 }
 0x3cd   : > { %v4899_v7 = vpop.f32.mrf.mxu0 }
 0x3ce   : > { %5676 = vpow2.f32 %v3747_v12 }
 0x3cf   : > { %v4900_v24 = vpop.f32.mrf.mxu0 }
 0x3d0   : > { %v4901_v23 = vadd.f32 %v4900_v24, %v4899_v7 }
 0x3d1   : > { %v4902_v48 = vpop.f32.mrf.mxu0 }
 0x3d2   : > { %v4975_v11 = vpop.f32.mrf.mxu1  ;;  %v3550_v54 = vadd.f32 %v4901_v23, %v8406_v62 }
 0x3d3   : > { %v4903_v59 = vpop.f32.mrf.mxu0 }
 0x3d4   : > { %v4904_v31 = vadd.f32 %v4903_v59, %v4902_v48  ;;  %v4976_v0 = vpop.f32.mrf.mxu1 }
 0x3d5   : > { %v4977_v63 = vadd.f32 %v4976_v0, %v4975_v11 }
 0x3d6   : > { %v4978_v26 = vpop.f32.mrf.mxu1  ;;  %v3553_v45 = vadd.f32 %v4904_v31, %v8406_v62 }
 0x3d7   : > { %v5673_v58 = vpop.eup %5672  ;;  %v3663_v17 = vadd.f32 %v4977_v63, %v3550_v54 }
 0x3d8   : > { %v5675_v18 = vpop.eup %5674  ;;  %v4979_v60 = vpop.f32.mrf.mxu1  ;;  %v4782_v21 = vadd.f32 -1.0, %v5673_v58 }
 0x3d9   : > { %v3713_v49 = vmin.f32 %v3663_v17, 0.0  ;;  %v4980_v33 = vadd.f32 %v4979_v60, %v4978_v26  ;;  %v4778_v2 = vadd.f32 -1.0, %v5675_v18  ;;  %vm3693_vm1 = vcmp.gt.f32.partialorder %v3663_v17, 0.0 }
 0x3da   : > { %v3791_v43 = vsel %vm3691_vm15, %v3655_v5, %v4782_v21 }
 0x3db   : > { %v5677_v34 = vpop.eup %5676  ;;  %v3749_v20 = vmul.f32 1.442695, %v3713_v49  ;;  %v3666_v39 = vadd.f32 %v4980_v33, %v3553_v45  ;;  %v3787_v42 = vsel %vm3687_vm14, %v8445_v3, %v4778_v2  ;;  %v3887_v2 = vld [vmem:[%s8520_s5 + $0x3] ss:$0 sm:$0xff] }
 0x3dc   : > { %v4783_v41 = vadd.f32 -1.0, %v5677_v34  ;;  %v3804_v4 = vpack.c.bf16 %v3788_v47, %v3787_v42 }
 0x3dd   : > { %5678 = vpow2.f32 %v3749_v20  ;;  %v3714_v40 = vmin.f32 %v3666_v39, 0.0  ;;  %vm3694_vm2 = vcmp.gt.f32.partialorder %v3666_v39, 0.0 }
 0x3de   : > { %v3792_v50 = vsel %vm3692_vm0, %v3658_v55, %v4783_v41 }
 0x3df   : > { %v3805_v36 = vpack.c.bf16 %v3792_v50, %v3791_v43  ;;  %v3751_v27 = vmul.f32 1.442695, %v3714_v40 }
 0x3e1   : > { %4217 = vmatprep.mubr.bf16.mxu1 %v3805_v36  ;;  %5680 = vpow2.f32 %v3751_v27 }
 0x3e2   : > { %v4905_v30 = vpop.f32.mrf.mxu0  ;;  %4218 = vmatmul.mubr.bf16.gmra.mxu1 %v3804_v4 }
 0x3e4   : > { %v4906_v29 = vpop.f32.mrf.mxu0 }
 0x3e5   : > { %v4907_v37 = vadd.f32 %v4906_v29, %v4905_v30 }
 0x3e6   : > { %v4908_v51 = vpop.f32.mrf.mxu0 }
 0x3e7   : > { %v3558_v52 = vadd.f32 %v4907_v37, %v8406_v62 }
 0x3e8   : > { %v4909_v35 = vpop.f32.mrf.mxu0 }
 0x3e9   : > { %v4910_v44 = vadd.f32 %v4909_v35, %v4908_v51 }
 0x3ea   : > { %v4981_v22 = vpop.f32.mrf.mxu1  ;;  %v5679_v19 = vpop.eup %5678 }
 0x3eb   : > { %v4784_v56 = vadd.f32 -1.0, %v5679_v19  ;;  %v3561_v8 = vadd.f32 %v4910_v44, %v8406_v62 }
 0x3ec   : > { %v4982_v32 = vpop.f32.mrf.mxu1 }
 0x3ed   : > { %v4983_v5 = vadd.f32 %v4982_v32, %v4981_v22  ;;  %v3793_v57 = vsel %vm3693_vm1, %v3663_v17, %v4784_v56 }
 0x3ee   : > { %v4984_v15 = vpop.f32.mrf.mxu1  ;;  %v5681_v3 = vpop.eup %5680 }
 0x3ef   : > { %v3671_v14 = vadd.f32 %v4983_v5, %v3558_v52  ;;  %v4785_v25 = vadd.f32 -1.0, %v5681_v3 }
 0x3f0   : > { %v4985_v16 = vpop.f32.mrf.mxu1 }
 0x3f1   : > { %v3715_v13 = vmin.f32 %v3671_v14, 0.0  ;;  %v4986_v38 = vadd.f32 %v4985_v16, %v4984_v15  ;;  %v3794_v46 = vsel %vm3694_vm2, %v3666_v39, %v4785_v25  ;;  %vm3695_vm3 = vcmp.gt.f32.partialorder %v3671_v14, 0.0 }
 0x3f2   : > { %v3801_v28 = vpack.c.bf16 %v3794_v46, %v3793_v57 }
 0x3f3   : > { %v3753_v6 = vmul.f32 1.442695, %v3715_v13  ;;  %v3674_v61 = vadd.f32 %v4986_v38, %v3561_v8 }
 0x3f4   : > { %5069 = vmatprep.mubr.bf16.mxu0 %v3801_v28 }
 0x3f5   : > { %5682 = vpow2.f32 %v3753_v6  ;;  %v3716_v10 = vmin.f32 %v3674_v61, 0.0  ;;  %vm3696_vm4 = vcmp.gt.f32.partialorder %v3674_v61, 0.0 }
 0x3f7   : > { %v3755_v55 = vmul.f32 1.442695, %v3716_v10 }
 0x3f9   : > { %5684 = vpow2.f32 %v3755_v55 }
 0x402   : > { %v5683_v9 = vpop.eup %5682 }
 0x403   : > { %v4786_v12 = vadd.f32 -1.0, %v5683_v9 }
 0x405   : > { %v3795_v24 = vsel %vm3695_vm3, %v3671_v14, %v4786_v12 }
 0x406   : > { %v5685_v7 = vpop.eup %5684 }
 0x407   : > { %v4787_v62 = vadd.f32 -1.0, %v5685_v7 }
 0x409   : > { %v3796_v23 = vsel %vm3696_vm4, %v3674_v61, %v4787_v62 }
 0x40a   : > { %v3806_v48 = vpack.c.bf16 %v3796_v23, %v3795_v24 }
 0x40c   : > { %5070 = vmatmul.mubr.bf16.vlgmr.msra.gmra.mxu0 %v3806_v48 }
 0x41e   : > { %v5003_v11 = vpop.f32.mrf.mxu0 }
 0x420   : > { %v5004_v54 = vpop.f32.mrf.mxu0 }
 0x421   : > { %v5005_v21 = vadd.f32 %v5004_v54, %v5003_v11 }
 0x422   : > { %v5006_v0 = vpop.f32.mrf.mxu0 }
 0x423   : > { %v4163_v40 = vadd.f32 %v5005_v21, %v3887_v2 }
 0x424   : > { %v5007_v63 = vpop.f32.mrf.mxu0 }
 0x425   : > { %v5008_v43 = vadd.f32 %v5007_v63, %v5006_v0 }
 0x427   : > { %v4166_v37 = vadd.f32 %v5008_v43, %v3887_v2 }
 0x436   : > { %v5009_v26 = vpop.f32.mrf.mxu0 }
 0x438   : > { %v5010_v17 = vpop.f32.mrf.mxu0 }
 0x439   : > { %v5011_v49 = vadd.f32 %v5010_v17, %v5009_v26 }
 0x43a   : > { %v5012_v60 = vpop.f32.mrf.mxu0 }
 0x43b   : > { %v4171_v39 = vadd.f32 %v5011_v49, %v3887_v2 }
 0x43c   : > { %v5013_v33 = vpop.f32.mrf.mxu0 }
 0x43d   : > { %v5014_v41 = vadd.f32 %v5013_v33, %v5012_v60 }
 0x43f   : > { %v4174_v27 = vadd.f32 %v5014_v41, %v3887_v2 }
 0x48a   : > { %v5031_v59 = vpop.f32.mrf.mxu1 }
 0x48c   : > { %v5032_v31 = vpop.f32.mrf.mxu1 }
 0x48d   : > { %v5033_v47 = vadd.f32 %v5032_v31, %v5031_v59 }
 0x48e   : > { %v5034_v1 = vpop.f32.mrf.mxu1 }
 0x48f   : > { %v4212_v29 = vadd.f32 %v5033_v47, %v4163_v40 }
 0x490   : > { %v5035_v58 = vpop.f32.mrf.mxu1 }
 0x491   : > { %v5036_v4 = vadd.f32 %v5035_v58, %v5034_v1 }
 0x493   : > { %v4215_v44 = vadd.f32 %v5036_v4, %v4166_v37 }
 0x4a2   : > { %v5037_v18 = vpop.f32.mrf.mxu1 }
 0x4a4   : > { %v5038_v45 = vpop.f32.mrf.mxu1 }
 0x4a5   : > { %v5039_v34 = vadd.f32 %v5038_v45, %v5037_v18 }
 0x4a6   : > { %v5040_v53 = vpop.f32.mrf.mxu1 }
 0x4a7   : > { %v4220_v36 = vadd.f32 %v5039_v34, %v4171_v39 }
 0x4a8   : > { %v5041_v20 = vpop.f32.mrf.mxu1 }
 0x4a9   : > { %v5042_v50 = vadd.f32 %v5041_v20, %v5040_v53 }
 0x4ab   : > { %v4223_v22 = vadd.f32 %v5042_v50, %v4174_v27 }
 0x4cc   : > { %v5071_v42 = vpop.f32.mrf.mxu0 }
 0x4cd   : > { %v4269_v30 = vadd.f32 %v5071_v42, %v4220_v36 }
 0x4ce   : > { %v4260_v51 = vpop.f32.mrf.mxu0 }
 0x4cf   : > { %v4261_v35 = vadd.f32 %v4260_v51, %v4212_v29  ;;  %4279 = vmax.xlane.f32.xlu1 %v4269_v30 }
 0x4d0   : > { %v5072_v19 = vpop.f32.mrf.mxu0 }
 0x4d1   : > { %v4272_v52 = vadd.f32 %v5072_v19, %v4223_v22  ;;  %4275 = vmax.xlane.f32.xlu0 %v4261_v35 }
 0x4d2   : > { %v4263_v32 = vpop.f32.mrf.mxu0 }
 0x4d3   : > { %v4264_v5 = vadd.f32 %v4263_v32, %v4215_v44  ;;  %4281 = vmax.xlane.f32.xlu1 %v4272_v52 }
 0x4d5   : > { %4277 = vmax.xlane.f32.xlu0 %v4264_v5 }
 0x558   : > { %v4280_v15 = vpop.xlane.xlu1 %4279 }
 0x559   : > { %v4285_v56 = vsub.f32 %v4269_v30, %v4280_v15 }
 0x55a   : > { %v4276_v3 = vpop.xlane.xlu0 %4275 }
 0x55b   : > { %v4283_v14 = vsub.f32 %v4261_v35, %v4276_v3  ;;  %v4291_v25 = vmul.f32 1.442695, %v4285_v56 }
 0x55c   : > { %v4282_v8 = vpop.xlane.xlu1 %4281 }
 0x55d   : > { %v4287_v16 = vmul.f32 1.442695, %v4283_v14  ;;  %v4286_v38 = vsub.f32 %v4272_v52, %v4282_v8 }
 0x55e   : > { %v4278_v13 = vpop.xlane.xlu0 %4277 }
 0x55f   : > { %5686 = vpow2.f32 %v4287_v16  ;;  %v4284_v57 = vsub.f32 %v4264_v5, %v4278_v13  ;;  %v4293_v6 = vmul.f32 1.442695, %v4286_v38 }
 0x560   : > { %5688 = vpow2.f32 %v4291_v25 }
 0x561   : > { %v4289_v46 = vmul.f32 1.442695, %v4284_v57 }
 0x563   : > { %5690 = vpow2.f32 %v4289_v46 }
 0x564   : > { %5692 = vpow2.f32 %v4293_v6 }
 0x56c   : > { %v5687_v61 = vpop.eup %5686 }
 0x56d   : > { %4295 = vadd.xlane.f32.xlu0 %v5687_v61  ;;  %v5689_v28 = vpop.eup %5688 }
 0x570   : > { %v5691_v10 = vpop.eup %5690 }
 0x571   : > { %4299 = vadd.xlane.f32.xlu0 %v5689_v28  ;;  %4297 = vadd.xlane.f32.xlu1 %v5691_v10  ;;  %v5693_v55 = vpop.eup %5692 }
 0x575   : > { %4301 = vadd.xlane.f32.xlu1 %v5693_v55 }
 0x5f6   : > { %v4296_v9 = vpop.xlane.xlu0 %4295 }
 0x5f7   : > { %5694 = vlog2.f32 %v4296_v9 }
 0x5fa   : > { %v4298_v12 = vpop.xlane.xlu1 %4297  ;;  %v4300_v7 = vpop.xlane.xlu0 %4299 }
 0x5fb   : > { %5696 = vlog2.f32 %v4298_v12 }
 0x5fc   : > { %5698 = vlog2.f32 %v4300_v7 }
 0x5fe   : > { %v4302_v62 = vpop.xlane.xlu1 %4301 }
 0x5ff   : > { %5700 = vlog2.f32 %v4302_v62 }
 0x604   : > { %v5695_v24 = vpop.eup %5694 }
 0x605   : > { %v4304_v23 = vmul.f32 0.6931472, %v5695_v24 }
 0x607   : > { %v4311_v48 = vsub.f32 %v4283_v14, %v4304_v23 }
 0x608   : > { %v5697_v11 = vpop.eup %5696 }
 0x609   : > { %v5699_v59 = vpop.eup %5698  ;;  %4315 = vst [vmem:[%s288_s26] sm:$0xff] %v4311_v48  ;;  %v4306_v54 = vmul.f32 0.6931472, %v5697_v11 }
 0x60a   : > { %v4308_v31 = vmul.f32 0.6931472, %v5699_v59 }
 0x60b   : > { %v4312_v0 = vsub.f32 %v4284_v57, %v4306_v54 }
 0x60c   : > { %v5701_v1 = vpop.eup %5700  ;;  %v4313_v63 = vsub.f32 %v4285_v56, %v4308_v31 }
 0x60d   : > { %4316 = vst [vmem:[%s288_s26 + $0x8] sm:$0xff] %v4312_v0  ;;  %v4310_v58 = vmul.f32 0.6931472, %v5701_v1 }
 0x60e   : > { %4317 = vst [vmem:[%s288_s26 + $0x10] sm:$0xff] %v4313_v63 }
 0x60f   : > { %v4314_v26 = vsub.f32 %v4286_v38, %v4310_v58 }
 0x611   : > { %4318 = vst [vmem:[%s288_s26 + $0x18] sm:$0xff] %v4314_v26 }
 0x612   : > { %5793 = shalt.err (!%p5790_p0)
}
 0x613   : > { %s5794_s12 = scalar_lea.hbm %s8473_s13, 512  ;;  %s5798_s19 = scalar_lea.hbm %s8521_s6, 1024 }
 0x614   : > { %p5795_p1 = scmp.ne.s32.totalorder %s8473_s13, %s5794_s12  ;;  %p5799_p4 = scmp.lt.s32.totalorder %s8473_s13, %s8521_s6 }
 0x615   : > { %p5800_p10 = scmp.lt.s32.totalorder %s5798_s19, %s5794_s12 }
 0x616   : > { %p5796_p2 = pnand %p5795_p1, %p5934_p5 }
 0x617   : > { %p5801_p9 = por %p5800_p10, %p5799_p4 }
 0x618   : > { %p5797_p3 = pneg %p5796_p2 }
 0x61a   : > { %p5802_p12 = pnand %p5801_p9, %p5797_p3 }
 0x61c   : > { %5805 = shalt.err (!%p5802_p12)
}
 0x61d   : > { %s5859_s29 = smov 128   ;;  %s5860_s10 = smov 8  }
 0x61e   : > { %5085 = dma.vmem_to_hbm [thread:$0]  (%p5934_p5), %s8468_s28, 512, %s8473_s13, %s8475_s15, %s5859_s29, %s5859_s29, %s5860_s10  }
 0x61f PF: > { %p5107_p13 = scmp.ge.s32.totalorder %s5848_s24, 2  ;;  %s4348_s11 = sand.u32 1, %s5836_s21  }
 0x620   : > { %s4349_s14 = scalar_lea.sflag [#allocation4], %s4348_s11 }
 0x621   : > { %p5098_p7 = pnand %p5107_p13, %p5938_p6 }
 0x623   : > { %p5099_p8 = pneg %p5098_p7 }
 0x625   : > { %5831 = dma.done.wait (%p5099_p8), %s4349_s14, 512  }
 0x626   : > { %5833 = vsyncadd (%p5099_p8), %s4349_s14, 4294966784  ;;  %p18_p11 = scmp.ge.s32.totalorder %s5921_s27, 4   ;;  %s8701_s21 = smov %s5840_s22 }
 0x627   : > { %s8702_s22 = smov %s5844_s23  ;;  %s8703_s23 = smov %s5932_s30 }
 0x628   : > { %s8704_s24 = smov %s5921_s27  ;;  %20 = sbr.rel (!%p18_p11) target bundleno = 5 (0x5), region = 93 }
 0x62d   :  { %4354 = vsyncpa [#allocation3], 1 }
 0x62e   :  { %4356 = vsyncpa [#allocation3 + $0x1], 1 }
 0x62f   :  { %4357 = vsyncpa [#allocation6], 1 }
 0x630   :  { %4358 = vsyncpa [#allocation4], 1 }
 0x631   :  { %4360 = vsyncpa [#allocation4 + $0x1], 1 }

</bundles_post_ra>
